<compile_context>
chip_gen: v6e
topology: v6e:2x2x1
jax: 0.10.0
libtpu: 0.0.40
codegen_flags: <defaults>
</compile_context>

<pallas_src>
import jax
import jax.numpy as jnp
from jax.experimental import pallas as pl
from jax.experimental.pallas import tpu as pltpu

HID = 128            # hidden width (lane dim)
IN_PAD = 8           # input features padded 7 -> 8 (full-dim block, sublane-friendly)
N_LAYERS = 12        # total linear layers
N_STACK = 11         # stacked 128x128 layers (10 hidden + output)
TB = 512             # batch tile


def _pinn_kernel(x_ref, w0_ref, w_ref, b_ref, o_ref):
    # x_ref : (TB, 8)        f32   padded input features (lane 7 is zero)
    # w0_ref: (8, 128)       f32   first-layer weight (row 7 zero)
    # w_ref : (11, 128, 128) bf16  stacked hidden+output weights, layout (in, out)
    # b_ref : (12, 128)      f32   stacked biases (padded lanes zero)
    # o_ref : (TB, 128)      f32   padded output (first 12 lanes are real)

    # Layer 0: narrow-K (K=8) f32 matmul + bias + ReLU.
    h = jnp.dot(x_ref[...], w0_ref[...],
                preferred_element_type=jnp.float32) + b_ref[0]
    h = jnp.maximum(h, 0.0)

    # Layers 1..10: bf16 MXU matmuls with f32 accumulation; bias/ReLU in f32.
    for l in range(N_STACK - 1):
        h = jnp.dot(h.astype(jnp.bfloat16), w_ref[l],
                    preferred_element_type=jnp.float32) + b_ref[l + 1]
        h = jnp.maximum(h, 0.0)

    # Layer 11 (output): bf16 matmul, no ReLU.
    h = jnp.dot(h.astype(jnp.bfloat16), w_ref[N_STACK - 1],
                preferred_element_type=jnp.float32) + b_ref[N_LAYERS - 1]
    o_ref[...] = h


def pinn_forward(x, w0, w_stack, b_stack, *, tb=TB):
    """x: (B, 7) f32 -> (B, 12) f32. Whole MLP runs inside one Pallas kernel."""
    B = x.shape[0]
    b_pad = pl.cdiv(B, tb) * tb
    # Pad features 7 -> 8 lanes and batch B -> multiple of TB (zero rows are harmless).
    x_pad = jnp.zeros((b_pad, IN_PAD), dtype=jnp.float32)
    x_pad = x_pad.at[:B, :7].set(x.astype(jnp.float32))

    out_pad = pl.pallas_call(
        _pinn_kernel,
        out_shape=jax.ShapeDtypeStruct((b_pad, HID), jnp.float32),
        grid_spec=pltpu.PrefetchScalarGridSpec(
            num_scalar_prefetch=0,
            grid=(b_pad // tb,),
            in_specs=[
                pl.BlockSpec((tb, IN_PAD), lambda i: (i, 0)),             # x tile
                pl.BlockSpec((IN_PAD, HID), lambda i: (0, 0)),            # first-layer W (resident)
                pl.BlockSpec((N_STACK, HID, HID), lambda i: (0, 0, 0)),   # bf16 W stack (resident)
                pl.BlockSpec((N_LAYERS, HID), lambda i: (0, 0)),          # bias stack (resident)
            ],
            out_specs=pl.BlockSpec((tb, HID), lambda i: (i, 0)),
        ),
        compiler_params=pltpu.CompilerParams(
            dimension_semantics=("parallel",),   # batch tiles split across TensorCores
            vmem_limit_bytes=32 * 1024 * 1024,   # headroom above v5e's 16 MiB default if TB grows
        ),
    )(x_pad, w0, w_stack, b_stack)

    return out_pad[:B, :12]


def init_params(key):
    """Deterministic synthetic params matching torch.nn.Linear default init."""
    dims = [(7, 128)] + [(128, 128)] * 10 + [(128, 12)]
    w0 = jnp.zeros((IN_PAD, HID), dtype=jnp.float32)
    w_stack = jnp.zeros((N_STACK, HID, HID), dtype=jnp.float32)
    b_stack = jnp.zeros((N_LAYERS, HID), dtype=jnp.float32)
    for l, (fin, fout) in enumerate(dims):
        key, kw, kb = jax.random.split(key, 3)
        # PyTorch nn.Linear default: U(-1/sqrt(fan_in), 1/sqrt(fan_in))
        bound = 1.0 / jnp.sqrt(jnp.float32(fin))
        w = jax.random.uniform(kw, (fin, fout), jnp.float32, -bound, bound)
        b = jax.random.uniform(kb, (fout,), jnp.float32, -bound, bound)
        if l == 0:
            w0 = w0.at[:fin, :fout].set(w)
        else:
            w_stack = w_stack.at[l - 1, :fin, :fout].set(w)
        b_stack = b_stack.at[l, :fout].set(b)
    return w0, w_stack.astype(jnp.bfloat16), b_stack


def reference_forward(x, w0, w_stack_bf16, b_stack):
    """Plain-JAX reference using the same precision recipe as the kernel."""
    h = jnp.pad(x.astype(jnp.float32), ((0, 0), (0, IN_PAD - x.shape[1])))
    h = jnp.maximum(h @ w0 + b_stack[0], 0.0)
    for l in range(N_STACK - 1):
        h = jnp.dot(h.astype(jnp.bfloat16), w_stack_bf16[l],
                    preferred_element_type=jnp.float32) + b_stack[l + 1]
        h = jnp.maximum(h, 0.0)
    h = jnp.dot(h.astype(jnp.bfloat16), w_stack_bf16[N_STACK - 1],
                preferred_element_type=jnp.float32) + b_stack[N_LAYERS - 1]
    return h[:, :12]


if __name__ == "__main__":
    key = jax.random.PRNGKey(0)
    k_param, k_x = jax.random.split(key)
    w0, w_stack, b_stack = init_params(k_param)

    B = 64                                   # small ragged batch; wrapper pads to TB
    x = jax.random.normal(k_x, (B, 7), dtype=jnp.float32)

    out = pinn_forward(x, w0, w_stack, b_stack)
    out = jax.block_until_ready(out)

    ref = reference_forward(x, w0, w_stack, b_stack)
    assert out.shape == (B, 12)
    assert jnp.allclose(out, ref, atol=2e-3, rtol=2e-3), (
        float(jnp.max(jnp.abs(out - ref))))

    print("KERNEL_OK")
</pallas_src>

<mosaic_0001>
module attributes {stable_mosaic.version = 11 : i64} {
  func.func @_pinn_kernel(%arg0: i32, %arg1: memref<512x8xf32, #tpu.memory_space<vmem>>, %arg2: memref<8x128xf32, #tpu.memory_space<vmem>>, %arg3: memref<11x128x128xbf16, #tpu.memory_space<vmem>>, %arg4: memref<12x128xf32, #tpu.memory_space<vmem>>, %arg5: memref<512x128xf32, #tpu.memory_space<vmem>>) attributes {dimension_semantics = [#tpu.dimension_semantics<parallel>], iteration_bounds = array<i64: 1>, scalar_prefetch = 0 : i64, scratch_operands = 0 : i64, tpu.core_type = #tpu.core_type<tc>, window_params = [{transform_indices = @transform_0, window_bounds = array<i64: 512, 8>}, {pipeline_mode = #tpu.pipeline_mode<synchronous>, transform_indices = @transform_1, window_bounds = array<i64: 8, 128>}, {pipeline_mode = #tpu.pipeline_mode<synchronous>, transform_indices = @transform_2, window_bounds = array<i64: 11, 128, 128>}, {pipeline_mode = #tpu.pipeline_mode<synchronous>, transform_indices = @transform_3, window_bounds = array<i64: 12, 128>}, {transform_indices = @transform_4, window_bounds = array<i64: 512, 128>}]} {
    %c0 = arith.constant 0 : index
    %c0_0 = arith.constant 0 : index
    %0 = vector.load %arg1[%c0, %c0_0] : memref<512x8xf32, #tpu.memory_space<vmem>>, vector<512x8xf32>
    %c0_1 = arith.constant 0 : index
    %c0_2 = arith.constant 0 : index
    %1 = vector.load %arg2[%c0_1, %c0_2] : memref<8x128xf32, #tpu.memory_space<vmem>>, vector<8x128xf32>
    %cst = arith.constant dense<0.000000e+00> : vector<512x128xf32>
    %2 = tpu.matmul %0, %1, %cst {dimension_numbers = #tpu.dot_dimension_numbers<[1], [0], [0], [1], [0, 0, 1, 1], [], []>} : vector<512x8xf32>, vector<8x128xf32>, vector<512x128xf32> -> vector<512x128xf32>
    %c0_3 = arith.constant 0 : index
    %c0_4 = arith.constant 0 : index
    %3 = vector.load %arg4[%c0_3, %c0_4] : memref<12x128xf32, #tpu.memory_space<vmem>>, vector<1x128xf32>
    %4 = vector.shape_cast %3 : vector<1x128xf32> to vector<128xf32>
    %5 = vector.shape_cast %4 : vector<128xf32> to vector<1x128xf32>
    %6 = vector.broadcast %5 : vector<1x128xf32> to vector<512x128xf32>
    %7 = arith.addf %2, %6 : vector<512x128xf32>
    %cst_5 = arith.constant 0.000000e+00 : f32
    %8 = vector.broadcast %cst_5 : f32 to vector<512x128xf32>
    %9 = arith.maximumf %7, %8 : vector<512x128xf32>
    %10 = arith.truncf %9 : vector<512x128xf32> to vector<512x128xbf16>
    %c0_6 = arith.constant 0 : index
    %c0_7 = arith.constant 0 : index
    %c0_8 = arith.constant 0 : index
    %11 = vector.load %arg3[%c0_6, %c0_7, %c0_8] : memref<11x128x128xbf16, #tpu.memory_space<vmem>>, vector<1x128x128xbf16>
    %12 = vector.shape_cast %11 : vector<1x128x128xbf16> to vector<128x128xbf16>
    %cst_9 = arith.constant dense<0.000000e+00> : vector<512x128xf32>
    %13 = tpu.matmul %10, %12, %cst_9 {dimension_numbers = #tpu.dot_dimension_numbers<[1], [0], [0], [1], [0, 0, 1, 1], [], []>} : vector<512x128xbf16>, vector<128x128xbf16>, vector<512x128xf32> -> vector<512x128xf32>
    %c1 = arith.constant 1 : index
    %c0_10 = arith.constant 0 : index
    %14 = vector.load %arg4[%c1, %c0_10] : memref<12x128xf32, #tpu.memory_space<vmem>>, vector<1x128xf32>
    %15 = vector.shape_cast %14 : vector<1x128xf32> to vector<128xf32>
    %16 = vector.shape_cast %15 : vector<128xf32> to vector<1x128xf32>
    %17 = vector.broadcast %16 : vector<1x128xf32> to vector<512x128xf32>
    %18 = arith.addf %13, %17 : vector<512x128xf32>
    %cst_11 = arith.constant 0.000000e+00 : f32
    %19 = vector.broadcast %cst_11 : f32 to vector<512x128xf32>
    %20 = arith.maximumf %18, %19 : vector<512x128xf32>
    %21 = arith.truncf %20 : vector<512x128xf32> to vector<512x128xbf16>
    %c1_12 = arith.constant 1 : index
    %c0_13 = arith.constant 0 : index
    %c0_14 = arith.constant 0 : index
    %22 = vector.load %arg3[%c1_12, %c0_13, %c0_14] : memref<11x128x128xbf16, #tpu.memory_space<vmem>>, vector<1x128x128xbf16>
    %23 = vector.shape_cast %22 : vector<1x128x128xbf16> to vector<128x128xbf16>
    %cst_15 = arith.constant dense<0.000000e+00> : vector<512x128xf32>
    %24 = tpu.matmul %21, %23, %cst_15 {dimension_numbers = #tpu.dot_dimension_numbers<[1], [0], [0], [1], [0, 0, 1, 1], [], []>} : vector<512x128xbf16>, vector<128x128xbf16>, vector<512x128xf32> -> vector<512x128xf32>
    %c2 = arith.constant 2 : index
    %c0_16 = arith.constant 0 : index
    %25 = vector.load %arg4[%c2, %c0_16] : memref<12x128xf32, #tpu.memory_space<vmem>>, vector<1x128xf32>
    %26 = vector.shape_cast %25 : vector<1x128xf32> to vector<128xf32>
    %27 = vector.shape_cast %26 : vector<128xf32> to vector<1x128xf32>
    %28 = vector.broadcast %27 : vector<1x128xf32> to vector<512x128xf32>
    %29 = arith.addf %24, %28 : vector<512x128xf32>
    %cst_17 = arith.constant 0.000000e+00 : f32
    %30 = vector.broadcast %cst_17 : f32 to vector<512x128xf32>
    %31 = arith.maximumf %29, %30 : vector<512x128xf32>
    %32 = arith.truncf %31 : vector<512x128xf32> to vector<512x128xbf16>
    %c2_18 = arith.constant 2 : index
    %c0_19 = arith.constant 0 : index
    %c0_20 = arith.constant 0 : index
    %33 = vector.load %arg3[%c2_18, %c0_19, %c0_20] : memref<11x128x128xbf16, #tpu.memory_space<vmem>>, vector<1x128x128xbf16>
    %34 = vector.shape_cast %33 : vector<1x128x128xbf16> to vector<128x128xbf16>
    %cst_21 = arith.constant dense<0.000000e+00> : vector<512x128xf32>
    %35 = tpu.matmul %32, %34, %cst_21 {dimension_numbers = #tpu.dot_dimension_numbers<[1], [0], [0], [1], [0, 0, 1, 1], [], []>} : vector<512x128xbf16>, vector<128x128xbf16>, vector<512x128xf32> -> vector<512x128xf32>
    %c3 = arith.constant 3 : index
    %c0_22 = arith.constant 0 : index
    %36 = vector.load %arg4[%c3, %c0_22] : memref<12x128xf32, #tpu.memory_space<vmem>>, vector<1x128xf32>
    %37 = vector.shape_cast %36 : vector<1x128xf32> to vector<128xf32>
    %38 = vector.shape_cast %37 : vector<128xf32> to vector<1x128xf32>
    %39 = vector.broadcast %38 : vector<1x128xf32> to vector<512x128xf32>
    %40 = arith.addf %35, %39 : vector<512x128xf32>
    %cst_23 = arith.constant 0.000000e+00 : f32
    %41 = vector.broadcast %cst_23 : f32 to vector<512x128xf32>
    %42 = arith.maximumf %40, %41 : vector<512x128xf32>
    %43 = arith.truncf %42 : vector<512x128xf32> to vector<512x128xbf16>
    %c3_24 = arith.constant 3 : index
    %c0_25 = arith.constant 0 : index
    %c0_26 = arith.constant 0 : index
    %44 = vector.load %arg3[%c3_24, %c0_25, %c0_26] : memref<11x128x128xbf16, #tpu.memory_space<vmem>>, vector<1x128x128xbf16>
    %45 = vector.shape_cast %44 : vector<1x128x128xbf16> to vector<128x128xbf16>
    %cst_27 = arith.constant dense<0.000000e+00> : vector<512x128xf32>
    %46 = tpu.matmul %43, %45, %cst_27 {dimension_numbers = #tpu.dot_dimension_numbers<[1], [0], [0], [1], [0, 0, 1, 1], [], []>} : vector<512x128xbf16>, vector<128x128xbf16>, vector<512x128xf32> -> vector<512x128xf32>
    %c4 = arith.constant 4 : index
    %c0_28 = arith.constant 0 : index
    %47 = vector.load %arg4[%c4, %c0_28] : memref<12x128xf32, #tpu.memory_space<vmem>>, vector<1x128xf32>
    %48 = vector.shape_cast %47 : vector<1x128xf32> to vector<128xf32>
    %49 = vector.shape_cast %48 : vector<128xf32> to vector<1x128xf32>
    %50 = vector.broadcast %49 : vector<1x128xf32> to vector<512x128xf32>
    %51 = arith.addf %46, %50 : vector<512x128xf32>
    %cst_29 = arith.constant 0.000000e+00 : f32
    %52 = vector.broadcast %cst_29 : f32 to vector<512x128xf32>
    %53 = arith.maximumf %51, %52 : vector<512x128xf32>
    %54 = arith.truncf %53 : vector<512x128xf32> to vector<512x128xbf16>
    %c4_30 = arith.constant 4 : index
    %c0_31 = arith.constant 0 : index
    %c0_32 = arith.constant 0 : index
    %55 = vector.load %arg3[%c4_30, %c0_31, %c0_32] : memref<11x128x128xbf16, #tpu.memory_space<vmem>>, vector<1x128x128xbf16>
    %56 = vector.shape_cast %55 : vector<1x128x128xbf16> to vector<128x128xbf16>
    %cst_33 = arith.constant dense<0.000000e+00> : vector<512x128xf32>
    %57 = tpu.matmul %54, %56, %cst_33 {dimension_numbers = #tpu.dot_dimension_numbers<[1], [0], [0], [1], [0, 0, 1, 1], [], []>} : vector<512x128xbf16>, vector<128x128xbf16>, vector<512x128xf32> -> vector<512x128xf32>
    %c5 = arith.constant 5 : index
    %c0_34 = arith.constant 0 : index
    %58 = vector.load %arg4[%c5, %c0_34] : memref<12x128xf32, #tpu.memory_space<vmem>>, vector<1x128xf32>
    %59 = vector.shape_cast %58 : vector<1x128xf32> to vector<128xf32>
    %60 = vector.shape_cast %59 : vector<128xf32> to vector<1x128xf32>
    %61 = vector.broadcast %60 : vector<1x128xf32> to vector<512x128xf32>
    %62 = arith.addf %57, %61 : vector<512x128xf32>
    %cst_35 = arith.constant 0.000000e+00 : f32
    %63 = vector.broadcast %cst_35 : f32 to vector<512x128xf32>
    %64 = arith.maximumf %62, %63 : vector<512x128xf32>
    %65 = arith.truncf %64 : vector<512x128xf32> to vector<512x128xbf16>
    %c5_36 = arith.constant 5 : index
    %c0_37 = arith.constant 0 : index
    %c0_38 = arith.constant 0 : index
    %66 = vector.load %arg3[%c5_36, %c0_37, %c0_38] : memref<11x128x128xbf16, #tpu.memory_space<vmem>>, vector<1x128x128xbf16>
    %67 = vector.shape_cast %66 : vector<1x128x128xbf16> to vector<128x128xbf16>
    %cst_39 = arith.constant dense<0.000000e+00> : vector<512x128xf32>
    %68 = tpu.matmul %65, %67, %cst_39 {dimension_numbers = #tpu.dot_dimension_numbers<[1], [0], [0], [1], [0, 0, 1, 1], [], []>} : vector<512x128xbf16>, vector<128x128xbf16>, vector<512x128xf32> -> vector<512x128xf32>
    %c6 = arith.constant 6 : index
    %c0_40 = arith.constant 0 : index
    %69 = vector.load %arg4[%c6, %c0_40] : memref<12x128xf32, #tpu.memory_space<vmem>>, vector<1x128xf32>
    %70 = vector.shape_cast %69 : vector<1x128xf32> to vector<128xf32>
    %71 = vector.shape_cast %70 : vector<128xf32> to vector<1x128xf32>
    %72 = vector.broadcast %71 : vector<1x128xf32> to vector<512x128xf32>
    %73 = arith.addf %68, %72 : vector<512x128xf32>
    %cst_41 = arith.constant 0.000000e+00 : f32
    %74 = vector.broadcast %cst_41 : f32 to vector<512x128xf32>
    %75 = arith.maximumf %73, %74 : vector<512x128xf32>
    %76 = arith.truncf %75 : vector<512x128xf32> to vector<512x128xbf16>
    %c6_42 = arith.constant 6 : index
    %c0_43 = arith.constant 0 : index
    %c0_44 = arith.constant 0 : index
    %77 = vector.load %arg3[%c6_42, %c0_43, %c0_44] : memref<11x128x128xbf16, #tpu.memory_space<vmem>>, vector<1x128x128xbf16>
    %78 = vector.shape_cast %77 : vector<1x128x128xbf16> to vector<128x128xbf16>
    %cst_45 = arith.constant dense<0.000000e+00> : vector<512x128xf32>
    %79 = tpu.matmul %76, %78, %cst_45 {dimension_numbers = #tpu.dot_dimension_numbers<[1], [0], [0], [1], [0, 0, 1, 1], [], []>} : vector<512x128xbf16>, vector<128x128xbf16>, vector<512x128xf32> -> vector<512x128xf32>
    %c7 = arith.constant 7 : index
    %c0_46 = arith.constant 0 : index
    %80 = vector.load %arg4[%c7, %c0_46] : memref<12x128xf32, #tpu.memory_space<vmem>>, vector<1x128xf32>
    %81 = vector.shape_cast %80 : vector<1x128xf32> to vector<128xf32>
    %82 = vector.shape_cast %81 : vector<128xf32> to vector<1x128xf32>
    %83 = vector.broadcast %82 : vector<1x128xf32> to vector<512x128xf32>
    %84 = arith.addf %79, %83 : vector<512x128xf32>
    %cst_47 = arith.constant 0.000000e+00 : f32
    %85 = vector.broadcast %cst_47 : f32 to vector<512x128xf32>
    %86 = arith.maximumf %84, %85 : vector<512x128xf32>
    %87 = arith.truncf %86 : vector<512x128xf32> to vector<512x128xbf16>
    %c7_48 = arith.constant 7 : index
    %c0_49 = arith.constant 0 : index
    %c0_50 = arith.constant 0 : index
    %88 = vector.load %arg3[%c7_48, %c0_49, %c0_50] : memref<11x128x128xbf16, #tpu.memory_space<vmem>>, vector<1x128x128xbf16>
    %89 = vector.shape_cast %88 : vector<1x128x128xbf16> to vector<128x128xbf16>
    %cst_51 = arith.constant dense<0.000000e+00> : vector<512x128xf32>
    %90 = tpu.matmul %87, %89, %cst_51 {dimension_numbers = #tpu.dot_dimension_numbers<[1], [0], [0], [1], [0, 0, 1, 1], [], []>} : vector<512x128xbf16>, vector<128x128xbf16>, vector<512x128xf32> -> vector<512x128xf32>
    %c8 = arith.constant 8 : index
    %c0_52 = arith.constant 0 : index
    %91 = vector.load %arg4[%c8, %c0_52] : memref<12x128xf32, #tpu.memory_space<vmem>>, vector<1x128xf32>
    %92 = vector.shape_cast %91 : vector<1x128xf32> to vector<128xf32>
    %93 = vector.shape_cast %92 : vector<128xf32> to vector<1x128xf32>
    %94 = vector.broadcast %93 : vector<1x128xf32> to vector<512x128xf32>
    %95 = arith.addf %90, %94 : vector<512x128xf32>
    %cst_53 = arith.constant 0.000000e+00 : f32
    %96 = vector.broadcast %cst_53 : f32 to vector<512x128xf32>
    %97 = arith.maximumf %95, %96 : vector<512x128xf32>
    %98 = arith.truncf %97 : vector<512x128xf32> to vector<512x128xbf16>
    %c8_54 = arith.constant 8 : index
    %c0_55 = arith.constant 0 : index
    %c0_56 = arith.constant 0 : index
    %99 = vector.load %arg3[%c8_54, %c0_55, %c0_56] : memref<11x128x128xbf16, #tpu.memory_space<vmem>>, vector<1x128x128xbf16>
    %100 = vector.shape_cast %99 : vector<1x128x128xbf16> to vector<128x128xbf16>
    %cst_57 = arith.constant dense<0.000000e+00> : vector<512x128xf32>
    %101 = tpu.matmul %98, %100, %cst_57 {dimension_numbers = #tpu.dot_dimension_numbers<[1], [0], [0], [1], [0, 0, 1, 1], [], []>} : vector<512x128xbf16>, vector<128x128xbf16>, vector<512x128xf32> -> vector<512x128xf32>
    %c9 = arith.constant 9 : index
    %c0_58 = arith.constant 0 : index
    %102 = vector.load %arg4[%c9, %c0_58] : memref<12x128xf32, #tpu.memory_space<vmem>>, vector<1x128xf32>
    %103 = vector.shape_cast %102 : vector<1x128xf32> to vector<128xf32>
    %104 = vector.shape_cast %103 : vector<128xf32> to vector<1x128xf32>
    %105 = vector.broadcast %104 : vector<1x128xf32> to vector<512x128xf32>
    %106 = arith.addf %101, %105 : vector<512x128xf32>
    %cst_59 = arith.constant 0.000000e+00 : f32
    %107 = vector.broadcast %cst_59 : f32 to vector<512x128xf32>
    %108 = arith.maximumf %106, %107 : vector<512x128xf32>
    %109 = arith.truncf %108 : vector<512x128xf32> to vector<512x128xbf16>
    %c9_60 = arith.constant 9 : index
    %c0_61 = arith.constant 0 : index
    %c0_62 = arith.constant 0 : index
    %110 = vector.load %arg3[%c9_60, %c0_61, %c0_62] : memref<11x128x128xbf16, #tpu.memory_space<vmem>>, vector<1x128x128xbf16>
    %111 = vector.shape_cast %110 : vector<1x128x128xbf16> to vector<128x128xbf16>
    %cst_63 = arith.constant dense<0.000000e+00> : vector<512x128xf32>
    %112 = tpu.matmul %109, %111, %cst_63 {dimension_numbers = #tpu.dot_dimension_numbers<[1], [0], [0], [1], [0, 0, 1, 1], [], []>} : vector<512x128xbf16>, vector<128x128xbf16>, vector<512x128xf32> -> vector<512x128xf32>
    %c10 = arith.constant 10 : index
    %c0_64 = arith.constant 0 : index
    %113 = vector.load %arg4[%c10, %c0_64] : memref<12x128xf32, #tpu.memory_space<vmem>>, vector<1x128xf32>
    %114 = vector.shape_cast %113 : vector<1x128xf32> to vector<128xf32>
    %115 = vector.shape_cast %114 : vector<128xf32> to vector<1x128xf32>
    %116 = vector.broadcast %115 : vector<1x128xf32> to vector<512x128xf32>
    %117 = arith.addf %112, %116 : vector<512x128xf32>
    %cst_65 = arith.constant 0.000000e+00 : f32
    %118 = vector.broadcast %cst_65 : f32 to vector<512x128xf32>
    %119 = arith.maximumf %117, %118 : vector<512x128xf32>
    %120 = arith.truncf %119 : vector<512x128xf32> to vector<512x128xbf16>
    %c10_66 = arith.constant 10 : index
    %c0_67 = arith.constant 0 : index
    %c0_68 = arith.constant 0 : index
    %121 = vector.load %arg3[%c10_66, %c0_67, %c0_68] : memref<11x128x128xbf16, #tpu.memory_space<vmem>>, vector<1x128x128xbf16>
    %122 = vector.shape_cast %121 : vector<1x128x128xbf16> to vector<128x128xbf16>
    %cst_69 = arith.constant dense<0.000000e+00> : vector<512x128xf32>
    %123 = tpu.matmul %120, %122, %cst_69 {dimension_numbers = #tpu.dot_dimension_numbers<[1], [0], [0], [1], [0, 0, 1, 1], [], []>} : vector<512x128xbf16>, vector<128x128xbf16>, vector<512x128xf32> -> vector<512x128xf32>
    %c11 = arith.constant 11 : index
    %c0_70 = arith.constant 0 : index
    %124 = vector.load %arg4[%c11, %c0_70] : memref<12x128xf32, #tpu.memory_space<vmem>>, vector<1x128xf32>
    %125 = vector.shape_cast %124 : vector<1x128xf32> to vector<128xf32>
    %126 = vector.shape_cast %125 : vector<128xf32> to vector<1x128xf32>
    %127 = vector.broadcast %126 : vector<1x128xf32> to vector<512x128xf32>
    %128 = arith.addf %123, %127 : vector<512x128xf32>
    %c0_71 = arith.constant 0 : index
    %c0_72 = arith.constant 0 : index
    %129 = vector.load %arg5[%c0_71, %c0_72] : memref<512x128xf32, #tpu.memory_space<vmem>>, vector<512x128xf32>
    tpu.vector_store %arg5[%c0_71, %c0_72], %128 {strides = array<i32>} : memref<512x128xf32, #tpu.memory_space<vmem>>, vector<512x128xf32>,
    return
  }
  func.func @transform_0(%arg0: i32) -> (i32, i32) {
    %c0_i32 = arith.constant 0 : i32
    %c0_i32_0 = arith.constant 0 : i32
    return %arg0, %c0_i32 : i32, i32
  }
  func.func @transform_1(%arg0: i32) -> (i32, i32) {
    %c0_i32 = arith.constant 0 : i32
    %c0_i32_0 = arith.constant 0 : i32
    %c0_i32_1 = arith.constant 0 : i32
    return %c0_i32, %c0_i32_0 : i32, i32
  }
  func.func @transform_2(%arg0: i32) -> (i32, i32, i32) {
    %c0_i32 = arith.constant 0 : i32
    %c0_i32_0 = arith.constant 0 : i32
    %c0_i32_1 = arith.constant 0 : i32
    %c0_i32_2 = arith.constant 0 : i32
    return %c0_i32, %c0_i32_0, %c0_i32_1 : i32, i32, i32
  }
  func.func @transform_3(%arg0: i32) -> (i32, i32) {
    %c0_i32 = arith.constant 0 : i32
    %c0_i32_0 = arith.constant 0 : i32
    %c0_i32_1 = arith.constant 0 : i32
    return %c0_i32, %c0_i32_0 : i32, i32
  }
  func.func @transform_4(%arg0: i32) -> (i32, i32) {
    %c0_i32 = arith.constant 0 : i32
    %c0_i32_0 = arith.constant 0 : i32
    return %arg0, %c0_i32 : i32, i32
  }
}

</mosaic_0001>

<bundles_post_ra>
// kernel: tpu_custom_call.1
= control target key start
LH: loop header
LB: loop body
LE: loop exit
PB: predicated region body
PF: predicated region fallthrough
CT: control target
= control target key end

     0   :  { %9 = vsyncpa [#allocation3], 0  ;;  %s8691_s0 = inlined_call_operand.vmem [shape: f32[512,8], index: 0, kind: input, shape index: {}]   ;;  %s8692_s1 = inlined_call_operand.vmem [shape: f32[8,128], index: 1, kind: input, shape index: {}]   ;;  %s8693_s2 = inlined_call_operand.hbm [shape: bf16[11,128,128], index: 2, kind: input, shape index: {}]   ;;  %s8694_s3 = inlined_call_operand.vmem [shape: f32[12,128], index: 3, kind: input, shape index: {}]   ;;  %s8695_s4 = inlined_call_operand.hbm [shape: f32[512,128], index: 4, kind: output, shape index: {}]  }
   0x1   :  { %10 = vsyncpa [#allocation4], 0  ;;  %s7567_s15 = smov [#allocation2]  }
   0x2   :  { %s20_s16 = sshll.u32 %s7567_s15, 4  ;;  %s21_s16 = int_to_ptr.vmem [resolvable:$true] %s20_s16 }
   0x3   :  { %s7531_s17 = scalar_lea.vmem %s21_s16, 11264  ;;  %p7536_p1 = scmp.lt.s32.totalorder %s21_s16, %s21_s16 }
   0x4   :  { %p7532_p0 = scmp.ne.s32.totalorder %s21_s16, %s7531_s17  ;;  %p7537_p2 = scmp.lt.s32.totalorder %s7531_s17, %s7531_s17 }
   0x6   :  { %p7538_p3 = por %p7537_p2, %p7536_p1 }
   0x8   :  { %p7539_p4 = pnand %p7538_p3, %p7532_p0 }
   0xa   :  { %7542 = shalt.err (!%p7539_p4)
}
   0xb   :  { %s7568_s18 = smov 64   ;;  %s7569_s19 = smov 4  }
   0xc   :  { %26 = dma.hbm_to_vmem [thread:$0]  %s8693_s2, 11264, %s21_s16, [#allocation3], %s7568_s18, %s7568_s18, %s7569_s19  }
   0xd   :  { %7563 = dma.done.wait [#allocation3], 11264  }
   0xe   :  { %7564 = vsyncadd [#allocation3], 4294956032  ;;  %vm103_vm0 = vcmask 64512   ;;  %v97_v0 = vld [vmem:[%s8692_s1] sm:$0xff]  ;;  %v34_v2 = vld [vmem:[%s8691_s0 + $0x8] sm:$0xff] }
   0xf   :  { %v33_v1 = vld [vmem:[%s8691_s0] sm:$0xff]  ;;  %6435 = vmatprep.subr.mxu0 %v97_v0  ;;  %v35_v3 = vld [vmem:[%s8691_s0 + $0x10] sm:$0xff]  ;;  %v36_v4 = vld [vmem:[%s8691_s0 + $0x18] sm:$0xff] }
  0x10   :  { %6437 = vmatprep.mubr.msk.f32.mxu0 %vm103_vm0, %v33_v1  ;;  %6436 = vmatpush3.msra.mxu0 %v97_v0  ;;  %v37_v5 = vld [vmem:[%s8691_s0 + $0x20] sm:$0xff]  ;;  %v38_v6 = vld [vmem:[%s8691_s0 + $0x28] sm:$0xff]  ;;  %v39_v7 = vld [vmem:[%s8691_s0 + $0x30] sm:$0xff] }
  0x11   :  { %6438 = vmatmul.mubr.msk.f32.vlgmr.msra.gmra.mxu0 %vm103_vm0, %v34_v2  ;;  %v40_v8 = vld [vmem:[%s8691_s0 + $0x38] sm:$0xff]  ;;  %v41_v9 = vld [vmem:[%s8691_s0 + $0x40] sm:$0xff]  ;;  %v42_v10 = vld [vmem:[%s8691_s0 + $0x48] sm:$0xff] }
  0x12   :  { %6440 = vmatprep.mubr.msk.f32.mxu0 %vm103_vm0, %v35_v3  ;;  %v43_v11 = vld [vmem:[%s8691_s0 + $0x50] sm:$0xff]  ;;  %v44_v12 = vld [vmem:[%s8691_s0 + $0x58] sm:$0xff]  ;;  %v45_v13 = vld [vmem:[%s8691_s0 + $0x60] sm:$0xff] }
  0x13   :  { %v7435_v14 = vld [vmem:[#allocation2 + $0x38] sm:$0xff]   ;;  %v7436_v15 = vld [vmem:[#allocation2 + $0x30] sm:$0xff]   ;;  %v46_v16 = vld [vmem:[%s8691_s0 + $0x68] sm:$0xff] }
  0x14   :  { %6533 = vmatprep.subr.bf16.mxu1 %v7435_v14  ;;  %v47_v17 = vld [vmem:[%s8691_s0 + $0x70] sm:$0xff]  ;;  %v48_v18 = vld [vmem:[%s8691_s0 + $0x78] sm:$0xff]  ;;  %v7437_v19 = vld [vmem:[#allocation2 + $0x28] sm:$0xff]  }
  0x15   :  { %6441 = vmatmul.mubr.msk.f32.gmra.mxu0 %vm103_vm0, %v36_v4  ;;  %6534 = vmatpush3.bf16.msra.mxu1 %v7435_v14  ;;  %v49_v20 = vld [vmem:[%s8691_s0 + $0x80] sm:$0xff]  ;;  %v50_v22 = vld [vmem:[%s8691_s0 + $0x88] sm:$0xff]  ;;  %v51_v23 = vld [vmem:[%s8691_s0 + $0x90] sm:$0xff] }
  0x16   :  { %6443 = vmatprep.mubr.msk.f32.mxu0 %vm103_vm0, %v37_v5  ;;  %6535 = vmatprep.subr.bf16.mxu1 %v7436_v15  ;;  %v7438_v21 = vld [vmem:[#allocation2 + $0x20] sm:$0xff]   ;;  %v7439_v24 = vld [vmem:[#allocation2 + $0x18] sm:$0xff]   ;;  %v54_v27 = vld [vmem:[%s8691_s0 + $0xa8] sm:$0xff] }
  0x17   :  { %v52_v25 = vld [vmem:[%s8691_s0 + $0x98] sm:$0xff]  ;;  %v53_v26 = vld [vmem:[%s8691_s0 + $0xa0] sm:$0xff]  ;;  %v55_v28 = vld [vmem:[%s8691_s0 + $0xb0] sm:$0xff] }
  0x18   :  { %v56_v29 = vld [vmem:[%s8691_s0 + $0xb8] sm:$0xff]  ;;  %v57_v30 = vld [vmem:[%s8691_s0 + $0xc0] sm:$0xff]  ;;  %v58_v31 = vld [vmem:[%s8691_s0 + $0xc8] sm:$0xff] }
  0x19   :  { %6444 = vmatmul.mubr.msk.f32.gmra.mxu0 %vm103_vm0, %v38_v6  ;;  %6536 = vmatpush3.bf16.msra.mxu1 %v7436_v15  ;;  %v59_v32 = vld [vmem:[%s8691_s0 + $0xd0] sm:$0xff]  ;;  %v60_v33 = vld [vmem:[%s8691_s0 + $0xd8] sm:$0xff]  ;;  %v61_v34 = vld [vmem:[%s8691_s0 + $0xe0] sm:$0xff] }
  0x1a   :  { %6446 = vmatprep.mubr.msk.f32.mxu0 %vm103_vm0, %v39_v7  ;;  %6537 = vmatprep.subr.bf16.mxu1 %v7437_v19  ;;  %v62_v35 = vld [vmem:[%s8691_s0 + $0xe8] sm:$0xff]  ;;  %v63_v36 = vld [vmem:[%s8691_s0 + $0xf0] sm:$0xff]  ;;  %v64_v37 = vld [vmem:[%s8691_s0 + $0xf8] sm:$0xff] }
  0x1b   :  { %v65_v38 = vld [vmem:[%s8691_s0 + $0x100] sm:$0xff]  ;;  %v66_v39 = vld [vmem:[%s8691_s0 + $0x108] sm:$0xff]  ;;  %v67_v40 = vld [vmem:[%s8691_s0 + $0x110] sm:$0xff] }
  0x1c   :  { %v68_v41 = vld [vmem:[%s8691_s0 + $0x118] sm:$0xff]  ;;  %v7440_v42 = vld [vmem:[#allocation2 + $0x10] sm:$0xff]   ;;  %v69_v43 = vld [vmem:[%s8691_s0 + $0x120] sm:$0xff] }
  0x1d   :  { %6447 = vmatmul.mubr.msk.f32.gmra.mxu0 %vm103_vm0, %v40_v8  ;;  %6538 = vmatpush3.bf16.msra.mxu1 %v7437_v19  ;;  %v70_v44 = vld [vmem:[%s8691_s0 + $0x128] sm:$0xff]  ;;  %v71_v46 = vld [vmem:[%s8691_s0 + $0x130] sm:$0xff]  ;;  %v72_v47 = vld [vmem:[%s8691_s0 + $0x138] sm:$0xff] }
  0x1e   :  { %6449 = vmatprep.mubr.msk.f32.mxu0 %vm103_vm0, %v41_v9  ;;  %6539 = vmatprep.subr.bf16.mxu1 %v7438_v21  ;;  %v7441_v45 = vld [vmem:[#allocation2 + $0x8] sm:$0xff]   ;;  %v7442_v48 = vld [vmem:[#allocation2] sm:$0xff]   ;;  %v75_v51 = vld [vmem:[%s8691_s0 + $0x150] sm:$0xff] }
  0x1f   :  { %v73_v49 = vld [vmem:[%s8691_s0 + $0x140] sm:$0xff]  ;;  %v74_v50 = vld [vmem:[%s8691_s0 + $0x148] sm:$0xff]  ;;  %v76_v52 = vld [vmem:[%s8691_s0 + $0x158] sm:$0xff] }
  0x20   :  { %v77_v53 = vld [vmem:[%s8691_s0 + $0x160] sm:$0xff]  ;;  %v78_v54 = vld [vmem:[%s8691_s0 + $0x168] sm:$0xff]  ;;  %v79_v55 = vld [vmem:[%s8691_s0 + $0x170] sm:$0xff] }
  0x21   :  { %6450 = vmatmul.mubr.msk.f32.gmra.mxu0 %vm103_vm0, %v42_v10  ;;  %6540 = vmatpush3.bf16.msra.mxu1 %v7438_v21  ;;  %v80_v56 = vld [vmem:[%s8691_s0 + $0x178] sm:$0xff]  ;;  %v81_v57 = vld [vmem:[%s8691_s0 + $0x180] sm:$0xff]  ;;  %v82_v58 = vld [vmem:[%s8691_s0 + $0x188] sm:$0xff] }
  0x22   :  { %6452 = vmatprep.mubr.msk.f32.mxu0 %vm103_vm0, %v43_v11  ;;  %6541 = vmatprep.subr.bf16.mxu1 %v7439_v24  ;;  %v83_v59 = vld [vmem:[%s8691_s0 + $0x190] sm:$0xff]  ;;  %v84_v60 = vld [vmem:[%s8691_s0 + $0x198] sm:$0xff]  ;;  %v85_v61 = vld [vmem:[%s8691_s0 + $0x1a0] sm:$0xff] }
  0x23   :  { %v86_v62 = vld [vmem:[%s8691_s0 + $0x1a8] sm:$0xff]  ;;  %v87_v63 = vld [vmem:[%s8691_s0 + $0x1b0] sm:$0xff]  ;;  %v88_v0 = vld [vmem:[%s8691_s0 + $0x1b8] sm:$0xff] }
  0x24   :  { %v89_v1 = vld [vmem:[%s8691_s0 + $0x1c0] sm:$0xff]  ;;  %v90_v2 = vld [vmem:[%s8691_s0 + $0x1c8] sm:$0xff]  ;;  %v91_v3 = vld [vmem:[%s8691_s0 + $0x1d0] sm:$0xff] }
  0x25   :  { %6453 = vmatmul.mubr.msk.f32.gmra.mxu0 %vm103_vm0, %v44_v12  ;;  %6542 = vmatpush3.bf16.msra.mxu1 %v7439_v24  ;;  %v92_v4 = vld [vmem:[%s8691_s0 + $0x1d8] sm:$0xff]  ;;  %v93_v5 = vld [vmem:[%s8691_s0 + $0x1e0] sm:$0xff]  ;;  %v94_v6 = vld [vmem:[%s8691_s0 + $0x1e8] sm:$0xff] }
  0x26   :  { %6455 = vmatprep.mubr.msk.f32.mxu0 %vm103_vm0, %v45_v13  ;;  %6543 = vmatprep.subr.bf16.mxu1 %v7440_v42  ;;  %v95_v7 = vld [vmem:[%s8691_s0 + $0x1f0] sm:$0xff]  ;;  %v96_v8 = vld [vmem:[%s8691_s0 + $0x1f8] sm:$0xff]  ;;  %v7863_v11 = vld [vmem:[%s8694_s3] ss:$0 sm:$0xff] }
  0x27   :  { %v7443_v9 = vld [vmem:[#allocation2 + $0x78] sm:$0xff]   ;;  %v7444_v10 = vld [vmem:[#allocation2 + $0x70] sm:$0xff]   ;;  %v7445_v12 = vld [vmem:[#allocation2 + $0x68] sm:$0xff]  }
  0x28   :  { %6613 = vmatprep.subr.bf16.mxu0 %v7443_v9  ;;  %v7446_v21 = vld [vmem:[#allocation2 + $0x60] sm:$0xff]  }
  0x29   :  { %6456 = vmatmul.mubr.msk.f32.gmra.mxu0 %vm103_vm0, %v46_v16  ;;  %6544 = vmatpush3.bf16.msra.mxu1 %v7440_v42 }
  0x2a   :  { %6458 = vmatprep.mubr.msk.f32.mxu0 %vm103_vm0, %v47_v17  ;;  %6545 = vmatprep.subr.bf16.mxu1 %v7441_v45 }
  0x2b   :  { %6614 = vmatpush3.bf16.msra.mxu0 %v7443_v9 }
  0x2c   :  { %6615 = vmatprep.subr.bf16.mxu0 %v7444_v10 }
  0x2d   :  { %6459 = vmatmul.mubr.msk.f32.gmra.mxu0 %vm103_vm0, %v48_v18  ;;  %6546 = vmatpush3.bf16.msra.mxu1 %v7441_v45 }
  0x2e   :  { %6461 = vmatprep.mubr.msk.f32.mxu0 %vm103_vm0, %v49_v20  ;;  %6547 = vmatprep.subr.bf16.mxu1 %v7442_v48 }
  0x2f   :  { %6616 = vmatpush3.bf16.msra.mxu0 %v7444_v10 }
  0x30   :  { %6617 = vmatprep.subr.bf16.mxu0 %v7445_v12 }
  0x31   :  { %6462 = vmatmul.mubr.msk.f32.gmra.mxu0 %vm103_vm0, %v50_v22  ;;  %6548 = vmatpush3.bf16.msra.mxu1 %v7442_v48  ;;  %v7447_v22 = vld [vmem:[#allocation2 + $0x58] sm:$0xff]  }
  0x32   :  { %6464 = vmatprep.mubr.msk.f32.mxu0 %vm103_vm0, %v51_v23 }
  0x33   :  { %6618 = vmatpush3.bf16.msra.mxu0 %v7445_v12 }
  0x34   :  { %6619 = vmatprep.subr.bf16.mxu0 %v7446_v21 }
  0x35   :  { %6465 = vmatmul.mubr.msk.f32.gmra.mxu0 %vm103_vm0, %v52_v25 }
  0x36   :  { %6467 = vmatprep.mubr.msk.f32.mxu0 %vm103_vm0, %v53_v26 }
  0x37   :  { %6620 = vmatpush3.bf16.msra.mxu0 %v7446_v21 }
  0x38   :  { %6621 = vmatprep.subr.bf16.mxu0 %v7447_v22 }
  0x39   :  { %6468 = vmatmul.mubr.msk.f32.gmra.mxu0 %vm103_vm0, %v54_v27 }
  0x3a   :  { %6470 = vmatprep.mubr.msk.f32.mxu0 %vm103_vm0, %v55_v28 }
  0x3b   :  { %6622 = vmatpush3.bf16.msra.mxu0 %v7447_v22 }
  0x3d   :  { %6471 = vmatmul.mubr.msk.f32.gmra.mxu0 %vm103_vm0, %v56_v29 }
  0x3e   :  { %6473 = vmatprep.mubr.msk.f32.mxu0 %vm103_vm0, %v57_v30  ;;  %v7448_v30 = vld [vmem:[#allocation2 + $0x50] sm:$0xff]  }
  0x3f   :  { %6623 = vmatprep.subr.bf16.mxu0 %v7448_v30 }
  0x40   :  { %6624 = vmatpush3.bf16.msra.mxu0 %v7448_v30 }
  0x41   :  { %6474 = vmatmul.mubr.msk.f32.gmra.mxu0 %vm103_vm0, %v58_v31 }
  0x42   :  { %6476 = vmatprep.mubr.msk.f32.mxu0 %vm103_vm0, %v59_v32 }
  0x45   :  { %6477 = vmatmul.mubr.msk.f32.gmra.mxu0 %vm103_vm0, %v60_v33 }
  0x46   :  { %6479 = vmatprep.mubr.msk.f32.mxu0 %vm103_vm0, %v61_v34 }
  0x49   :  { %6480 = vmatmul.mubr.msk.f32.gmra.mxu0 %vm103_vm0, %v62_v35 }
  0x4a   :  { %6482 = vmatprep.mubr.msk.f32.mxu0 %vm103_vm0, %v63_v36 }
  0x4d   :  { %6483 = vmatmul.mubr.msk.f32.gmra.mxu0 %vm103_vm0, %v64_v37 }
  0x4e   :  { %6485 = vmatprep.mubr.msk.f32.mxu0 %vm103_vm0, %v65_v38  ;;  %v7449_v38 = vld [vmem:[#allocation2 + $0x48] sm:$0xff]  }
  0x4f   :  { %6625 = vmatprep.subr.bf16.mxu0 %v7449_v38 }
  0x50   :  { %6626 = vmatpush3.bf16.msra.mxu0 %v7449_v38 }
  0x51   :  { %6486 = vmatmul.mubr.msk.f32.gmra.mxu0 %vm103_vm0, %v66_v39 }
  0x52   :  { %6488 = vmatprep.mubr.msk.f32.mxu0 %vm103_vm0, %v67_v40 }
  0x55   :  { %6489 = vmatmul.mubr.msk.f32.gmra.mxu0 %vm103_vm0, %v68_v41 }
  0x56   :  { %6491 = vmatprep.mubr.msk.f32.mxu0 %vm103_vm0, %v69_v43 }
  0x59   :  { %6492 = vmatmul.mubr.msk.f32.gmra.mxu0 %vm103_vm0, %v70_v44 }
  0x5a   :  { %6494 = vmatprep.mubr.msk.f32.mxu0 %vm103_vm0, %v71_v46  ;;  %v7450_v46 = vld [vmem:[#allocation2 + $0x40] sm:$0xff]  }
  0x5b   :  { %6627 = vmatprep.subr.bf16.mxu0 %v7450_v46 }
  0x5c   :  { %6628 = vmatpush3.bf16.msra.mxu0 %v7450_v46 }
  0x5d   :  { %6495 = vmatmul.mubr.msk.f32.gmra.mxu0 %vm103_vm0, %v72_v47 }
  0x5e   :  { %6497 = vmatprep.mubr.msk.f32.mxu0 %vm103_vm0, %v73_v49 }
  0x61   :  { %6498 = vmatmul.mubr.msk.f32.gmra.mxu0 %vm103_vm0, %v74_v50 }
  0x62   :  { %6500 = vmatprep.mubr.msk.f32.mxu0 %vm103_vm0, %v75_v51 }
  0x65   :  { %6501 = vmatmul.mubr.msk.f32.gmra.mxu0 %vm103_vm0, %v76_v52 }
  0x66   :  { %6503 = vmatprep.mubr.msk.f32.mxu0 %vm103_vm0, %v77_v53 }
  0x69   :  { %6504 = vmatmul.mubr.msk.f32.gmra.mxu0 %vm103_vm0, %v78_v54 }
  0x6a   :  { %6506 = vmatprep.mubr.msk.f32.mxu0 %vm103_vm0, %v79_v55 }
  0x6d   :  { %6507 = vmatmul.mubr.msk.f32.gmra.mxu0 %vm103_vm0, %v80_v56 }
  0x6e   :  { %6509 = vmatprep.mubr.msk.f32.mxu0 %vm103_vm0, %v81_v57 }
  0x71   :  { %6510 = vmatmul.mubr.msk.f32.gmra.mxu0 %vm103_vm0, %v82_v58 }
  0x72   :  { %6512 = vmatprep.mubr.msk.f32.mxu0 %vm103_vm0, %v83_v59 }
  0x75   :  { %6513 = vmatmul.mubr.msk.f32.gmra.mxu0 %vm103_vm0, %v84_v60 }
  0x76   :  { %6515 = vmatprep.mubr.msk.f32.mxu0 %vm103_vm0, %v85_v61 }
  0x79   :  { %6516 = vmatmul.mubr.msk.f32.gmra.mxu0 %vm103_vm0, %v86_v62 }
  0x7a   :  { %6518 = vmatprep.mubr.msk.f32.mxu0 %vm103_vm0, %v87_v63 }
  0x7d   :  { %6519 = vmatmul.mubr.msk.f32.gmra.mxu0 %vm103_vm0, %v88_v0 }
  0x7e   :  { %6521 = vmatprep.mubr.msk.f32.mxu0 %vm103_vm0, %v89_v1 }
  0x81   :  { %6522 = vmatmul.mubr.msk.f32.gmra.mxu0 %vm103_vm0, %v90_v2 }
  0x82   :  { %6524 = vmatprep.mubr.msk.f32.mxu0 %vm103_vm0, %v91_v3 }
  0x85   :  { %6525 = vmatmul.mubr.msk.f32.gmra.mxu0 %vm103_vm0, %v92_v4 }
  0x86   :  { %6527 = vmatprep.mubr.msk.f32.mxu0 %vm103_vm0, %v93_v5 }
  0x89   :  { %6528 = vmatmul.mubr.msk.f32.gmra.mxu0 %vm103_vm0, %v94_v6 }
  0x8a   :  { %6530 = vmatprep.mubr.msk.f32.mxu0 %vm103_vm0, %v95_v7 }
  0x8d   :  { %6531 = vmatmul.mubr.msk.f32.gmra.mxu0 %vm103_vm0, %v96_v8 }
  0xd1   :  { %v6439_v13 = vpop.f32.mrf.mxu0 }
  0xd2   :  { %v368_v14 = vadd.f32 %v6439_v13, %v7863_v11 }
  0xd3   :  { %v362_v15 = vpop.f32.mrf.mxu0 }
  0xd4   :  { %v363_v16 = vadd.f32 %v7863_v11, %v362_v15  ;;  %v682_v18 = vmax.f32 %v368_v14, 0.0 }
  0xd5   :  { %v6442_v17 = vpop.f32.mrf.mxu0 }
  0xd6   :  { %v681_v19 = vmax.f32 %v363_v16, 0.0  ;;  %v378_v20 = vadd.f32 %v6442_v17, %v7863_v11 }
  0xd7   :  { %v372_v23 = vpop.f32.mrf.mxu0 }
  0xd8   :  { %v373_v24 = vadd.f32 %v7863_v11, %v372_v23  ;;  %v745_v25 = vpack.c.bf16 %v682_v18, %v681_v19  ;;  %v684_v27 = vmax.f32 %v378_v20, 0.0 }
  0xd9   :  { %v6445_v26 = vpop.f32.mrf.mxu0 }
  0xda   :  { %v683_v28 = vmax.f32 %v373_v24, 0.0  ;;  %v388_v29 = vadd.f32 %v6445_v26, %v7863_v11  ;;  %6549 = vmatprep.mubr.bf16.mxu1 %v745_v25 }
  0xdb   :  { %v382_v31 = vpop.f32.mrf.mxu0 }
  0xdc   :  { %v383_v32 = vadd.f32 %v7863_v11, %v382_v31  ;;  %v746_v33 = vpack.c.bf16 %v684_v27, %v683_v28  ;;  %v686_v35 = vmax.f32 %v388_v29, 0.0 }
  0xdd   :  { %v6448_v34 = vpop.f32.mrf.mxu0 }
  0xde   :  { %v685_v36 = vmax.f32 %v383_v32, 0.0  ;;  %v398_v37 = vadd.f32 %v6448_v34, %v7863_v11  ;;  %6550 = vmatmul.mubr.bf16.vlgmr.msra.gmra.mxu1 %v746_v33 }
  0xdf   :  { %v392_v39 = vpop.f32.mrf.mxu0 }
  0xe0   :  { %v747_v40 = vpack.c.bf16 %v686_v35, %v685_v36  ;;  %v393_v41 = vadd.f32 %v7863_v11, %v392_v39  ;;  %v688_v43 = vmax.f32 %v398_v37, 0.0 }
  0xe1   :  { %v6451_v42 = vpop.f32.mrf.mxu0 }
  0xe2   :  { %v687_v44 = vmax.f32 %v393_v41, 0.0  ;;  %v408_v45 = vadd.f32 %v6451_v42, %v7863_v11  ;;  %6553 = vmatprep.mubr.bf16.mxu1 %v747_v40 }
  0xe3   :  { %v402_v47 = vpop.f32.mrf.mxu0 }
  0xe4   :  { %v403_v48 = vadd.f32 %v7863_v11, %v402_v47  ;;  %v748_v49 = vpack.c.bf16 %v688_v43, %v687_v44  ;;  %v690_v51 = vmax.f32 %v408_v45, 0.0 }
  0xe5   :  { %v6454_v50 = vpop.f32.mrf.mxu0 }
  0xe6   :  { %v689_v52 = vmax.f32 %v403_v48, 0.0  ;;  %v418_v53 = vadd.f32 %v6454_v50, %v7863_v11  ;;  %6554 = vmatmul.mubr.bf16.gmra.mxu1 %v748_v49 }
  0xe7   :  { %v412_v54 = vpop.f32.mrf.mxu0 }
  0xe8   :  { %v749_v55 = vpack.c.bf16 %v690_v51, %v689_v52  ;;  %v413_v56 = vadd.f32 %v7863_v11, %v412_v54  ;;  %v692_v58 = vmax.f32 %v418_v53, 0.0 }
  0xe9   :  { %v6457_v57 = vpop.f32.mrf.mxu0 }
  0xea   :  { %v691_v59 = vmax.f32 %v413_v56, 0.0  ;;  %v428_v60 = vadd.f32 %v6457_v57, %v7863_v11  ;;  %6557 = vmatprep.mubr.bf16.mxu1 %v749_v55 }
  0xeb   :  { %v422_v61 = vpop.f32.mrf.mxu0 }
  0xec   :  { %v423_v62 = vadd.f32 %v7863_v11, %v422_v61  ;;  %v750_v63 = vpack.c.bf16 %v692_v58, %v691_v59  ;;  %v694_v1 = vmax.f32 %v428_v60, 0.0 }
  0xed   :  { %v6460_v0 = vpop.f32.mrf.mxu0 }
  0xee   :  { %v693_v2 = vmax.f32 %v423_v62, 0.0  ;;  %v438_v3 = vadd.f32 %v6460_v0, %v7863_v11  ;;  %6558 = vmatmul.mubr.bf16.gmra.mxu1 %v750_v63 }
  0xef   :  { %v432_v4 = vpop.f32.mrf.mxu0 }
  0xf0   :  { %v751_v5 = vpack.c.bf16 %v694_v1, %v693_v2  ;;  %v433_v6 = vadd.f32 %v7863_v11, %v432_v4  ;;  %v696_v8 = vmax.f32 %v438_v3, 0.0 }
  0xf1   :  { %v6463_v7 = vpop.f32.mrf.mxu0 }
  0xf2   :  { %v695_v9 = vmax.f32 %v433_v6, 0.0  ;;  %v448_v10 = vadd.f32 %v6463_v7, %v7863_v11  ;;  %6561 = vmatprep.mubr.bf16.mxu1 %v751_v5 }
  0xf3   :  { %v442_v12 = vpop.f32.mrf.mxu0 }
  0xf4   :  { %v443_v13 = vadd.f32 %v7863_v11, %v442_v12  ;;  %v752_v14 = vpack.c.bf16 %v696_v8, %v695_v9  ;;  %v698_v16 = vmax.f32 %v448_v10, 0.0 }
  0xf5   :  { %v6466_v15 = vpop.f32.mrf.mxu0 }
  0xf6   :  { %v697_v17 = vmax.f32 %v443_v13, 0.0  ;;  %v458_v18 = vadd.f32 %v6466_v15, %v7863_v11  ;;  %6562 = vmatmul.mubr.bf16.gmra.mxu1 %v752_v14 }
  0xf7   :  { %v452_v19 = vpop.f32.mrf.mxu0 }
  0xf8   :  { %v753_v20 = vpack.c.bf16 %v698_v16, %v697_v17  ;;  %v453_v21 = vadd.f32 %v7863_v11, %v452_v19  ;;  %v700_v23 = vmax.f32 %v458_v18, 0.0 }
  0xf9   :  { %v6469_v22 = vpop.f32.mrf.mxu0 }
  0xfa   :  { %v699_v24 = vmax.f32 %v453_v21, 0.0  ;;  %v468_v25 = vadd.f32 %v6469_v22, %v7863_v11  ;;  %6565 = vmatprep.mubr.bf16.mxu1 %v753_v20 }
  0xfb   :  { %v462_v26 = vpop.f32.mrf.mxu0 }
  0xfc   :  { %v463_v27 = vadd.f32 %v7863_v11, %v462_v26  ;;  %v754_v28 = vpack.c.bf16 %v700_v23, %v699_v24  ;;  %v702_v30 = vmax.f32 %v468_v25, 0.0 }
  0xfd   :  { %v6472_v29 = vpop.f32.mrf.mxu0 }
  0xfe   :  { %v701_v31 = vmax.f32 %v463_v27, 0.0  ;;  %v478_v32 = vadd.f32 %v6472_v29, %v7863_v11  ;;  %6566 = vmatmul.mubr.bf16.gmra.mxu1 %v754_v28 }
  0xff   :  { %v472_v33 = vpop.f32.mrf.mxu0 }
 0x100   :  { %v755_v34 = vpack.c.bf16 %v702_v30, %v701_v31  ;;  %v473_v35 = vadd.f32 %v7863_v11, %v472_v33  ;;  %v704_v37 = vmax.f32 %v478_v32, 0.0 }
 0x101   :  { %v6475_v36 = vpop.f32.mrf.mxu0 }
 0x102   :  { %v703_v38 = vmax.f32 %v473_v35, 0.0  ;;  %v488_v39 = vadd.f32 %v6475_v36, %v7863_v11  ;;  %6569 = vmatprep.mubr.bf16.mxu1 %v755_v34 }
 0x103   :  { %v482_v40 = vpop.f32.mrf.mxu0 }
 0x104   :  { %v483_v41 = vadd.f32 %v7863_v11, %v482_v40  ;;  %v756_v42 = vpack.c.bf16 %v704_v37, %v703_v38  ;;  %v706_v44 = vmax.f32 %v488_v39, 0.0 }
 0x105   :  { %v6478_v43 = vpop.f32.mrf.mxu0 }
 0x106   :  { %v705_v45 = vmax.f32 %v483_v41, 0.0  ;;  %v498_v46 = vadd.f32 %v6478_v43, %v7863_v11  ;;  %6570 = vmatmul.mubr.bf16.gmra.mxu1 %v756_v42 }
 0x107   :  { %v492_v47 = vpop.f32.mrf.mxu0 }
 0x108   :  { %v757_v48 = vpack.c.bf16 %v706_v44, %v705_v45  ;;  %v493_v49 = vadd.f32 %v7863_v11, %v492_v47  ;;  %v708_v51 = vmax.f32 %v498_v46, 0.0 }
 0x109   :  { %v6481_v50 = vpop.f32.mrf.mxu0 }
 0x10a   :  { %v707_v52 = vmax.f32 %v493_v49, 0.0  ;;  %v508_v53 = vadd.f32 %v6481_v50, %v7863_v11  ;;  %6573 = vmatprep.mubr.bf16.mxu1 %v757_v48 }
 0x10b   :  { %v502_v54 = vpop.f32.mrf.mxu0 }
 0x10c   :  { %v503_v55 = vadd.f32 %v7863_v11, %v502_v54  ;;  %v758_v56 = vpack.c.bf16 %v708_v51, %v707_v52  ;;  %v710_v58 = vmax.f32 %v508_v53, 0.0 }
 0x10d   :  { %v6484_v57 = vpop.f32.mrf.mxu0 }
 0x10e   :  { %v709_v59 = vmax.f32 %v503_v55, 0.0  ;;  %v518_v60 = vadd.f32 %v6484_v57, %v7863_v11  ;;  %6574 = vmatmul.mubr.bf16.gmra.mxu1 %v758_v56 }
 0x10f   :  { %v512_v61 = vpop.f32.mrf.mxu0 }
 0x110   :  { %v759_v62 = vpack.c.bf16 %v710_v58, %v709_v59  ;;  %v513_v63 = vadd.f32 %v7863_v11, %v512_v61  ;;  %v712_v1 = vmax.f32 %v518_v60, 0.0 }
 0x111   :  { %v6487_v0 = vpop.f32.mrf.mxu0 }
 0x112   :  { %v711_v2 = vmax.f32 %v513_v63, 0.0  ;;  %v528_v3 = vadd.f32 %v6487_v0, %v7863_v11  ;;  %6577 = vmatprep.mubr.bf16.mxu1 %v759_v62 }
 0x113   :  { %v522_v4 = vpop.f32.mrf.mxu0 }
 0x114   :  { %v523_v5 = vadd.f32 %v7863_v11, %v522_v4  ;;  %v760_v6 = vpack.c.bf16 %v712_v1, %v711_v2  ;;  %v714_v8 = vmax.f32 %v528_v3, 0.0 }
 0x115   :  { %v6490_v7 = vpop.f32.mrf.mxu0 }
 0x116   :  { %v713_v9 = vmax.f32 %v523_v5, 0.0  ;;  %v538_v10 = vadd.f32 %v6490_v7, %v7863_v11  ;;  %6578 = vmatmul.mubr.bf16.gmra.mxu1 %v760_v6 }
 0x117   :  { %v532_v12 = vpop.f32.mrf.mxu0 }
 0x118   :  { %v761_v13 = vpack.c.bf16 %v714_v8, %v713_v9  ;;  %v533_v14 = vadd.f32 %v7863_v11, %v532_v12  ;;  %v716_v16 = vmax.f32 %v538_v10, 0.0 }
 0x119   :  { %v6493_v15 = vpop.f32.mrf.mxu0 }
 0x11a   :  { %v715_v17 = vmax.f32 %v533_v14, 0.0  ;;  %v548_v18 = vadd.f32 %v6493_v15, %v7863_v11  ;;  %6581 = vmatprep.mubr.bf16.mxu1 %v761_v13 }
 0x11b   :  { %v542_v19 = vpop.f32.mrf.mxu0 }
 0x11c   :  { %v543_v20 = vadd.f32 %v7863_v11, %v542_v19  ;;  %v762_v21 = vpack.c.bf16 %v716_v16, %v715_v17  ;;  %v718_v23 = vmax.f32 %v548_v18, 0.0 }
 0x11d   :  { %v6496_v22 = vpop.f32.mrf.mxu0 }
 0x11e   :  { %v717_v24 = vmax.f32 %v543_v20, 0.0  ;;  %v558_v25 = vadd.f32 %v6496_v22, %v7863_v11  ;;  %6582 = vmatmul.mubr.bf16.gmra.mxu1 %v762_v21 }
 0x11f   :  { %v552_v26 = vpop.f32.mrf.mxu0 }
 0x120   :  { %v763_v27 = vpack.c.bf16 %v718_v23, %v717_v24  ;;  %v553_v28 = vadd.f32 %v7863_v11, %v552_v26  ;;  %v720_v30 = vmax.f32 %v558_v25, 0.0 }
 0x121   :  { %v6499_v29 = vpop.f32.mrf.mxu0 }
 0x122   :  { %v719_v31 = vmax.f32 %v553_v28, 0.0  ;;  %v568_v32 = vadd.f32 %v6499_v29, %v7863_v11  ;;  %6585 = vmatprep.mubr.bf16.mxu1 %v763_v27 }
 0x123   :  { %v562_v33 = vpop.f32.mrf.mxu0 }
 0x124   :  { %v563_v34 = vadd.f32 %v7863_v11, %v562_v33  ;;  %v764_v35 = vpack.c.bf16 %v720_v30, %v719_v31  ;;  %v722_v37 = vmax.f32 %v568_v32, 0.0 }
 0x125   :  { %v6502_v36 = vpop.f32.mrf.mxu0 }
 0x126   :  { %v721_v38 = vmax.f32 %v563_v34, 0.0  ;;  %v578_v39 = vadd.f32 %v6502_v36, %v7863_v11  ;;  %6586 = vmatmul.mubr.bf16.gmra.mxu1 %v764_v35 }
 0x127   :  { %v572_v40 = vpop.f32.mrf.mxu0 }
 0x128   :  { %v765_v41 = vpack.c.bf16 %v722_v37, %v721_v38  ;;  %v573_v42 = vadd.f32 %v7863_v11, %v572_v40  ;;  %v724_v44 = vmax.f32 %v578_v39, 0.0 }
 0x129   :  { %v6505_v43 = vpop.f32.mrf.mxu0 }
 0x12a   :  { %v723_v45 = vmax.f32 %v573_v42, 0.0  ;;  %v588_v46 = vadd.f32 %v6505_v43, %v7863_v11  ;;  %6589 = vmatprep.mubr.bf16.mxu1 %v765_v41 }
 0x12b   :  { %v582_v47 = vpop.f32.mrf.mxu0 }
 0x12c   :  { %v583_v48 = vadd.f32 %v7863_v11, %v582_v47  ;;  %v766_v49 = vpack.c.bf16 %v724_v44, %v723_v45  ;;  %v726_v51 = vmax.f32 %v588_v46, 0.0 }
 0x12d   :  { %v6508_v50 = vpop.f32.mrf.mxu0 }
 0x12e   :  { %v725_v52 = vmax.f32 %v583_v48, 0.0  ;;  %v598_v53 = vadd.f32 %v6508_v50, %v7863_v11  ;;  %6590 = vmatmul.mubr.bf16.gmra.mxu1 %v766_v49 }
 0x12f   :  { %v592_v54 = vpop.f32.mrf.mxu0 }
 0x130   :  { %v767_v55 = vpack.c.bf16 %v726_v51, %v725_v52  ;;  %v593_v56 = vadd.f32 %v7863_v11, %v592_v54  ;;  %v728_v58 = vmax.f32 %v598_v53, 0.0  ;;  %v7451_v53 = vld [vmem:[#allocation2 + $0xb8] sm:$0xff]   ;;  %v7452_v54 = vld [vmem:[#allocation2 + $0xb0] sm:$0xff]  }
 0x131   :  { %v6511_v57 = vpop.f32.mrf.mxu0  ;;  %6693 = vmatprep.subr.bf16.mxu1 %v7451_v53 }
 0x132   :  { %v727_v59 = vmax.f32 %v593_v56, 0.0  ;;  %v608_v60 = vadd.f32 %v6511_v57, %v7863_v11  ;;  %6593 = vmatprep.mubr.bf16.mxu1 %v767_v55  ;;  %6694 = vmatpush3.bf16.msra.mxu1 %v7451_v53  ;;  %v7453_v55 = vld [vmem:[#allocation2 + $0xa8] sm:$0xff]  }
 0x133   :  { %v602_v61 = vpop.f32.mrf.mxu0  ;;  %6695 = vmatprep.subr.bf16.mxu1 %v7452_v54 }
 0x134   :  { %v603_v62 = vadd.f32 %v7863_v11, %v602_v61  ;;  %v768_v63 = vpack.c.bf16 %v728_v58, %v727_v59  ;;  %v730_v1 = vmax.f32 %v608_v60, 0.0 }
 0x135   :  { %v6514_v0 = vpop.f32.mrf.mxu0 }
 0x136   :  { %v729_v2 = vmax.f32 %v603_v62, 0.0  ;;  %v618_v3 = vadd.f32 %v6514_v0, %v7863_v11  ;;  %6594 = vmatmul.mubr.bf16.gmra.mxu1 %v768_v63  ;;  %v7454_v63 = vld [vmem:[#allocation2 + $0xa0] sm:$0xff]   ;;  %v7455_v0 = vld [vmem:[#allocation2 + $0x98] sm:$0xff]  }
 0x137   :  { %v612_v4 = vpop.f32.mrf.mxu0  ;;  %6696 = vmatpush3.bf16.msra.mxu1 %v7452_v54 }
 0x138   :  { %v769_v5 = vpack.c.bf16 %v730_v1, %v729_v2  ;;  %v613_v6 = vadd.f32 %v7863_v11, %v612_v4  ;;  %v732_v8 = vmax.f32 %v618_v3, 0.0  ;;  %6697 = vmatprep.subr.bf16.mxu1 %v7453_v55 }
 0x139   :  { %v6517_v7 = vpop.f32.mrf.mxu0 }
 0x13a   :  { %v731_v9 = vmax.f32 %v613_v6, 0.0  ;;  %v628_v10 = vadd.f32 %v6517_v7, %v7863_v11  ;;  %6597 = vmatprep.mubr.bf16.mxu1 %v769_v5 }
 0x13b   :  { %v622_v12 = vpop.f32.mrf.mxu0  ;;  %6698 = vmatpush3.bf16.msra.mxu1 %v7453_v55 }
 0x13c   :  { %v623_v13 = vadd.f32 %v7863_v11, %v622_v12  ;;  %v770_v14 = vpack.c.bf16 %v732_v8, %v731_v9  ;;  %v734_v16 = vmax.f32 %v628_v10, 0.0  ;;  %6699 = vmatprep.subr.bf16.mxu1 %v7454_v63  ;;  %v7456_v8 = vld [vmem:[#allocation2 + $0x90] sm:$0xff]  }
 0x13d   :  { %v6520_v15 = vpop.f32.mrf.mxu0 }
 0x13e   :  { %v733_v17 = vmax.f32 %v623_v13, 0.0  ;;  %v638_v18 = vadd.f32 %v6520_v15, %v7863_v11  ;;  %6598 = vmatmul.mubr.bf16.gmra.mxu1 %v770_v14 }
 0x13f   :  { %v632_v19 = vpop.f32.mrf.mxu0  ;;  %6700 = vmatpush3.bf16.msra.mxu1 %v7454_v63 }
 0x140   :  { %v771_v20 = vpack.c.bf16 %v734_v16, %v733_v17  ;;  %v633_v21 = vadd.f32 %v7863_v11, %v632_v19  ;;  %v736_v23 = vmax.f32 %v638_v18, 0.0  ;;  %6701 = vmatprep.subr.bf16.mxu1 %v7455_v0  ;;  %v7457_v17 = vld [vmem:[#allocation2 + $0x88] sm:$0xff]  }
 0x141   :  { %v6523_v22 = vpop.f32.mrf.mxu0 }
 0x142   :  { %v735_v24 = vmax.f32 %v633_v21, 0.0  ;;  %v648_v25 = vadd.f32 %v6523_v22, %v7863_v11  ;;  %6601 = vmatprep.mubr.bf16.mxu1 %v771_v20 }
 0x143   :  { %v642_v26 = vpop.f32.mrf.mxu0  ;;  %6702 = vmatpush3.bf16.msra.mxu1 %v7455_v0 }
 0x144   :  { %v643_v27 = vadd.f32 %v7863_v11, %v642_v26  ;;  %v772_v28 = vpack.c.bf16 %v736_v23, %v735_v24  ;;  %v738_v30 = vmax.f32 %v648_v25, 0.0  ;;  %6703 = vmatprep.subr.bf16.mxu1 %v7456_v8  ;;  %v7458_v25 = vld [vmem:[#allocation2 + $0x80] sm:$0xff]  }
 0x145   :  { %v6526_v29 = vpop.f32.mrf.mxu0 }
 0x146   :  { %v737_v31 = vmax.f32 %v643_v27, 0.0  ;;  %v658_v32 = vadd.f32 %v6526_v29, %v7863_v11  ;;  %6602 = vmatmul.mubr.bf16.gmra.mxu1 %v772_v28 }
 0x147   :  { %v652_v33 = vpop.f32.mrf.mxu0  ;;  %6704 = vmatpush3.bf16.msra.mxu1 %v7456_v8 }
 0x148   :  { %v773_v34 = vpack.c.bf16 %v738_v30, %v737_v31  ;;  %v653_v35 = vadd.f32 %v7863_v11, %v652_v33  ;;  %v740_v37 = vmax.f32 %v658_v32, 0.0  ;;  %6705 = vmatprep.subr.bf16.mxu1 %v7457_v17 }
 0x149   :  { %v6529_v36 = vpop.f32.mrf.mxu0 }
 0x14a   :  { %v739_v38 = vmax.f32 %v653_v35, 0.0  ;;  %v668_v39 = vadd.f32 %v6529_v36, %v7863_v11  ;;  %6605 = vmatprep.mubr.bf16.mxu1 %v773_v34 }
 0x14b   :  { %v662_v40 = vpop.f32.mrf.mxu0  ;;  %6706 = vmatpush3.bf16.msra.mxu1 %v7457_v17 }
 0x14c   :  { %v663_v41 = vadd.f32 %v7863_v11, %v662_v40  ;;  %v774_v42 = vpack.c.bf16 %v740_v37, %v739_v38  ;;  %v742_v44 = vmax.f32 %v668_v39, 0.0  ;;  %6707 = vmatprep.subr.bf16.mxu1 %v7458_v25 }
 0x14d   :  { %v6532_v43 = vpop.f32.mrf.mxu0 }
 0x14e   :  { %v741_v45 = vmax.f32 %v663_v41, 0.0  ;;  %v678_v46 = vadd.f32 %v6532_v43, %v7863_v11  ;;  %6606 = vmatmul.mubr.bf16.gmra.mxu1 %v774_v42 }
 0x14f   :  { %v672_v47 = vpop.f32.mrf.mxu0  ;;  %6708 = vmatpush3.bf16.msra.mxu1 %v7458_v25 }
 0x150   :  { %v775_v48 = vpack.c.bf16 %v742_v44, %v741_v45  ;;  %v673_v49 = vadd.f32 %v7863_v11, %v672_v47  ;;  %v744_v50 = vmax.f32 %v678_v46, 0.0  ;;  %v7932_v11 = vld [vmem:[%s8694_s3 + $0x1] ss:$0 sm:$0xff] }
 0x152   :  { %v743_v51 = vmax.f32 %v673_v49, 0.0  ;;  %6609 = vmatprep.mubr.bf16.mxu1 %v775_v48 }
 0x154   :  { %v776_v52 = vpack.c.bf16 %v744_v50, %v743_v51 }
 0x156   :  { %6610 = vmatmul.mubr.bf16.gmra.mxu1 %v776_v52 }
 0x19e   :  { %v6551_v56 = vpop.f32.mrf.mxu1 }
 0x19f   :  { %v889_v61 = vadd.f32 %v6551_v56, %v7932_v11 }
 0x1a0   :  { %v880_v57 = vpop.f32.mrf.mxu1 }
 0x1a1   :  { %v881_v59 = vadd.f32 %v7932_v11, %v880_v57  ;;  %v1137_v6 = vmax.f32 %v889_v61, 0.0 }
 0x1a2   :  { %v6552_v58 = vpop.f32.mrf.mxu1 }
 0x1a3   :  { %v892_v60 = vadd.f32 %v6552_v58, %v7932_v11  ;;  %v1135_v4 = vmax.f32 %v881_v59, 0.0 }
 0x1a4   :  { %v883_v62 = vpop.f32.mrf.mxu1 }
 0x1a5   :  { %v884_v1 = vadd.f32 %v7932_v11, %v883_v62  ;;  %v1138_v2 = vmax.f32 %v892_v60, 0.0 }
 0x1a6   :  { %v6555_v3 = vpop.f32.mrf.mxu1 }
 0x1a7   :  { %v1136_v5 = vmax.f32 %v884_v1, 0.0  ;;  %v1200_v10 = vpack.c.bf16 %v1138_v2, %v1137_v6  ;;  %v905_v15 = vadd.f32 %v6555_v3, %v7932_v11 }
 0x1a8   :  { %v896_v7 = vpop.f32.mrf.mxu1 }
 0x1a9   :  { %v1199_v9 = vpack.c.bf16 %v1136_v5, %v1135_v4  ;;  %v897_v13 = vadd.f32 %v7932_v11, %v896_v7  ;;  %v1141_v23 = vmax.f32 %v905_v15, 0.0 }
 0x1aa   :  { %v6556_v12 = vpop.f32.mrf.mxu1 }
 0x1ab   :  { %v908_v14 = vadd.f32 %v6556_v12, %v7932_v11  ;;  %6629 = vmatprep.mubr.bf16.mxu0 %v1199_v9  ;;  %v1139_v21 = vmax.f32 %v897_v13, 0.0 }
 0x1ac   :  { %v899_v16 = vpop.f32.mrf.mxu1  ;;  %6630 = vmatmul.mubr.bf16.vlgmr.msra.gmra.mxu0 %v1200_v10 }
 0x1ad   :  { %v900_v18 = vadd.f32 %v7932_v11, %v899_v16  ;;  %v1142_v19 = vmax.f32 %v908_v14, 0.0 }
 0x1ae   :  { %v6559_v20 = vpop.f32.mrf.mxu1 }
 0x1af   :  { %v1140_v22 = vmax.f32 %v900_v18, 0.0  ;;  %v1202_v27 = vpack.c.bf16 %v1142_v19, %v1141_v23  ;;  %v921_v31 = vadd.f32 %v6559_v20, %v7932_v11 }
 0x1b0   :  { %v912_v24 = vpop.f32.mrf.mxu1 }
 0x1b1   :  { %v1201_v26 = vpack.c.bf16 %v1140_v22, %v1139_v21  ;;  %v913_v29 = vadd.f32 %v7932_v11, %v912_v24  ;;  %v1145_v38 = vmax.f32 %v921_v31, 0.0 }
 0x1b2   :  { %v6560_v28 = vpop.f32.mrf.mxu1 }
 0x1b3   :  { %v924_v30 = vadd.f32 %v6560_v28, %v7932_v11  ;;  %6633 = vmatprep.mubr.bf16.mxu0 %v1201_v26  ;;  %v1143_v36 = vmax.f32 %v913_v29, 0.0 }
 0x1b4   :  { %v915_v32 = vpop.f32.mrf.mxu1  ;;  %6634 = vmatmul.mubr.bf16.gmra.mxu0 %v1202_v27 }
 0x1b5   :  { %v916_v33 = vadd.f32 %v7932_v11, %v915_v32  ;;  %v1146_v34 = vmax.f32 %v924_v30, 0.0 }
 0x1b6   :  { %v6563_v35 = vpop.f32.mrf.mxu1 }
 0x1b7   :  { %v1144_v37 = vmax.f32 %v916_v33, 0.0  ;;  %v1204_v41 = vpack.c.bf16 %v1146_v34, %v1145_v38  ;;  %v937_v45 = vadd.f32 %v6563_v35, %v7932_v11 }
 0x1b8   :  { %v928_v39 = vpop.f32.mrf.mxu1 }
 0x1b9   :  { %v1203_v40 = vpack.c.bf16 %v1144_v37, %v1143_v36  ;;  %v929_v43 = vadd.f32 %v7932_v11, %v928_v39  ;;  %v1149_v52 = vmax.f32 %v937_v45, 0.0 }
 0x1ba   :  { %v6564_v42 = vpop.f32.mrf.mxu1 }
 0x1bb   :  { %v940_v44 = vadd.f32 %v6564_v42, %v7932_v11  ;;  %6637 = vmatprep.mubr.bf16.mxu0 %v1203_v40  ;;  %v1147_v50 = vmax.f32 %v929_v43, 0.0 }
 0x1bc   :  { %v931_v46 = vpop.f32.mrf.mxu1  ;;  %6638 = vmatmul.mubr.bf16.gmra.mxu0 %v1204_v41 }
 0x1bd   :  { %v932_v47 = vadd.f32 %v7932_v11, %v931_v46  ;;  %v1150_v48 = vmax.f32 %v940_v44, 0.0 }
 0x1be   :  { %v6567_v49 = vpop.f32.mrf.mxu1 }
 0x1bf   :  { %v1148_v51 = vmax.f32 %v932_v47, 0.0  ;;  %v1206_v55 = vpack.c.bf16 %v1150_v48, %v1149_v52  ;;  %v953_v59 = vadd.f32 %v6567_v49, %v7932_v11 }
 0x1c0   :  { %v944_v53 = vpop.f32.mrf.mxu1 }
 0x1c1   :  { %v1205_v54 = vpack.c.bf16 %v1148_v51, %v1147_v50  ;;  %v945_v57 = vadd.f32 %v7932_v11, %v944_v53  ;;  %v1153_v2 = vmax.f32 %v953_v59, 0.0 }
 0x1c2   :  { %v6568_v56 = vpop.f32.mrf.mxu1 }
 0x1c3   :  { %v956_v58 = vadd.f32 %v6568_v56, %v7932_v11  ;;  %6641 = vmatprep.mubr.bf16.mxu0 %v1205_v54  ;;  %v1151_v0 = vmax.f32 %v945_v57, 0.0 }
 0x1c4   :  { %v947_v60 = vpop.f32.mrf.mxu1  ;;  %6642 = vmatmul.mubr.bf16.gmra.mxu0 %v1206_v55 }
 0x1c5   :  { %v948_v61 = vadd.f32 %v7932_v11, %v947_v60  ;;  %v1154_v62 = vmax.f32 %v956_v58, 0.0 }
 0x1c6   :  { %v6571_v63 = vpop.f32.mrf.mxu1 }
 0x1c7   :  { %v1152_v1 = vmax.f32 %v948_v61, 0.0  ;;  %v1208_v5 = vpack.c.bf16 %v1154_v62, %v1153_v2  ;;  %v969_v9 = vadd.f32 %v6571_v63, %v7932_v11 }
 0x1c8   :  { %v960_v3 = vpop.f32.mrf.mxu1 }
 0x1c9   :  { %v1207_v4 = vpack.c.bf16 %v1152_v1, %v1151_v0  ;;  %v961_v7 = vadd.f32 %v7932_v11, %v960_v3  ;;  %v1157_v17 = vmax.f32 %v969_v9, 0.0 }
 0x1ca   :  { %v6572_v6 = vpop.f32.mrf.mxu1 }
 0x1cb   :  { %v972_v8 = vadd.f32 %v6572_v6, %v7932_v11  ;;  %6645 = vmatprep.mubr.bf16.mxu0 %v1207_v4  ;;  %v1155_v15 = vmax.f32 %v961_v7, 0.0 }
 0x1cc   :  { %v963_v10 = vpop.f32.mrf.mxu1  ;;  %6646 = vmatmul.mubr.bf16.gmra.mxu0 %v1208_v5 }
 0x1cd   :  { %v964_v12 = vadd.f32 %v7932_v11, %v963_v10  ;;  %v1158_v13 = vmax.f32 %v972_v8, 0.0 }
 0x1ce   :  { %v6575_v14 = vpop.f32.mrf.mxu1 }
 0x1cf   :  { %v1156_v16 = vmax.f32 %v964_v12, 0.0  ;;  %v1210_v20 = vpack.c.bf16 %v1158_v13, %v1157_v17  ;;  %v985_v24 = vadd.f32 %v6575_v14, %v7932_v11 }
 0x1d0   :  { %v976_v18 = vpop.f32.mrf.mxu1 }
 0x1d1   :  { %v1209_v19 = vpack.c.bf16 %v1156_v16, %v1155_v15  ;;  %v977_v22 = vadd.f32 %v7932_v11, %v976_v18  ;;  %v1161_v31 = vmax.f32 %v985_v24, 0.0 }
 0x1d2   :  { %v6576_v21 = vpop.f32.mrf.mxu1 }
 0x1d3   :  { %v988_v23 = vadd.f32 %v6576_v21, %v7932_v11  ;;  %6649 = vmatprep.mubr.bf16.mxu0 %v1209_v19  ;;  %v1159_v29 = vmax.f32 %v977_v22, 0.0 }
 0x1d4   :  { %v979_v25 = vpop.f32.mrf.mxu1  ;;  %6650 = vmatmul.mubr.bf16.gmra.mxu0 %v1210_v20 }
 0x1d5   :  { %v980_v26 = vadd.f32 %v7932_v11, %v979_v25  ;;  %v1162_v27 = vmax.f32 %v988_v23, 0.0 }
 0x1d6   :  { %v6579_v28 = vpop.f32.mrf.mxu1 }
 0x1d7   :  { %v1160_v30 = vmax.f32 %v980_v26, 0.0  ;;  %v1212_v34 = vpack.c.bf16 %v1162_v27, %v1161_v31  ;;  %v1001_v38 = vadd.f32 %v6579_v28, %v7932_v11 }
 0x1d8   :  { %v992_v32 = vpop.f32.mrf.mxu1 }
 0x1d9   :  { %v1211_v33 = vpack.c.bf16 %v1160_v30, %v1159_v29  ;;  %v993_v36 = vadd.f32 %v7932_v11, %v992_v32  ;;  %v1165_v45 = vmax.f32 %v1001_v38, 0.0 }
 0x1da   :  { %v6580_v35 = vpop.f32.mrf.mxu1 }
 0x1db   :  { %v1004_v37 = vadd.f32 %v6580_v35, %v7932_v11  ;;  %6653 = vmatprep.mubr.bf16.mxu0 %v1211_v33  ;;  %v1163_v43 = vmax.f32 %v993_v36, 0.0 }
 0x1dc   :  { %v995_v39 = vpop.f32.mrf.mxu1  ;;  %6654 = vmatmul.mubr.bf16.gmra.mxu0 %v1212_v34 }
 0x1dd   :  { %v996_v40 = vadd.f32 %v7932_v11, %v995_v39  ;;  %v1166_v41 = vmax.f32 %v1004_v37, 0.0 }
 0x1de   :  { %v6583_v42 = vpop.f32.mrf.mxu1 }
 0x1df   :  { %v1164_v44 = vmax.f32 %v996_v40, 0.0  ;;  %v1214_v48 = vpack.c.bf16 %v1166_v41, %v1165_v45  ;;  %v1017_v52 = vadd.f32 %v6583_v42, %v7932_v11 }
 0x1e0   :  { %v1008_v46 = vpop.f32.mrf.mxu1 }
 0x1e1   :  { %v1213_v47 = vpack.c.bf16 %v1164_v44, %v1163_v43  ;;  %v1009_v50 = vadd.f32 %v7932_v11, %v1008_v46  ;;  %v1169_v59 = vmax.f32 %v1017_v52, 0.0 }
 0x1e2   :  { %v6584_v49 = vpop.f32.mrf.mxu1 }
 0x1e3   :  { %v1020_v51 = vadd.f32 %v6584_v49, %v7932_v11  ;;  %6657 = vmatprep.mubr.bf16.mxu0 %v1213_v47  ;;  %v1167_v57 = vmax.f32 %v1009_v50, 0.0 }
 0x1e4   :  { %v1011_v53 = vpop.f32.mrf.mxu1  ;;  %6658 = vmatmul.mubr.bf16.gmra.mxu0 %v1214_v48 }
 0x1e5   :  { %v1012_v54 = vadd.f32 %v7932_v11, %v1011_v53  ;;  %v1170_v55 = vmax.f32 %v1020_v51, 0.0 }
 0x1e6   :  { %v6587_v56 = vpop.f32.mrf.mxu1 }
 0x1e7   :  { %v1168_v58 = vmax.f32 %v1012_v54, 0.0  ;;  %v1216_v62 = vpack.c.bf16 %v1170_v55, %v1169_v59  ;;  %v1033_v2 = vadd.f32 %v6587_v56, %v7932_v11 }
 0x1e8   :  { %v1024_v60 = vpop.f32.mrf.mxu1 }
 0x1e9   :  { %v1215_v61 = vpack.c.bf16 %v1168_v58, %v1167_v57  ;;  %v1025_v0 = vadd.f32 %v7932_v11, %v1024_v60  ;;  %v1173_v9 = vmax.f32 %v1033_v2, 0.0 }
 0x1ea   :  { %v6588_v63 = vpop.f32.mrf.mxu1 }
 0x1eb   :  { %v1036_v1 = vadd.f32 %v6588_v63, %v7932_v11  ;;  %6661 = vmatprep.mubr.bf16.mxu0 %v1215_v61  ;;  %v1171_v7 = vmax.f32 %v1025_v0, 0.0 }
 0x1ec   :  { %v1027_v3 = vpop.f32.mrf.mxu1  ;;  %6662 = vmatmul.mubr.bf16.gmra.mxu0 %v1216_v62 }
 0x1ed   :  { %v1028_v4 = vadd.f32 %v7932_v11, %v1027_v3  ;;  %v1174_v5 = vmax.f32 %v1036_v1, 0.0 }
 0x1ee   :  { %v6591_v6 = vpop.f32.mrf.mxu1 }
 0x1ef   :  { %v1172_v8 = vmax.f32 %v1028_v4, 0.0  ;;  %v1218_v13 = vpack.c.bf16 %v1174_v5, %v1173_v9  ;;  %v1049_v17 = vadd.f32 %v6591_v6, %v7932_v11 }
 0x1f0   :  { %v1040_v10 = vpop.f32.mrf.mxu1 }
 0x1f1   :  { %v1217_v12 = vpack.c.bf16 %v1172_v8, %v1171_v7  ;;  %v1041_v15 = vadd.f32 %v7932_v11, %v1040_v10  ;;  %v1177_v24 = vmax.f32 %v1049_v17, 0.0 }
 0x1f2   :  { %v6592_v14 = vpop.f32.mrf.mxu1 }
 0x1f3   :  { %v1052_v16 = vadd.f32 %v6592_v14, %v7932_v11  ;;  %6665 = vmatprep.mubr.bf16.mxu0 %v1217_v12  ;;  %v1175_v22 = vmax.f32 %v1041_v15, 0.0 }
 0x1f4   :  { %v1043_v18 = vpop.f32.mrf.mxu1  ;;  %6666 = vmatmul.mubr.bf16.gmra.mxu0 %v1218_v13 }
 0x1f5   :  { %v1044_v19 = vadd.f32 %v7932_v11, %v1043_v18  ;;  %v1178_v20 = vmax.f32 %v1052_v16, 0.0 }
 0x1f6   :  { %v6595_v21 = vpop.f32.mrf.mxu1 }
 0x1f7   :  { %v1176_v23 = vmax.f32 %v1044_v19, 0.0  ;;  %v1220_v27 = vpack.c.bf16 %v1178_v20, %v1177_v24  ;;  %v1065_v31 = vadd.f32 %v6595_v21, %v7932_v11 }
 0x1f8   :  { %v1056_v25 = vpop.f32.mrf.mxu1 }
 0x1f9   :  { %v1219_v26 = vpack.c.bf16 %v1176_v23, %v1175_v22  ;;  %v1057_v29 = vadd.f32 %v7932_v11, %v1056_v25  ;;  %v1181_v38 = vmax.f32 %v1065_v31, 0.0 }
 0x1fa   :  { %v6596_v28 = vpop.f32.mrf.mxu1 }
 0x1fb   :  { %v1068_v30 = vadd.f32 %v6596_v28, %v7932_v11  ;;  %6669 = vmatprep.mubr.bf16.mxu0 %v1219_v26  ;;  %v1179_v36 = vmax.f32 %v1057_v29, 0.0 }
 0x1fc   :  { %v1059_v32 = vpop.f32.mrf.mxu1  ;;  %6670 = vmatmul.mubr.bf16.gmra.mxu0 %v1220_v27 }
 0x1fd   :  { %v1060_v33 = vadd.f32 %v7932_v11, %v1059_v32  ;;  %v1182_v34 = vmax.f32 %v1068_v30, 0.0 }
 0x1fe   :  { %v6599_v35 = vpop.f32.mrf.mxu1 }
 0x1ff   :  { %v1180_v37 = vmax.f32 %v1060_v33, 0.0  ;;  %v1222_v41 = vpack.c.bf16 %v1182_v34, %v1181_v38  ;;  %v1081_v45 = vadd.f32 %v6599_v35, %v7932_v11  ;;  %v7459_v33 = vld [vmem:[#allocation2 + $0xf8] sm:$0xff]   ;;  %v7460_v34 = vld [vmem:[#allocation2 + $0xf0] sm:$0xff]   ;;  %v7461_v35 = vld [vmem:[#allocation2 + $0xe8] sm:$0xff]  }
 0x200   :  { %v1072_v39 = vpop.f32.mrf.mxu1  ;;  %6773 = vmatprep.subr.bf16.mxu0 %v7459_v33 }
 0x201   :  { %v1221_v40 = vpack.c.bf16 %v1180_v37, %v1179_v36  ;;  %v1073_v43 = vadd.f32 %v7932_v11, %v1072_v39  ;;  %v1185_v52 = vmax.f32 %v1081_v45, 0.0  ;;  %6774 = vmatpush3.bf16.msra.mxu0 %v7459_v33 }
 0x202   :  { %v6600_v42 = vpop.f32.mrf.mxu1  ;;  %6775 = vmatprep.subr.bf16.mxu0 %v7460_v34 }
 0x203   :  { %v1084_v44 = vadd.f32 %v6600_v42, %v7932_v11  ;;  %6673 = vmatprep.mubr.bf16.mxu0 %v1221_v40  ;;  %v1183_v50 = vmax.f32 %v1073_v43, 0.0  ;;  %v7462_v43 = vld [vmem:[#allocation2 + $0xe0] sm:$0xff]  }
 0x204   :  { %v1075_v46 = vpop.f32.mrf.mxu1  ;;  %6674 = vmatmul.mubr.bf16.gmra.mxu0 %v1222_v41 }
 0x205   :  { %v1076_v47 = vadd.f32 %v7932_v11, %v1075_v46  ;;  %v1186_v48 = vmax.f32 %v1084_v44, 0.0  ;;  %6776 = vmatpush3.bf16.msra.mxu0 %v7460_v34  ;;  %v7463_v44 = vld [vmem:[#allocation2 + $0xd8] sm:$0xff]  }
 0x206   :  { %v6603_v49 = vpop.f32.mrf.mxu1  ;;  %6777 = vmatprep.subr.bf16.mxu0 %v7461_v35 }
 0x207   :  { %v1184_v51 = vmax.f32 %v1076_v47, 0.0  ;;  %v1224_v55 = vpack.c.bf16 %v1186_v48, %v1185_v52  ;;  %v1097_v59 = vadd.f32 %v6603_v49, %v7932_v11  ;;  %v7464_v52 = vld [vmem:[#allocation2 + $0xd0] sm:$0xff]  }
 0x208   :  { %v1088_v53 = vpop.f32.mrf.mxu1 }
 0x209   :  { %v1223_v54 = vpack.c.bf16 %v1184_v51, %v1183_v50  ;;  %v1089_v57 = vadd.f32 %v7932_v11, %v1088_v53  ;;  %v1189_v2 = vmax.f32 %v1097_v59, 0.0  ;;  %6778 = vmatpush3.bf16.msra.mxu0 %v7461_v35 }
 0x20a   :  { %v6604_v56 = vpop.f32.mrf.mxu1  ;;  %6779 = vmatprep.subr.bf16.mxu0 %v7462_v43 }
 0x20b   :  { %v1100_v58 = vadd.f32 %v6604_v56, %v7932_v11  ;;  %6677 = vmatprep.mubr.bf16.mxu0 %v1223_v54  ;;  %v1187_v0 = vmax.f32 %v1089_v57, 0.0 }
 0x20c   :  { %v1091_v60 = vpop.f32.mrf.mxu1  ;;  %6678 = vmatmul.mubr.bf16.gmra.mxu0 %v1224_v55 }
 0x20d   :  { %v1092_v61 = vadd.f32 %v7932_v11, %v1091_v60  ;;  %v1190_v62 = vmax.f32 %v1100_v58, 0.0  ;;  %6780 = vmatpush3.bf16.msra.mxu0 %v7462_v43  ;;  %v7465_v60 = vld [vmem:[#allocation2 + $0xc8] sm:$0xff]  }
 0x20e   :  { %v6607_v63 = vpop.f32.mrf.mxu1  ;;  %6781 = vmatprep.subr.bf16.mxu0 %v7463_v44 }
 0x20f   :  { %v1188_v1 = vmax.f32 %v1092_v61, 0.0  ;;  %v1226_v5 = vpack.c.bf16 %v1190_v62, %v1189_v2  ;;  %v1113_v9 = vadd.f32 %v6607_v63, %v7932_v11 }
 0x210   :  { %v1104_v3 = vpop.f32.mrf.mxu1 }
 0x211   :  { %v1225_v4 = vpack.c.bf16 %v1188_v1, %v1187_v0  ;;  %v1105_v7 = vadd.f32 %v7932_v11, %v1104_v3  ;;  %v1193_v17 = vmax.f32 %v1113_v9, 0.0  ;;  %6782 = vmatpush3.bf16.msra.mxu0 %v7463_v44 }
 0x212   :  { %v6608_v6 = vpop.f32.mrf.mxu1  ;;  %6783 = vmatprep.subr.bf16.mxu0 %v7464_v52 }
 0x213   :  { %v1116_v8 = vadd.f32 %v6608_v6, %v7932_v11  ;;  %6681 = vmatprep.mubr.bf16.mxu0 %v1225_v4  ;;  %v1191_v15 = vmax.f32 %v1105_v7, 0.0  ;;  %v7466_v4 = vld [vmem:[#allocation2 + $0xc0] sm:$0xff]  }
 0x214   :  { %v1107_v10 = vpop.f32.mrf.mxu1  ;;  %6682 = vmatmul.mubr.bf16.gmra.mxu0 %v1226_v5 }
 0x215   :  { %v1108_v12 = vadd.f32 %v7932_v11, %v1107_v10  ;;  %v1194_v13 = vmax.f32 %v1116_v8, 0.0  ;;  %6784 = vmatpush3.bf16.msra.mxu0 %v7464_v52 }
 0x216   :  { %v6611_v14 = vpop.f32.mrf.mxu1  ;;  %6785 = vmatprep.subr.bf16.mxu0 %v7465_v60 }
 0x217   :  { %v1192_v16 = vmax.f32 %v1108_v12, 0.0  ;;  %v1228_v20 = vpack.c.bf16 %v1194_v13, %v1193_v17  ;;  %v1129_v24 = vadd.f32 %v6611_v14, %v7932_v11 }
 0x218   :  { %v1120_v18 = vpop.f32.mrf.mxu1 }
 0x219   :  { %v1227_v19 = vpack.c.bf16 %v1192_v16, %v1191_v15  ;;  %v1121_v22 = vadd.f32 %v7932_v11, %v1120_v18  ;;  %v1197_v30 = vmax.f32 %v1129_v24, 0.0  ;;  %6786 = vmatpush3.bf16.msra.mxu0 %v7465_v60 }
 0x21a   :  { %v6612_v21 = vpop.f32.mrf.mxu1  ;;  %6787 = vmatprep.subr.bf16.mxu0 %v7466_v4 }
 0x21b   :  { %v1132_v23 = vadd.f32 %v6612_v21, %v7932_v11  ;;  %6685 = vmatprep.mubr.bf16.mxu0 %v1227_v19  ;;  %v1195_v28 = vmax.f32 %v1121_v22, 0.0 }
 0x21c   :  { %v1123_v25 = vpop.f32.mrf.mxu1  ;;  %6686 = vmatmul.mubr.bf16.gmra.mxu0 %v1228_v20 }
 0x21d   :  { %v1124_v26 = vadd.f32 %v7932_v11, %v1123_v25  ;;  %v1198_v27 = vmax.f32 %v1132_v23, 0.0  ;;  %v8001_v11 = vld [vmem:[%s8694_s3 + $0x2] ss:$0 sm:$0xff]  ;;  %6788 = vmatpush3.bf16.msra.mxu0 %v7466_v4 }
 0x21f   :  { %v1196_v29 = vmax.f32 %v1124_v26, 0.0  ;;  %v1230_v32 = vpack.c.bf16 %v1198_v27, %v1197_v30 }
 0x221   :  { %v1229_v31 = vpack.c.bf16 %v1196_v29, %v1195_v28 }
 0x223   :  { %6689 = vmatprep.mubr.bf16.mxu0 %v1229_v31 }
 0x224   :  { %6690 = vmatmul.mubr.bf16.gmra.mxu0 %v1230_v32 }
 0x26c   :  { %v6631_v36 = vpop.f32.mrf.mxu0 }
 0x26d   :  { %v1344_v41 = vadd.f32 %v6631_v36, %v8001_v11 }
 0x26e   :  { %v1335_v37 = vpop.f32.mrf.mxu0 }
 0x26f   :  { %v1336_v39 = vadd.f32 %v8001_v11, %v1335_v37  ;;  %v1592_v50 = vmax.f32 %v1344_v41, 0.0 }
 0x270   :  { %v6632_v38 = vpop.f32.mrf.mxu0 }
 0x271   :  { %v1347_v40 = vadd.f32 %v6632_v38, %v8001_v11  ;;  %v1590_v48 = vmax.f32 %v1336_v39, 0.0 }
 0x272   :  { %v1338_v42 = vpop.f32.mrf.mxu0 }
 0x273   :  { %v1339_v45 = vadd.f32 %v8001_v11, %v1338_v42  ;;  %v1593_v46 = vmax.f32 %v1347_v40, 0.0 }
 0x274   :  { %v6635_v47 = vpop.f32.mrf.mxu0 }
 0x275   :  { %v1591_v49 = vmax.f32 %v1339_v45, 0.0  ;;  %v1655_v54 = vpack.c.bf16 %v1593_v46, %v1592_v50  ;;  %v1360_v58 = vadd.f32 %v6635_v47, %v8001_v11 }
 0x276   :  { %v1351_v51 = vpop.f32.mrf.mxu0 }
 0x277   :  { %v1654_v53 = vpack.c.bf16 %v1591_v49, %v1590_v48  ;;  %v1352_v56 = vadd.f32 %v8001_v11, %v1351_v51  ;;  %v1596_v2 = vmax.f32 %v1360_v58, 0.0 }
 0x278   :  { %v6636_v55 = vpop.f32.mrf.mxu0 }
 0x279   :  { %v1363_v57 = vadd.f32 %v6636_v55, %v8001_v11  ;;  %6709 = vmatprep.mubr.bf16.mxu1 %v1654_v53  ;;  %v1594_v0 = vmax.f32 %v1352_v56, 0.0 }
 0x27a   :  { %v1354_v59 = vpop.f32.mrf.mxu0  ;;  %6710 = vmatmul.mubr.bf16.vlgmr.msra.gmra.mxu1 %v1655_v54 }
 0x27b   :  { %v1355_v61 = vadd.f32 %v8001_v11, %v1354_v59  ;;  %v1597_v62 = vmax.f32 %v1363_v57, 0.0 }
 0x27c   :  { %v6639_v63 = vpop.f32.mrf.mxu0 }
 0x27d   :  { %v1595_v1 = vmax.f32 %v1355_v61, 0.0  ;;  %v1657_v6 = vpack.c.bf16 %v1597_v62, %v1596_v2  ;;  %v1376_v10 = vadd.f32 %v6639_v63, %v8001_v11 }
 0x27e   :  { %v1367_v3 = vpop.f32.mrf.mxu0 }
 0x27f   :  { %v1656_v5 = vpack.c.bf16 %v1595_v1, %v1594_v0  ;;  %v1368_v8 = vadd.f32 %v8001_v11, %v1367_v3  ;;  %v1600_v18 = vmax.f32 %v1376_v10, 0.0 }
 0x280   :  { %v6640_v7 = vpop.f32.mrf.mxu0 }
 0x281   :  { %v1379_v9 = vadd.f32 %v6640_v7, %v8001_v11  ;;  %6713 = vmatprep.mubr.bf16.mxu1 %v1656_v5  ;;  %v1598_v16 = vmax.f32 %v1368_v8, 0.0 }
 0x282   :  { %v1370_v12 = vpop.f32.mrf.mxu0  ;;  %6714 = vmatmul.mubr.bf16.gmra.mxu1 %v1657_v6 }
 0x283   :  { %v1371_v13 = vadd.f32 %v8001_v11, %v1370_v12  ;;  %v1601_v14 = vmax.f32 %v1379_v9, 0.0 }
 0x284   :  { %v6643_v15 = vpop.f32.mrf.mxu0 }
 0x285   :  { %v1599_v17 = vmax.f32 %v1371_v13, 0.0  ;;  %v1659_v21 = vpack.c.bf16 %v1601_v14, %v1600_v18  ;;  %v1392_v25 = vadd.f32 %v6643_v15, %v8001_v11 }
 0x286   :  { %v1383_v19 = vpop.f32.mrf.mxu0 }
 0x287   :  { %v1658_v20 = vpack.c.bf16 %v1599_v17, %v1598_v16  ;;  %v1384_v23 = vadd.f32 %v8001_v11, %v1383_v19  ;;  %v1604_v32 = vmax.f32 %v1392_v25, 0.0 }
 0x288   :  { %v6644_v22 = vpop.f32.mrf.mxu0 }
 0x289   :  { %v1395_v24 = vadd.f32 %v6644_v22, %v8001_v11  ;;  %6717 = vmatprep.mubr.bf16.mxu1 %v1658_v20  ;;  %v1602_v30 = vmax.f32 %v1384_v23, 0.0 }
 0x28a   :  { %v1386_v26 = vpop.f32.mrf.mxu0  ;;  %6718 = vmatmul.mubr.bf16.gmra.mxu1 %v1659_v21 }
 0x28b   :  { %v1387_v27 = vadd.f32 %v8001_v11, %v1386_v26  ;;  %v1605_v28 = vmax.f32 %v1395_v24, 0.0 }
 0x28c   :  { %v6647_v29 = vpop.f32.mrf.mxu0 }
 0x28d   :  { %v1603_v31 = vmax.f32 %v1387_v27, 0.0  ;;  %v1661_v35 = vpack.c.bf16 %v1605_v28, %v1604_v32  ;;  %v1408_v39 = vadd.f32 %v6647_v29, %v8001_v11 }
 0x28e   :  { %v1399_v33 = vpop.f32.mrf.mxu0 }
 0x28f   :  { %v1660_v34 = vpack.c.bf16 %v1603_v31, %v1602_v30  ;;  %v1400_v37 = vadd.f32 %v8001_v11, %v1399_v33  ;;  %v1608_v46 = vmax.f32 %v1408_v39, 0.0 }
 0x290   :  { %v6648_v36 = vpop.f32.mrf.mxu0 }
 0x291   :  { %v1411_v38 = vadd.f32 %v6648_v36, %v8001_v11  ;;  %6721 = vmatprep.mubr.bf16.mxu1 %v1660_v34  ;;  %v1606_v44 = vmax.f32 %v1400_v37, 0.0 }
 0x292   :  { %v1402_v40 = vpop.f32.mrf.mxu0  ;;  %6722 = vmatmul.mubr.bf16.gmra.mxu1 %v1661_v35 }
 0x293   :  { %v1403_v41 = vadd.f32 %v8001_v11, %v1402_v40  ;;  %v1609_v42 = vmax.f32 %v1411_v38, 0.0 }
 0x294   :  { %v6651_v43 = vpop.f32.mrf.mxu0 }
 0x295   :  { %v1607_v45 = vmax.f32 %v1403_v41, 0.0  ;;  %v1663_v49 = vpack.c.bf16 %v1609_v42, %v1608_v46  ;;  %v1424_v53 = vadd.f32 %v6651_v43, %v8001_v11 }
 0x296   :  { %v1415_v47 = vpop.f32.mrf.mxu0 }
 0x297   :  { %v1662_v48 = vpack.c.bf16 %v1607_v45, %v1606_v44  ;;  %v1416_v51 = vadd.f32 %v8001_v11, %v1415_v47  ;;  %v1612_v60 = vmax.f32 %v1424_v53, 0.0 }
 0x298   :  { %v6652_v50 = vpop.f32.mrf.mxu0 }
 0x299   :  { %v1427_v52 = vadd.f32 %v6652_v50, %v8001_v11  ;;  %6725 = vmatprep.mubr.bf16.mxu1 %v1662_v48  ;;  %v1610_v58 = vmax.f32 %v1416_v51, 0.0 }
 0x29a   :  { %v1418_v54 = vpop.f32.mrf.mxu0  ;;  %6726 = vmatmul.mubr.bf16.gmra.mxu1 %v1663_v49 }
 0x29b   :  { %v1419_v55 = vadd.f32 %v8001_v11, %v1418_v54  ;;  %v1613_v56 = vmax.f32 %v1427_v52, 0.0 }
 0x29c   :  { %v6655_v57 = vpop.f32.mrf.mxu0 }
 0x29d   :  { %v1611_v59 = vmax.f32 %v1419_v55, 0.0  ;;  %v1665_v63 = vpack.c.bf16 %v1613_v56, %v1612_v60  ;;  %v1440_v3 = vadd.f32 %v6655_v57, %v8001_v11 }
 0x29e   :  { %v1431_v61 = vpop.f32.mrf.mxu0 }
 0x29f   :  { %v1664_v62 = vpack.c.bf16 %v1611_v59, %v1610_v58  ;;  %v1432_v1 = vadd.f32 %v8001_v11, %v1431_v61  ;;  %v1616_v10 = vmax.f32 %v1440_v3, 0.0 }
 0x2a0   :  { %v6656_v0 = vpop.f32.mrf.mxu0 }
 0x2a1   :  { %v1443_v2 = vadd.f32 %v6656_v0, %v8001_v11  ;;  %6729 = vmatprep.mubr.bf16.mxu1 %v1664_v62  ;;  %v1614_v8 = vmax.f32 %v1432_v1, 0.0 }
 0x2a2   :  { %v1434_v4 = vpop.f32.mrf.mxu0  ;;  %6730 = vmatmul.mubr.bf16.gmra.mxu1 %v1665_v63 }
 0x2a3   :  { %v1435_v5 = vadd.f32 %v8001_v11, %v1434_v4  ;;  %v1617_v6 = vmax.f32 %v1443_v2, 0.0 }
 0x2a4   :  { %v6659_v7 = vpop.f32.mrf.mxu0 }
 0x2a5   :  { %v1615_v9 = vmax.f32 %v1435_v5, 0.0  ;;  %v1667_v14 = vpack.c.bf16 %v1617_v6, %v1616_v10  ;;  %v1456_v18 = vadd.f32 %v6659_v7, %v8001_v11 }
 0x2a6   :  { %v1447_v12 = vpop.f32.mrf.mxu0 }
 0x2a7   :  { %v1666_v13 = vpack.c.bf16 %v1615_v9, %v1614_v8  ;;  %v1448_v16 = vadd.f32 %v8001_v11, %v1447_v12  ;;  %v1620_v25 = vmax.f32 %v1456_v18, 0.0 }
 0x2a8   :  { %v6660_v15 = vpop.f32.mrf.mxu0 }
 0x2a9   :  { %v1459_v17 = vadd.f32 %v6660_v15, %v8001_v11  ;;  %6733 = vmatprep.mubr.bf16.mxu1 %v1666_v13  ;;  %v1618_v23 = vmax.f32 %v1448_v16, 0.0 }
 0x2aa   :  { %v1450_v19 = vpop.f32.mrf.mxu0  ;;  %6734 = vmatmul.mubr.bf16.gmra.mxu1 %v1667_v14 }
 0x2ab   :  { %v1451_v20 = vadd.f32 %v8001_v11, %v1450_v19  ;;  %v1621_v21 = vmax.f32 %v1459_v17, 0.0 }
 0x2ac   :  { %v6663_v22 = vpop.f32.mrf.mxu0 }
 0x2ad   :  { %v1619_v24 = vmax.f32 %v1451_v20, 0.0  ;;  %v1669_v28 = vpack.c.bf16 %v1621_v21, %v1620_v25  ;;  %v1472_v32 = vadd.f32 %v6663_v22, %v8001_v11 }
 0x2ae   :  { %v1463_v26 = vpop.f32.mrf.mxu0 }
 0x2af   :  { %v1668_v27 = vpack.c.bf16 %v1619_v24, %v1618_v23  ;;  %v1464_v30 = vadd.f32 %v8001_v11, %v1463_v26  ;;  %v1624_v39 = vmax.f32 %v1472_v32, 0.0 }
 0x2b0   :  { %v6664_v29 = vpop.f32.mrf.mxu0 }
 0x2b1   :  { %v1475_v31 = vadd.f32 %v6664_v29, %v8001_v11  ;;  %6737 = vmatprep.mubr.bf16.mxu1 %v1668_v27  ;;  %v1622_v37 = vmax.f32 %v1464_v30, 0.0 }
 0x2b2   :  { %v1466_v33 = vpop.f32.mrf.mxu0  ;;  %6738 = vmatmul.mubr.bf16.gmra.mxu1 %v1669_v28 }
 0x2b3   :  { %v1467_v34 = vadd.f32 %v8001_v11, %v1466_v33  ;;  %v1625_v35 = vmax.f32 %v1475_v31, 0.0 }
 0x2b4   :  { %v6667_v36 = vpop.f32.mrf.mxu0 }
 0x2b5   :  { %v1623_v38 = vmax.f32 %v1467_v34, 0.0  ;;  %v1671_v42 = vpack.c.bf16 %v1625_v35, %v1624_v39  ;;  %v1488_v46 = vadd.f32 %v6667_v36, %v8001_v11 }
 0x2b6   :  { %v1479_v40 = vpop.f32.mrf.mxu0 }
 0x2b7   :  { %v1670_v41 = vpack.c.bf16 %v1623_v38, %v1622_v37  ;;  %v1480_v44 = vadd.f32 %v8001_v11, %v1479_v40  ;;  %v1628_v53 = vmax.f32 %v1488_v46, 0.0 }
 0x2b8   :  { %v6668_v43 = vpop.f32.mrf.mxu0 }
 0x2b9   :  { %v1491_v45 = vadd.f32 %v6668_v43, %v8001_v11  ;;  %6741 = vmatprep.mubr.bf16.mxu1 %v1670_v41  ;;  %v1626_v51 = vmax.f32 %v1480_v44, 0.0 }
 0x2ba   :  { %v1482_v47 = vpop.f32.mrf.mxu0  ;;  %6742 = vmatmul.mubr.bf16.gmra.mxu1 %v1671_v42 }
 0x2bb   :  { %v1483_v48 = vadd.f32 %v8001_v11, %v1482_v47  ;;  %v1629_v49 = vmax.f32 %v1491_v45, 0.0 }
 0x2bc   :  { %v6671_v50 = vpop.f32.mrf.mxu0 }
 0x2bd   :  { %v1627_v52 = vmax.f32 %v1483_v48, 0.0  ;;  %v1673_v56 = vpack.c.bf16 %v1629_v49, %v1628_v53  ;;  %v1504_v60 = vadd.f32 %v6671_v50, %v8001_v11 }
 0x2be   :  { %v1495_v54 = vpop.f32.mrf.mxu0 }
 0x2bf   :  { %v1672_v55 = vpack.c.bf16 %v1627_v52, %v1626_v51  ;;  %v1496_v58 = vadd.f32 %v8001_v11, %v1495_v54  ;;  %v1632_v3 = vmax.f32 %v1504_v60, 0.0 }
 0x2c0   :  { %v6672_v57 = vpop.f32.mrf.mxu0 }
 0x2c1   :  { %v1507_v59 = vadd.f32 %v6672_v57, %v8001_v11  ;;  %6745 = vmatprep.mubr.bf16.mxu1 %v1672_v55  ;;  %v1630_v1 = vmax.f32 %v1496_v58, 0.0 }
 0x2c2   :  { %v1498_v61 = vpop.f32.mrf.mxu0  ;;  %6746 = vmatmul.mubr.bf16.gmra.mxu1 %v1673_v56 }
 0x2c3   :  { %v1499_v62 = vadd.f32 %v8001_v11, %v1498_v61  ;;  %v1633_v63 = vmax.f32 %v1507_v59, 0.0 }
 0x2c4   :  { %v6675_v0 = vpop.f32.mrf.mxu0 }
 0x2c5   :  { %v1631_v2 = vmax.f32 %v1499_v62, 0.0  ;;  %v1675_v6 = vpack.c.bf16 %v1633_v63, %v1632_v3  ;;  %v1520_v10 = vadd.f32 %v6675_v0, %v8001_v11 }
 0x2c6   :  { %v1511_v4 = vpop.f32.mrf.mxu0 }
 0x2c7   :  { %v1674_v5 = vpack.c.bf16 %v1631_v2, %v1630_v1  ;;  %v1512_v8 = vadd.f32 %v8001_v11, %v1511_v4  ;;  %v1636_v18 = vmax.f32 %v1520_v10, 0.0 }
 0x2c8   :  { %v6676_v7 = vpop.f32.mrf.mxu0 }
 0x2c9   :  { %v1523_v9 = vadd.f32 %v6676_v7, %v8001_v11  ;;  %6749 = vmatprep.mubr.bf16.mxu1 %v1674_v5  ;;  %v1634_v16 = vmax.f32 %v1512_v8, 0.0 }
 0x2ca   :  { %v1514_v12 = vpop.f32.mrf.mxu0  ;;  %6750 = vmatmul.mubr.bf16.gmra.mxu1 %v1675_v6 }
 0x2cb   :  { %v1515_v13 = vadd.f32 %v8001_v11, %v1514_v12  ;;  %v1637_v14 = vmax.f32 %v1523_v9, 0.0 }
 0x2cc   :  { %v6679_v15 = vpop.f32.mrf.mxu0 }
 0x2cd   :  { %v1635_v17 = vmax.f32 %v1515_v13, 0.0  ;;  %v1677_v21 = vpack.c.bf16 %v1637_v14, %v1636_v18  ;;  %v1536_v25 = vadd.f32 %v6679_v15, %v8001_v11  ;;  %v7467_v13 = vld [vmem:[#allocation2 + $0x138] sm:$0xff]   ;;  %v7468_v14 = vld [vmem:[#allocation2 + $0x130] sm:$0xff]   ;;  %v7469_v15 = vld [vmem:[#allocation2 + $0x128] sm:$0xff]  }
 0x2ce   :  { %v1527_v19 = vpop.f32.mrf.mxu0  ;;  %6853 = vmatprep.subr.bf16.mxu1 %v7467_v13 }
 0x2cf   :  { %v1676_v20 = vpack.c.bf16 %v1635_v17, %v1634_v16  ;;  %v1528_v23 = vadd.f32 %v8001_v11, %v1527_v19  ;;  %v1640_v32 = vmax.f32 %v1536_v25, 0.0  ;;  %6854 = vmatpush3.bf16.msra.mxu1 %v7467_v13 }
 0x2d0   :  { %v6680_v22 = vpop.f32.mrf.mxu0  ;;  %6855 = vmatprep.subr.bf16.mxu1 %v7468_v14 }
 0x2d1   :  { %v1539_v24 = vadd.f32 %v6680_v22, %v8001_v11  ;;  %6753 = vmatprep.mubr.bf16.mxu1 %v1676_v20  ;;  %v1638_v30 = vmax.f32 %v1528_v23, 0.0  ;;  %v7470_v23 = vld [vmem:[#allocation2 + $0x120] sm:$0xff]  }
 0x2d2   :  { %v1530_v26 = vpop.f32.mrf.mxu0  ;;  %6754 = vmatmul.mubr.bf16.gmra.mxu1 %v1677_v21 }
 0x2d3   :  { %v1531_v27 = vadd.f32 %v8001_v11, %v1530_v26  ;;  %v1641_v28 = vmax.f32 %v1539_v24, 0.0  ;;  %6856 = vmatpush3.bf16.msra.mxu1 %v7468_v14  ;;  %v7471_v24 = vld [vmem:[#allocation2 + $0x118] sm:$0xff]  }
 0x2d4   :  { %v6683_v29 = vpop.f32.mrf.mxu0  ;;  %6857 = vmatprep.subr.bf16.mxu1 %v7469_v15 }
 0x2d5   :  { %v1639_v31 = vmax.f32 %v1531_v27, 0.0  ;;  %v1679_v35 = vpack.c.bf16 %v1641_v28, %v1640_v32  ;;  %v1552_v39 = vadd.f32 %v6683_v29, %v8001_v11  ;;  %v7472_v32 = vld [vmem:[#allocation2 + $0x110] sm:$0xff]  }
 0x2d6   :  { %v1543_v33 = vpop.f32.mrf.mxu0 }
 0x2d7   :  { %v1678_v34 = vpack.c.bf16 %v1639_v31, %v1638_v30  ;;  %v1544_v37 = vadd.f32 %v8001_v11, %v1543_v33  ;;  %v1644_v46 = vmax.f32 %v1552_v39, 0.0  ;;  %6858 = vmatpush3.bf16.msra.mxu1 %v7469_v15 }
 0x2d8   :  { %v6684_v36 = vpop.f32.mrf.mxu0  ;;  %6859 = vmatprep.subr.bf16.mxu1 %v7470_v23 }
 0x2d9   :  { %v1555_v38 = vadd.f32 %v6684_v36, %v8001_v11  ;;  %6757 = vmatprep.mubr.bf16.mxu1 %v1678_v34  ;;  %v1642_v44 = vmax.f32 %v1544_v37, 0.0 }
 0x2da   :  { %v1546_v40 = vpop.f32.mrf.mxu0  ;;  %6758 = vmatmul.mubr.bf16.gmra.mxu1 %v1679_v35 }
 0x2db   :  { %v1547_v41 = vadd.f32 %v8001_v11, %v1546_v40  ;;  %v1645_v42 = vmax.f32 %v1555_v38, 0.0  ;;  %6860 = vmatpush3.bf16.msra.mxu1 %v7470_v23  ;;  %v7473_v40 = vld [vmem:[#allocation2 + $0x108] sm:$0xff]  }
 0x2dc   :  { %v6687_v43 = vpop.f32.mrf.mxu0  ;;  %6861 = vmatprep.subr.bf16.mxu1 %v7471_v24 }
 0x2dd   :  { %v1643_v45 = vmax.f32 %v1547_v41, 0.0  ;;  %v1681_v49 = vpack.c.bf16 %v1645_v42, %v1644_v46  ;;  %v1568_v53 = vadd.f32 %v6687_v43, %v8001_v11 }
 0x2de   :  { %v1559_v47 = vpop.f32.mrf.mxu0 }
 0x2df   :  { %v1680_v48 = vpack.c.bf16 %v1643_v45, %v1642_v44  ;;  %v1560_v51 = vadd.f32 %v8001_v11, %v1559_v47  ;;  %v1648_v60 = vmax.f32 %v1568_v53, 0.0  ;;  %6862 = vmatpush3.bf16.msra.mxu1 %v7471_v24 }
 0x2e0   :  { %v6688_v50 = vpop.f32.mrf.mxu0  ;;  %6863 = vmatprep.subr.bf16.mxu1 %v7472_v32 }
 0x2e1   :  { %v1571_v52 = vadd.f32 %v6688_v50, %v8001_v11  ;;  %6761 = vmatprep.mubr.bf16.mxu1 %v1680_v48  ;;  %v1646_v58 = vmax.f32 %v1560_v51, 0.0  ;;  %v7474_v48 = vld [vmem:[#allocation2 + $0x100] sm:$0xff]  }
 0x2e2   :  { %v1562_v54 = vpop.f32.mrf.mxu0  ;;  %6762 = vmatmul.mubr.bf16.gmra.mxu1 %v1681_v49 }
 0x2e3   :  { %v1563_v55 = vadd.f32 %v8001_v11, %v1562_v54  ;;  %v1649_v56 = vmax.f32 %v1571_v52, 0.0  ;;  %6864 = vmatpush3.bf16.msra.mxu1 %v7472_v32 }
 0x2e4   :  { %v6691_v57 = vpop.f32.mrf.mxu0  ;;  %6865 = vmatprep.subr.bf16.mxu1 %v7473_v40 }
 0x2e5   :  { %v1647_v59 = vmax.f32 %v1563_v55, 0.0  ;;  %v1683_v63 = vpack.c.bf16 %v1649_v56, %v1648_v60  ;;  %v1584_v3 = vadd.f32 %v6691_v57, %v8001_v11 }
 0x2e6   :  { %v1575_v61 = vpop.f32.mrf.mxu0 }
 0x2e7   :  { %v1682_v62 = vpack.c.bf16 %v1647_v59, %v1646_v58  ;;  %v1576_v1 = vadd.f32 %v8001_v11, %v1575_v61  ;;  %v1652_v9 = vmax.f32 %v1584_v3, 0.0  ;;  %6866 = vmatpush3.bf16.msra.mxu1 %v7473_v40 }
 0x2e8   :  { %v6692_v0 = vpop.f32.mrf.mxu0  ;;  %6867 = vmatprep.subr.bf16.mxu1 %v7474_v48 }
 0x2e9   :  { %v1587_v2 = vadd.f32 %v6692_v0, %v8001_v11  ;;  %6765 = vmatprep.mubr.bf16.mxu1 %v1682_v62  ;;  %v1650_v7 = vmax.f32 %v1576_v1, 0.0 }
 0x2ea   :  { %v1578_v4 = vpop.f32.mrf.mxu0  ;;  %6766 = vmatmul.mubr.bf16.gmra.mxu1 %v1683_v63 }
 0x2eb   :  { %v1579_v5 = vadd.f32 %v8001_v11, %v1578_v4  ;;  %v1653_v6 = vmax.f32 %v1587_v2, 0.0  ;;  %v8070_v11 = vld [vmem:[%s8694_s3 + $0x3] ss:$0 sm:$0xff]  ;;  %6868 = vmatpush3.bf16.msra.mxu1 %v7474_v48 }
 0x2ed   :  { %v1651_v8 = vmax.f32 %v1579_v5, 0.0  ;;  %v1685_v12 = vpack.c.bf16 %v1653_v6, %v1652_v9 }
 0x2ef   :  { %v1684_v10 = vpack.c.bf16 %v1651_v8, %v1650_v7 }
 0x2f1   :  { %6769 = vmatprep.mubr.bf16.mxu1 %v1684_v10 }
 0x2f2   :  { %6770 = vmatmul.mubr.bf16.gmra.mxu1 %v1685_v12 }
 0x33a   :  { %v6711_v16 = vpop.f32.mrf.mxu1 }
 0x33b   :  { %v1799_v21 = vadd.f32 %v6711_v16, %v8070_v11 }
 0x33c   :  { %v1790_v17 = vpop.f32.mrf.mxu1 }
 0x33d   :  { %v1791_v19 = vadd.f32 %v8070_v11, %v1790_v17  ;;  %v2047_v30 = vmax.f32 %v1799_v21, 0.0 }
 0x33e   :  { %v6712_v18 = vpop.f32.mrf.mxu1 }
 0x33f   :  { %v1802_v20 = vadd.f32 %v6712_v18, %v8070_v11  ;;  %v2045_v28 = vmax.f32 %v1791_v19, 0.0 }
 0x340   :  { %v1793_v22 = vpop.f32.mrf.mxu1 }
 0x341   :  { %v1794_v25 = vadd.f32 %v8070_v11, %v1793_v22  ;;  %v2048_v26 = vmax.f32 %v1802_v20, 0.0 }
 0x342   :  { %v6715_v27 = vpop.f32.mrf.mxu1 }
 0x343   :  { %v2046_v29 = vmax.f32 %v1794_v25, 0.0  ;;  %v2110_v34 = vpack.c.bf16 %v2048_v26, %v2047_v30  ;;  %v1815_v38 = vadd.f32 %v6715_v27, %v8070_v11 }
 0x344   :  { %v1806_v31 = vpop.f32.mrf.mxu1 }
 0x345   :  { %v2109_v33 = vpack.c.bf16 %v2046_v29, %v2045_v28  ;;  %v1807_v36 = vadd.f32 %v8070_v11, %v1806_v31  ;;  %v2051_v46 = vmax.f32 %v1815_v38, 0.0 }
 0x346   :  { %v6716_v35 = vpop.f32.mrf.mxu1 }
 0x347   :  { %v1818_v37 = vadd.f32 %v6716_v35, %v8070_v11  ;;  %6789 = vmatprep.mubr.bf16.mxu0 %v2109_v33  ;;  %v2049_v44 = vmax.f32 %v1807_v36, 0.0 }
 0x348   :  { %v1809_v39 = vpop.f32.mrf.mxu1  ;;  %6790 = vmatmul.mubr.bf16.vlgmr.msra.gmra.mxu0 %v2110_v34 }
 0x349   :  { %v1810_v41 = vadd.f32 %v8070_v11, %v1809_v39  ;;  %v2052_v42 = vmax.f32 %v1818_v37, 0.0 }
 0x34a   :  { %v6719_v43 = vpop.f32.mrf.mxu1 }
 0x34b   :  { %v2050_v45 = vmax.f32 %v1810_v41, 0.0  ;;  %v2112_v50 = vpack.c.bf16 %v2052_v42, %v2051_v46  ;;  %v1831_v54 = vadd.f32 %v6719_v43, %v8070_v11 }
 0x34c   :  { %v1822_v47 = vpop.f32.mrf.mxu1 }
 0x34d   :  { %v2111_v49 = vpack.c.bf16 %v2050_v45, %v2049_v44  ;;  %v1823_v52 = vadd.f32 %v8070_v11, %v1822_v47  ;;  %v2055_v61 = vmax.f32 %v1831_v54, 0.0 }
 0x34e   :  { %v6720_v51 = vpop.f32.mrf.mxu1 }
 0x34f   :  { %v1834_v53 = vadd.f32 %v6720_v51, %v8070_v11  ;;  %6793 = vmatprep.mubr.bf16.mxu0 %v2111_v49  ;;  %v2053_v59 = vmax.f32 %v1823_v52, 0.0 }
 0x350   :  { %v1825_v55 = vpop.f32.mrf.mxu1  ;;  %6794 = vmatmul.mubr.bf16.gmra.mxu0 %v2112_v50 }
 0x351   :  { %v1826_v56 = vadd.f32 %v8070_v11, %v1825_v55  ;;  %v2056_v57 = vmax.f32 %v1834_v53, 0.0 }
 0x352   :  { %v6723_v58 = vpop.f32.mrf.mxu1 }
 0x353   :  { %v2054_v60 = vmax.f32 %v1826_v56, 0.0  ;;  %v2114_v0 = vpack.c.bf16 %v2056_v57, %v2055_v61  ;;  %v1847_v4 = vadd.f32 %v6723_v58, %v8070_v11 }
 0x354   :  { %v1838_v62 = vpop.f32.mrf.mxu1 }
 0x355   :  { %v2113_v63 = vpack.c.bf16 %v2054_v60, %v2053_v59  ;;  %v1839_v2 = vadd.f32 %v8070_v11, %v1838_v62  ;;  %v2059_v12 = vmax.f32 %v1847_v4, 0.0 }
 0x356   :  { %v6724_v1 = vpop.f32.mrf.mxu1 }
 0x357   :  { %v1850_v3 = vadd.f32 %v6724_v1, %v8070_v11  ;;  %6797 = vmatprep.mubr.bf16.mxu0 %v2113_v63  ;;  %v2057_v9 = vmax.f32 %v1839_v2, 0.0 }
 0x358   :  { %v1841_v5 = vpop.f32.mrf.mxu1  ;;  %6798 = vmatmul.mubr.bf16.gmra.mxu0 %v2114_v0 }
 0x359   :  { %v1842_v6 = vadd.f32 %v8070_v11, %v1841_v5  ;;  %v2060_v7 = vmax.f32 %v1850_v3, 0.0 }
 0x35a   :  { %v6727_v8 = vpop.f32.mrf.mxu1 }
 0x35b   :  { %v2058_v10 = vmax.f32 %v1842_v6, 0.0  ;;  %v2116_v15 = vpack.c.bf16 %v2060_v7, %v2059_v12  ;;  %v1863_v19 = vadd.f32 %v6727_v8, %v8070_v11 }
 0x35c   :  { %v1854_v13 = vpop.f32.mrf.mxu1 }
 0x35d   :  { %v2115_v14 = vpack.c.bf16 %v2058_v10, %v2057_v9  ;;  %v1855_v17 = vadd.f32 %v8070_v11, %v1854_v13  ;;  %v2063_v26 = vmax.f32 %v1863_v19, 0.0 }
 0x35e   :  { %v6728_v16 = vpop.f32.mrf.mxu1 }
 0x35f   :  { %v1866_v18 = vadd.f32 %v6728_v16, %v8070_v11  ;;  %6801 = vmatprep.mubr.bf16.mxu0 %v2115_v14  ;;  %v2061_v24 = vmax.f32 %v1855_v17, 0.0 }
 0x360   :  { %v1857_v20 = vpop.f32.mrf.mxu1  ;;  %6802 = vmatmul.mubr.bf16.gmra.mxu0 %v2116_v15 }
 0x361   :  { %v1858_v21 = vadd.f32 %v8070_v11, %v1857_v20  ;;  %v2064_v22 = vmax.f32 %v1866_v18, 0.0 }
 0x362   :  { %v6731_v23 = vpop.f32.mrf.mxu1 }
 0x363   :  { %v2062_v25 = vmax.f32 %v1858_v21, 0.0  ;;  %v2118_v29 = vpack.c.bf16 %v2064_v22, %v2063_v26  ;;  %v1879_v33 = vadd.f32 %v6731_v23, %v8070_v11 }
 0x364   :  { %v1870_v27 = vpop.f32.mrf.mxu1 }
 0x365   :  { %v2117_v28 = vpack.c.bf16 %v2062_v25, %v2061_v24  ;;  %v1871_v31 = vadd.f32 %v8070_v11, %v1870_v27  ;;  %v2067_v40 = vmax.f32 %v1879_v33, 0.0 }
 0x366   :  { %v6732_v30 = vpop.f32.mrf.mxu1 }
 0x367   :  { %v1882_v32 = vadd.f32 %v6732_v30, %v8070_v11  ;;  %6805 = vmatprep.mubr.bf16.mxu0 %v2117_v28  ;;  %v2065_v38 = vmax.f32 %v1871_v31, 0.0 }
 0x368   :  { %v1873_v34 = vpop.f32.mrf.mxu1  ;;  %6806 = vmatmul.mubr.bf16.gmra.mxu0 %v2118_v29 }
 0x369   :  { %v1874_v35 = vadd.f32 %v8070_v11, %v1873_v34  ;;  %v2068_v36 = vmax.f32 %v1882_v32, 0.0 }
 0x36a   :  { %v6735_v37 = vpop.f32.mrf.mxu1 }
 0x36b   :  { %v2066_v39 = vmax.f32 %v1874_v35, 0.0  ;;  %v2120_v43 = vpack.c.bf16 %v2068_v36, %v2067_v40  ;;  %v1895_v47 = vadd.f32 %v6735_v37, %v8070_v11 }
 0x36c   :  { %v1886_v41 = vpop.f32.mrf.mxu1 }
 0x36d   :  { %v2119_v42 = vpack.c.bf16 %v2066_v39, %v2065_v38  ;;  %v1887_v45 = vadd.f32 %v8070_v11, %v1886_v41  ;;  %v2071_v54 = vmax.f32 %v1895_v47, 0.0 }
 0x36e   :  { %v6736_v44 = vpop.f32.mrf.mxu1 }
 0x36f   :  { %v1898_v46 = vadd.f32 %v6736_v44, %v8070_v11  ;;  %6809 = vmatprep.mubr.bf16.mxu0 %v2119_v42  ;;  %v2069_v52 = vmax.f32 %v1887_v45, 0.0 }
 0x370   :  { %v1889_v48 = vpop.f32.mrf.mxu1  ;;  %6810 = vmatmul.mubr.bf16.gmra.mxu0 %v2120_v43 }
 0x371   :  { %v1890_v49 = vadd.f32 %v8070_v11, %v1889_v48  ;;  %v2072_v50 = vmax.f32 %v1898_v46, 0.0 }
 0x372   :  { %v6739_v51 = vpop.f32.mrf.mxu1 }
 0x373   :  { %v2070_v53 = vmax.f32 %v1890_v49, 0.0  ;;  %v2122_v57 = vpack.c.bf16 %v2072_v50, %v2071_v54  ;;  %v1911_v61 = vadd.f32 %v6739_v51, %v8070_v11 }
 0x374   :  { %v1902_v55 = vpop.f32.mrf.mxu1 }
 0x375   :  { %v2121_v56 = vpack.c.bf16 %v2070_v53, %v2069_v52  ;;  %v1903_v59 = vadd.f32 %v8070_v11, %v1902_v55  ;;  %v2075_v4 = vmax.f32 %v1911_v61, 0.0 }
 0x376   :  { %v6740_v58 = vpop.f32.mrf.mxu1 }
 0x377   :  { %v1914_v60 = vadd.f32 %v6740_v58, %v8070_v11  ;;  %6813 = vmatprep.mubr.bf16.mxu0 %v2121_v56  ;;  %v2073_v2 = vmax.f32 %v1903_v59, 0.0 }
 0x378   :  { %v1905_v62 = vpop.f32.mrf.mxu1  ;;  %6814 = vmatmul.mubr.bf16.gmra.mxu0 %v2122_v57 }
 0x379   :  { %v1906_v63 = vadd.f32 %v8070_v11, %v1905_v62  ;;  %v2076_v0 = vmax.f32 %v1914_v60, 0.0 }
 0x37a   :  { %v6743_v1 = vpop.f32.mrf.mxu1 }
 0x37b   :  { %v2074_v3 = vmax.f32 %v1906_v63, 0.0  ;;  %v2124_v7 = vpack.c.bf16 %v2076_v0, %v2075_v4  ;;  %v1927_v12 = vadd.f32 %v6743_v1, %v8070_v11 }
 0x37c   :  { %v1918_v5 = vpop.f32.mrf.mxu1 }
 0x37d   :  { %v2123_v6 = vpack.c.bf16 %v2074_v3, %v2073_v2  ;;  %v1919_v9 = vadd.f32 %v8070_v11, %v1918_v5  ;;  %v2079_v19 = vmax.f32 %v1927_v12, 0.0 }
 0x37e   :  { %v6744_v8 = vpop.f32.mrf.mxu1 }
 0x37f   :  { %v1930_v10 = vadd.f32 %v6744_v8, %v8070_v11  ;;  %6817 = vmatprep.mubr.bf16.mxu0 %v2123_v6  ;;  %v2077_v17 = vmax.f32 %v1919_v9, 0.0 }
 0x380   :  { %v1921_v13 = vpop.f32.mrf.mxu1  ;;  %6818 = vmatmul.mubr.bf16.gmra.mxu0 %v2124_v7 }
 0x381   :  { %v1922_v14 = vadd.f32 %v8070_v11, %v1921_v13  ;;  %v2080_v15 = vmax.f32 %v1930_v10, 0.0 }
 0x382   :  { %v6747_v16 = vpop.f32.mrf.mxu1 }
 0x383   :  { %v2078_v18 = vmax.f32 %v1922_v14, 0.0  ;;  %v2126_v22 = vpack.c.bf16 %v2080_v15, %v2079_v19  ;;  %v1943_v26 = vadd.f32 %v6747_v16, %v8070_v11 }
 0x384   :  { %v1934_v20 = vpop.f32.mrf.mxu1 }
 0x385   :  { %v2125_v21 = vpack.c.bf16 %v2078_v18, %v2077_v17  ;;  %v1935_v24 = vadd.f32 %v8070_v11, %v1934_v20  ;;  %v2083_v33 = vmax.f32 %v1943_v26, 0.0 }
 0x386   :  { %v6748_v23 = vpop.f32.mrf.mxu1 }
 0x387   :  { %v1946_v25 = vadd.f32 %v6748_v23, %v8070_v11  ;;  %6821 = vmatprep.mubr.bf16.mxu0 %v2125_v21  ;;  %v2081_v31 = vmax.f32 %v1935_v24, 0.0 }
 0x388   :  { %v1937_v27 = vpop.f32.mrf.mxu1  ;;  %6822 = vmatmul.mubr.bf16.gmra.mxu0 %v2126_v22 }
 0x389   :  { %v1938_v28 = vadd.f32 %v8070_v11, %v1937_v27  ;;  %v2084_v29 = vmax.f32 %v1946_v25, 0.0 }
 0x38a   :  { %v6751_v30 = vpop.f32.mrf.mxu1 }
 0x38b   :  { %v2082_v32 = vmax.f32 %v1938_v28, 0.0  ;;  %v2128_v36 = vpack.c.bf16 %v2084_v29, %v2083_v33  ;;  %v1959_v40 = vadd.f32 %v6751_v30, %v8070_v11 }
 0x38c   :  { %v1950_v34 = vpop.f32.mrf.mxu1 }
 0x38d   :  { %v2127_v35 = vpack.c.bf16 %v2082_v32, %v2081_v31  ;;  %v1951_v38 = vadd.f32 %v8070_v11, %v1950_v34  ;;  %v2087_v47 = vmax.f32 %v1959_v40, 0.0 }
 0x38e   :  { %v6752_v37 = vpop.f32.mrf.mxu1 }
 0x38f   :  { %v1962_v39 = vadd.f32 %v6752_v37, %v8070_v11  ;;  %6825 = vmatprep.mubr.bf16.mxu0 %v2127_v35  ;;  %v2085_v45 = vmax.f32 %v1951_v38, 0.0 }
 0x390   :  { %v1953_v41 = vpop.f32.mrf.mxu1  ;;  %6826 = vmatmul.mubr.bf16.gmra.mxu0 %v2128_v36 }
 0x391   :  { %v1954_v42 = vadd.f32 %v8070_v11, %v1953_v41  ;;  %v2088_v43 = vmax.f32 %v1962_v39, 0.0 }
 0x392   :  { %v6755_v44 = vpop.f32.mrf.mxu1 }
 0x393   :  { %v2086_v46 = vmax.f32 %v1954_v42, 0.0  ;;  %v2130_v50 = vpack.c.bf16 %v2088_v43, %v2087_v47  ;;  %v1975_v54 = vadd.f32 %v6755_v44, %v8070_v11 }
 0x394   :  { %v1966_v48 = vpop.f32.mrf.mxu1 }
 0x395   :  { %v2129_v49 = vpack.c.bf16 %v2086_v46, %v2085_v45  ;;  %v1967_v52 = vadd.f32 %v8070_v11, %v1966_v48  ;;  %v2091_v61 = vmax.f32 %v1975_v54, 0.0 }
 0x396   :  { %v6756_v51 = vpop.f32.mrf.mxu1 }
 0x397   :  { %v1978_v53 = vadd.f32 %v6756_v51, %v8070_v11  ;;  %6829 = vmatprep.mubr.bf16.mxu0 %v2129_v49  ;;  %v2089_v59 = vmax.f32 %v1967_v52, 0.0 }
 0x398   :  { %v1969_v55 = vpop.f32.mrf.mxu1  ;;  %6830 = vmatmul.mubr.bf16.gmra.mxu0 %v2130_v50 }
 0x399   :  { %v1970_v56 = vadd.f32 %v8070_v11, %v1969_v55  ;;  %v2092_v57 = vmax.f32 %v1978_v53, 0.0 }
 0x39a   :  { %v6759_v58 = vpop.f32.mrf.mxu1 }
 0x39b   :  { %v2090_v60 = vmax.f32 %v1970_v56, 0.0  ;;  %v2132_v0 = vpack.c.bf16 %v2092_v57, %v2091_v61  ;;  %v1991_v4 = vadd.f32 %v6759_v58, %v8070_v11  ;;  %v7475_v56 = vld [vmem:[#allocation2 + $0x178] sm:$0xff]   ;;  %v7476_v57 = vld [vmem:[#allocation2 + $0x170] sm:$0xff]   ;;  %v7477_v58 = vld [vmem:[#allocation2 + $0x168] sm:$0xff]  }
 0x39c   :  { %v1982_v62 = vpop.f32.mrf.mxu1  ;;  %6933 = vmatprep.subr.bf16.mxu0 %v7475_v56 }
 0x39d   :  { %v2131_v63 = vpack.c.bf16 %v2090_v60, %v2089_v59  ;;  %v1983_v2 = vadd.f32 %v8070_v11, %v1982_v62  ;;  %v2095_v12 = vmax.f32 %v1991_v4, 0.0  ;;  %6934 = vmatpush3.bf16.msra.mxu0 %v7475_v56 }
 0x39e   :  { %v6760_v1 = vpop.f32.mrf.mxu1  ;;  %6935 = vmatprep.subr.bf16.mxu0 %v7476_v57 }
 0x39f   :  { %v1994_v3 = vadd.f32 %v6760_v1, %v8070_v11  ;;  %6833 = vmatprep.mubr.bf16.mxu0 %v2131_v63  ;;  %v2093_v9 = vmax.f32 %v1983_v2, 0.0  ;;  %v7478_v2 = vld [vmem:[#allocation2 + $0x160] sm:$0xff]  }
 0x3a0   :  { %v1985_v5 = vpop.f32.mrf.mxu1  ;;  %6834 = vmatmul.mubr.bf16.gmra.mxu0 %v2132_v0 }
 0x3a1   :  { %v1986_v6 = vadd.f32 %v8070_v11, %v1985_v5  ;;  %v2096_v7 = vmax.f32 %v1994_v3, 0.0  ;;  %6936 = vmatpush3.bf16.msra.mxu0 %v7476_v57  ;;  %v7479_v3 = vld [vmem:[#allocation2 + $0x158] sm:$0xff]  }
 0x3a2   :  { %v6763_v8 = vpop.f32.mrf.mxu1  ;;  %6937 = vmatprep.subr.bf16.mxu0 %v7477_v58 }
 0x3a3   :  { %v2094_v10 = vmax.f32 %v1986_v6, 0.0  ;;  %v2134_v15 = vpack.c.bf16 %v2096_v7, %v2095_v12  ;;  %v2007_v19 = vadd.f32 %v6763_v8, %v8070_v11  ;;  %v7480_v12 = vld [vmem:[#allocation2 + $0x150] sm:$0xff]  }
 0x3a4   :  { %v1998_v13 = vpop.f32.mrf.mxu1 }
 0x3a5   :  { %v2133_v14 = vpack.c.bf16 %v2094_v10, %v2093_v9  ;;  %v1999_v17 = vadd.f32 %v8070_v11, %v1998_v13  ;;  %v2099_v26 = vmax.f32 %v2007_v19, 0.0  ;;  %6938 = vmatpush3.bf16.msra.mxu0 %v7477_v58 }
 0x3a6   :  { %v6764_v16 = vpop.f32.mrf.mxu1  ;;  %6939 = vmatprep.subr.bf16.mxu0 %v7478_v2 }
 0x3a7   :  { %v2010_v18 = vadd.f32 %v6764_v16, %v8070_v11  ;;  %6837 = vmatprep.mubr.bf16.mxu0 %v2133_v14  ;;  %v2097_v24 = vmax.f32 %v1999_v17, 0.0 }
 0x3a8   :  { %v2001_v20 = vpop.f32.mrf.mxu1  ;;  %6838 = vmatmul.mubr.bf16.gmra.mxu0 %v2134_v15 }
 0x3a9   :  { %v2002_v21 = vadd.f32 %v8070_v11, %v2001_v20  ;;  %v2100_v22 = vmax.f32 %v2010_v18, 0.0  ;;  %6940 = vmatpush3.bf16.msra.mxu0 %v7478_v2  ;;  %v7481_v20 = vld [vmem:[#allocation2 + $0x148] sm:$0xff]  }
 0x3aa   :  { %v6767_v23 = vpop.f32.mrf.mxu1  ;;  %6941 = vmatprep.subr.bf16.mxu0 %v7479_v3 }
 0x3ab   :  { %v2098_v25 = vmax.f32 %v2002_v21, 0.0  ;;  %v2136_v29 = vpack.c.bf16 %v2100_v22, %v2099_v26  ;;  %v2023_v33 = vadd.f32 %v6767_v23, %v8070_v11 }
 0x3ac   :  { %v2014_v27 = vpop.f32.mrf.mxu1 }
 0x3ad   :  { %v2135_v28 = vpack.c.bf16 %v2098_v25, %v2097_v24  ;;  %v2015_v31 = vadd.f32 %v8070_v11, %v2014_v27  ;;  %v2103_v40 = vmax.f32 %v2023_v33, 0.0  ;;  %6942 = vmatpush3.bf16.msra.mxu0 %v7479_v3 }
 0x3ae   :  { %v6768_v30 = vpop.f32.mrf.mxu1  ;;  %6943 = vmatprep.subr.bf16.mxu0 %v7480_v12 }
 0x3af   :  { %v2026_v32 = vadd.f32 %v6768_v30, %v8070_v11  ;;  %6841 = vmatprep.mubr.bf16.mxu0 %v2135_v28  ;;  %v2101_v38 = vmax.f32 %v2015_v31, 0.0  ;;  %v7482_v28 = vld [vmem:[#allocation2 + $0x140] sm:$0xff]  }
 0x3b0   :  { %v2017_v34 = vpop.f32.mrf.mxu1  ;;  %6842 = vmatmul.mubr.bf16.gmra.mxu0 %v2136_v29 }
 0x3b1   :  { %v2018_v35 = vadd.f32 %v8070_v11, %v2017_v34  ;;  %v2104_v36 = vmax.f32 %v2026_v32, 0.0  ;;  %6944 = vmatpush3.bf16.msra.mxu0 %v7480_v12 }
 0x3b2   :  { %v6771_v37 = vpop.f32.mrf.mxu1  ;;  %6945 = vmatprep.subr.bf16.mxu0 %v7481_v20 }
 0x3b3   :  { %v2102_v39 = vmax.f32 %v2018_v35, 0.0  ;;  %v2138_v43 = vpack.c.bf16 %v2104_v36, %v2103_v40  ;;  %v2039_v47 = vadd.f32 %v6771_v37, %v8070_v11 }
 0x3b4   :  { %v2030_v41 = vpop.f32.mrf.mxu1 }
 0x3b5   :  { %v2137_v42 = vpack.c.bf16 %v2102_v39, %v2101_v38  ;;  %v2031_v45 = vadd.f32 %v8070_v11, %v2030_v41  ;;  %v2107_v53 = vmax.f32 %v2039_v47, 0.0  ;;  %6946 = vmatpush3.bf16.msra.mxu0 %v7481_v20 }
 0x3b6   :  { %v6772_v44 = vpop.f32.mrf.mxu1  ;;  %6947 = vmatprep.subr.bf16.mxu0 %v7482_v28 }
 0x3b7   :  { %v2042_v46 = vadd.f32 %v6772_v44, %v8070_v11  ;;  %6845 = vmatprep.mubr.bf16.mxu0 %v2137_v42  ;;  %v2105_v51 = vmax.f32 %v2031_v45, 0.0 }
 0x3b8   :  { %v2033_v48 = vpop.f32.mrf.mxu1  ;;  %6846 = vmatmul.mubr.bf16.gmra.mxu0 %v2138_v43 }
 0x3b9   :  { %v2034_v49 = vadd.f32 %v8070_v11, %v2033_v48  ;;  %v2108_v50 = vmax.f32 %v2042_v46, 0.0  ;;  %v8139_v11 = vld [vmem:[%s8694_s3 + $0x4] ss:$0 sm:$0xff]  ;;  %6948 = vmatpush3.bf16.msra.mxu0 %v7482_v28 }
 0x3bb   :  { %v2106_v52 = vmax.f32 %v2034_v49, 0.0  ;;  %v2140_v55 = vpack.c.bf16 %v2108_v50, %v2107_v53 }
 0x3bd   :  { %v2139_v54 = vpack.c.bf16 %v2106_v52, %v2105_v51 }
 0x3bf   :  { %6849 = vmatprep.mubr.bf16.mxu0 %v2139_v54 }
 0x3c0   :  { %6850 = vmatmul.mubr.bf16.gmra.mxu0 %v2140_v55 }
 0x408   :  { %v6791_v59 = vpop.f32.mrf.mxu0 }
 0x409   :  { %v2254_v0 = vadd.f32 %v6791_v59, %v8139_v11 }
 0x40a   :  { %v2245_v60 = vpop.f32.mrf.mxu0 }
 0x40b   :  { %v2246_v62 = vadd.f32 %v8139_v11, %v2245_v60  ;;  %v2502_v9 = vmax.f32 %v2254_v0, 0.0 }
 0x40c   :  { %v6792_v61 = vpop.f32.mrf.mxu0 }
 0x40d   :  { %v2257_v63 = vadd.f32 %v6792_v61, %v8139_v11  ;;  %v2500_v7 = vmax.f32 %v2246_v62, 0.0 }
 0x40e   :  { %v2248_v1 = vpop.f32.mrf.mxu0 }
 0x40f   :  { %v2249_v4 = vadd.f32 %v8139_v11, %v2248_v1  ;;  %v2503_v5 = vmax.f32 %v2257_v63, 0.0 }
 0x410   :  { %v6795_v6 = vpop.f32.mrf.mxu0 }
 0x411   :  { %v2501_v8 = vmax.f32 %v2249_v4, 0.0  ;;  %v2565_v14 = vpack.c.bf16 %v2503_v5, %v2502_v9  ;;  %v2270_v18 = vadd.f32 %v6795_v6, %v8139_v11 }
 0x412   :  { %v2261_v10 = vpop.f32.mrf.mxu0 }
 0x413   :  { %v2564_v13 = vpack.c.bf16 %v2501_v8, %v2500_v7  ;;  %v2262_v16 = vadd.f32 %v8139_v11, %v2261_v10  ;;  %v2506_v26 = vmax.f32 %v2270_v18, 0.0 }
 0x414   :  { %v6796_v15 = vpop.f32.mrf.mxu0 }
 0x415   :  { %v2273_v17 = vadd.f32 %v6796_v15, %v8139_v11  ;;  %6869 = vmatprep.mubr.bf16.mxu1 %v2564_v13  ;;  %v2504_v24 = vmax.f32 %v2262_v16, 0.0 }
 0x416   :  { %v2264_v19 = vpop.f32.mrf.mxu0  ;;  %6870 = vmatmul.mubr.bf16.vlgmr.msra.gmra.mxu1 %v2565_v14 }
 0x417   :  { %v2265_v21 = vadd.f32 %v8139_v11, %v2264_v19  ;;  %v2507_v22 = vmax.f32 %v2273_v17, 0.0 }
 0x418   :  { %v6799_v23 = vpop.f32.mrf.mxu0 }
 0x419   :  { %v2505_v25 = vmax.f32 %v2265_v21, 0.0  ;;  %v2567_v30 = vpack.c.bf16 %v2507_v22, %v2506_v26  ;;  %v2286_v34 = vadd.f32 %v6799_v23, %v8139_v11 }
 0x41a   :  { %v2277_v27 = vpop.f32.mrf.mxu0 }
 0x41b   :  { %v2566_v29 = vpack.c.bf16 %v2505_v25, %v2504_v24  ;;  %v2278_v32 = vadd.f32 %v8139_v11, %v2277_v27  ;;  %v2510_v41 = vmax.f32 %v2286_v34, 0.0 }
 0x41c   :  { %v6800_v31 = vpop.f32.mrf.mxu0 }
 0x41d   :  { %v2289_v33 = vadd.f32 %v6800_v31, %v8139_v11  ;;  %6873 = vmatprep.mubr.bf16.mxu1 %v2566_v29  ;;  %v2508_v39 = vmax.f32 %v2278_v32, 0.0 }
 0x41e   :  { %v2280_v35 = vpop.f32.mrf.mxu0  ;;  %6874 = vmatmul.mubr.bf16.gmra.mxu1 %v2567_v30 }
 0x41f   :  { %v2281_v36 = vadd.f32 %v8139_v11, %v2280_v35  ;;  %v2511_v37 = vmax.f32 %v2289_v33, 0.0 }
 0x420   :  { %v6803_v38 = vpop.f32.mrf.mxu0 }
 0x421   :  { %v2509_v40 = vmax.f32 %v2281_v36, 0.0  ;;  %v2569_v44 = vpack.c.bf16 %v2511_v37, %v2510_v41  ;;  %v2302_v48 = vadd.f32 %v6803_v38, %v8139_v11 }
 0x422   :  { %v2293_v42 = vpop.f32.mrf.mxu0 }
 0x423   :  { %v2568_v43 = vpack.c.bf16 %v2509_v40, %v2508_v39  ;;  %v2294_v46 = vadd.f32 %v8139_v11, %v2293_v42  ;;  %v2514_v55 = vmax.f32 %v2302_v48, 0.0 }
 0x424   :  { %v6804_v45 = vpop.f32.mrf.mxu0 }
 0x425   :  { %v2305_v47 = vadd.f32 %v6804_v45, %v8139_v11  ;;  %6877 = vmatprep.mubr.bf16.mxu1 %v2568_v43  ;;  %v2512_v53 = vmax.f32 %v2294_v46, 0.0 }
 0x426   :  { %v2296_v49 = vpop.f32.mrf.mxu0  ;;  %6878 = vmatmul.mubr.bf16.gmra.mxu1 %v2569_v44 }
 0x427   :  { %v2297_v50 = vadd.f32 %v8139_v11, %v2296_v49  ;;  %v2515_v51 = vmax.f32 %v2305_v47, 0.0 }
 0x428   :  { %v6807_v52 = vpop.f32.mrf.mxu0 }
 0x429   :  { %v2513_v54 = vmax.f32 %v2297_v50, 0.0  ;;  %v2571_v58 = vpack.c.bf16 %v2515_v51, %v2514_v55  ;;  %v2318_v62 = vadd.f32 %v6807_v52, %v8139_v11 }
 0x42a   :  { %v2309_v56 = vpop.f32.mrf.mxu0 }
 0x42b   :  { %v2570_v57 = vpack.c.bf16 %v2513_v54, %v2512_v53  ;;  %v2310_v60 = vadd.f32 %v8139_v11, %v2309_v56  ;;  %v2518_v5 = vmax.f32 %v2318_v62, 0.0 }
 0x42c   :  { %v6808_v59 = vpop.f32.mrf.mxu0 }
 0x42d   :  { %v2321_v61 = vadd.f32 %v6808_v59, %v8139_v11  ;;  %6881 = vmatprep.mubr.bf16.mxu1 %v2570_v57  ;;  %v2516_v3 = vmax.f32 %v2310_v60, 0.0 }
 0x42e   :  { %v2312_v63 = vpop.f32.mrf.mxu0  ;;  %6882 = vmatmul.mubr.bf16.gmra.mxu1 %v2571_v58 }
 0x42f   :  { %v2313_v0 = vadd.f32 %v8139_v11, %v2312_v63  ;;  %v2519_v1 = vmax.f32 %v2321_v61, 0.0 }
 0x430   :  { %v6811_v2 = vpop.f32.mrf.mxu0 }
 0x431   :  { %v2517_v4 = vmax.f32 %v2313_v0, 0.0  ;;  %v2573_v8 = vpack.c.bf16 %v2519_v1, %v2518_v5  ;;  %v2334_v13 = vadd.f32 %v6811_v2, %v8139_v11 }
 0x432   :  { %v2325_v6 = vpop.f32.mrf.mxu0 }
 0x433   :  { %v2572_v7 = vpack.c.bf16 %v2517_v4, %v2516_v3  ;;  %v2326_v10 = vadd.f32 %v8139_v11, %v2325_v6  ;;  %v2522_v20 = vmax.f32 %v2334_v13, 0.0 }
 0x434   :  { %v6812_v9 = vpop.f32.mrf.mxu0 }
 0x435   :  { %v2337_v12 = vadd.f32 %v6812_v9, %v8139_v11  ;;  %6885 = vmatprep.mubr.bf16.mxu1 %v2572_v7  ;;  %v2520_v18 = vmax.f32 %v2326_v10, 0.0 }
 0x436   :  { %v2328_v14 = vpop.f32.mrf.mxu0  ;;  %6886 = vmatmul.mubr.bf16.gmra.mxu1 %v2573_v8 }
 0x437   :  { %v2329_v15 = vadd.f32 %v8139_v11, %v2328_v14  ;;  %v2523_v16 = vmax.f32 %v2337_v12, 0.0 }
 0x438   :  { %v6815_v17 = vpop.f32.mrf.mxu0 }
 0x439   :  { %v2521_v19 = vmax.f32 %v2329_v15, 0.0  ;;  %v2575_v23 = vpack.c.bf16 %v2523_v16, %v2522_v20  ;;  %v2350_v27 = vadd.f32 %v6815_v17, %v8139_v11 }
 0x43a   :  { %v2341_v21 = vpop.f32.mrf.mxu0 }
 0x43b   :  { %v2574_v22 = vpack.c.bf16 %v2521_v19, %v2520_v18  ;;  %v2342_v25 = vadd.f32 %v8139_v11, %v2341_v21  ;;  %v2526_v34 = vmax.f32 %v2350_v27, 0.0 }
 0x43c   :  { %v6816_v24 = vpop.f32.mrf.mxu0 }
 0x43d   :  { %v2353_v26 = vadd.f32 %v6816_v24, %v8139_v11  ;;  %6889 = vmatprep.mubr.bf16.mxu1 %v2574_v22  ;;  %v2524_v32 = vmax.f32 %v2342_v25, 0.0 }
 0x43e   :  { %v2344_v28 = vpop.f32.mrf.mxu0  ;;  %6890 = vmatmul.mubr.bf16.gmra.mxu1 %v2575_v23 }
 0x43f   :  { %v2345_v29 = vadd.f32 %v8139_v11, %v2344_v28  ;;  %v2527_v30 = vmax.f32 %v2353_v26, 0.0 }
 0x440   :  { %v6819_v31 = vpop.f32.mrf.mxu0 }
 0x441   :  { %v2525_v33 = vmax.f32 %v2345_v29, 0.0  ;;  %v2577_v37 = vpack.c.bf16 %v2527_v30, %v2526_v34  ;;  %v2366_v41 = vadd.f32 %v6819_v31, %v8139_v11 }
 0x442   :  { %v2357_v35 = vpop.f32.mrf.mxu0 }
 0x443   :  { %v2576_v36 = vpack.c.bf16 %v2525_v33, %v2524_v32  ;;  %v2358_v39 = vadd.f32 %v8139_v11, %v2357_v35  ;;  %v2530_v48 = vmax.f32 %v2366_v41, 0.0 }
 0x444   :  { %v6820_v38 = vpop.f32.mrf.mxu0 }
 0x445   :  { %v2369_v40 = vadd.f32 %v6820_v38, %v8139_v11  ;;  %6893 = vmatprep.mubr.bf16.mxu1 %v2576_v36  ;;  %v2528_v46 = vmax.f32 %v2358_v39, 0.0 }
 0x446   :  { %v2360_v42 = vpop.f32.mrf.mxu0  ;;  %6894 = vmatmul.mubr.bf16.gmra.mxu1 %v2577_v37 }
 0x447   :  { %v2361_v43 = vadd.f32 %v8139_v11, %v2360_v42  ;;  %v2531_v44 = vmax.f32 %v2369_v40, 0.0 }
 0x448   :  { %v6823_v45 = vpop.f32.mrf.mxu0 }
 0x449   :  { %v2529_v47 = vmax.f32 %v2361_v43, 0.0  ;;  %v2579_v51 = vpack.c.bf16 %v2531_v44, %v2530_v48  ;;  %v2382_v55 = vadd.f32 %v6823_v45, %v8139_v11 }
 0x44a   :  { %v2373_v49 = vpop.f32.mrf.mxu0 }
 0x44b   :  { %v2578_v50 = vpack.c.bf16 %v2529_v47, %v2528_v46  ;;  %v2374_v53 = vadd.f32 %v8139_v11, %v2373_v49  ;;  %v2534_v62 = vmax.f32 %v2382_v55, 0.0 }
 0x44c   :  { %v6824_v52 = vpop.f32.mrf.mxu0 }
 0x44d   :  { %v2385_v54 = vadd.f32 %v6824_v52, %v8139_v11  ;;  %6897 = vmatprep.mubr.bf16.mxu1 %v2578_v50  ;;  %v2532_v60 = vmax.f32 %v2374_v53, 0.0 }
 0x44e   :  { %v2376_v56 = vpop.f32.mrf.mxu0  ;;  %6898 = vmatmul.mubr.bf16.gmra.mxu1 %v2579_v51 }
 0x44f   :  { %v2377_v57 = vadd.f32 %v8139_v11, %v2376_v56  ;;  %v2535_v58 = vmax.f32 %v2385_v54, 0.0 }
 0x450   :  { %v6827_v59 = vpop.f32.mrf.mxu0 }
 0x451   :  { %v2533_v61 = vmax.f32 %v2377_v57, 0.0  ;;  %v2581_v1 = vpack.c.bf16 %v2535_v58, %v2534_v62  ;;  %v2398_v5 = vadd.f32 %v6827_v59, %v8139_v11 }
 0x452   :  { %v2389_v63 = vpop.f32.mrf.mxu0 }
 0x453   :  { %v2580_v0 = vpack.c.bf16 %v2533_v61, %v2532_v60  ;;  %v2390_v3 = vadd.f32 %v8139_v11, %v2389_v63  ;;  %v2538_v13 = vmax.f32 %v2398_v5, 0.0 }
 0x454   :  { %v6828_v2 = vpop.f32.mrf.mxu0 }
 0x455   :  { %v2401_v4 = vadd.f32 %v6828_v2, %v8139_v11  ;;  %6901 = vmatprep.mubr.bf16.mxu1 %v2580_v0  ;;  %v2536_v10 = vmax.f32 %v2390_v3, 0.0 }
 0x456   :  { %v2392_v6 = vpop.f32.mrf.mxu0  ;;  %6902 = vmatmul.mubr.bf16.gmra.mxu1 %v2581_v1 }
 0x457   :  { %v2393_v7 = vadd.f32 %v8139_v11, %v2392_v6  ;;  %v2539_v8 = vmax.f32 %v2401_v4, 0.0 }
 0x458   :  { %v6831_v9 = vpop.f32.mrf.mxu0 }
 0x459   :  { %v2537_v12 = vmax.f32 %v2393_v7, 0.0  ;;  %v2583_v16 = vpack.c.bf16 %v2539_v8, %v2538_v13  ;;  %v2414_v20 = vadd.f32 %v6831_v9, %v8139_v11 }
 0x45a   :  { %v2405_v14 = vpop.f32.mrf.mxu0 }
 0x45b   :  { %v2582_v15 = vpack.c.bf16 %v2537_v12, %v2536_v10  ;;  %v2406_v18 = vadd.f32 %v8139_v11, %v2405_v14  ;;  %v2542_v27 = vmax.f32 %v2414_v20, 0.0 }
 0x45c   :  { %v6832_v17 = vpop.f32.mrf.mxu0 }
 0x45d   :  { %v2417_v19 = vadd.f32 %v6832_v17, %v8139_v11  ;;  %6905 = vmatprep.mubr.bf16.mxu1 %v2582_v15  ;;  %v2540_v25 = vmax.f32 %v2406_v18, 0.0 }
 0x45e   :  { %v2408_v21 = vpop.f32.mrf.mxu0  ;;  %6906 = vmatmul.mubr.bf16.gmra.mxu1 %v2583_v16 }
 0x45f   :  { %v2409_v22 = vadd.f32 %v8139_v11, %v2408_v21  ;;  %v2543_v23 = vmax.f32 %v2417_v19, 0.0 }
 0x460   :  { %v6835_v24 = vpop.f32.mrf.mxu0 }
 0x461   :  { %v2541_v26 = vmax.f32 %v2409_v22, 0.0  ;;  %v2585_v30 = vpack.c.bf16 %v2543_v23, %v2542_v27  ;;  %v2430_v34 = vadd.f32 %v6835_v24, %v8139_v11 }
 0x462   :  { %v2421_v28 = vpop.f32.mrf.mxu0 }
 0x463   :  { %v2584_v29 = vpack.c.bf16 %v2541_v26, %v2540_v25  ;;  %v2422_v32 = vadd.f32 %v8139_v11, %v2421_v28  ;;  %v2546_v41 = vmax.f32 %v2430_v34, 0.0 }
 0x464   :  { %v6836_v31 = vpop.f32.mrf.mxu0 }
 0x465   :  { %v2433_v33 = vadd.f32 %v6836_v31, %v8139_v11  ;;  %6909 = vmatprep.mubr.bf16.mxu1 %v2584_v29  ;;  %v2544_v39 = vmax.f32 %v2422_v32, 0.0 }
 0x466   :  { %v2424_v35 = vpop.f32.mrf.mxu0  ;;  %6910 = vmatmul.mubr.bf16.gmra.mxu1 %v2585_v30 }
 0x467   :  { %v2425_v36 = vadd.f32 %v8139_v11, %v2424_v35  ;;  %v2547_v37 = vmax.f32 %v2433_v33, 0.0 }
 0x468   :  { %v6839_v38 = vpop.f32.mrf.mxu0 }
 0x469   :  { %v2545_v40 = vmax.f32 %v2425_v36, 0.0  ;;  %v2587_v44 = vpack.c.bf16 %v2547_v37, %v2546_v41  ;;  %v2446_v48 = vadd.f32 %v6839_v38, %v8139_v11  ;;  %v7483_v36 = vld [vmem:[#allocation2 + $0x1b8] sm:$0xff]   ;;  %v7484_v37 = vld [vmem:[#allocation2 + $0x1b0] sm:$0xff]   ;;  %v7485_v38 = vld [vmem:[#allocation2 + $0x1a8] sm:$0xff]  }
 0x46a   :  { %v2437_v42 = vpop.f32.mrf.mxu0  ;;  %7013 = vmatprep.subr.bf16.mxu1 %v7483_v36 }
 0x46b   :  { %v2586_v43 = vpack.c.bf16 %v2545_v40, %v2544_v39  ;;  %v2438_v46 = vadd.f32 %v8139_v11, %v2437_v42  ;;  %v2550_v55 = vmax.f32 %v2446_v48, 0.0  ;;  %7014 = vmatpush3.bf16.msra.mxu1 %v7483_v36 }
 0x46c   :  { %v6840_v45 = vpop.f32.mrf.mxu0  ;;  %7015 = vmatprep.subr.bf16.mxu1 %v7484_v37 }
 0x46d   :  { %v2449_v47 = vadd.f32 %v6840_v45, %v8139_v11  ;;  %6913 = vmatprep.mubr.bf16.mxu1 %v2586_v43  ;;  %v2548_v53 = vmax.f32 %v2438_v46, 0.0  ;;  %v7486_v46 = vld [vmem:[#allocation2 + $0x1a0] sm:$0xff]  }
 0x46e   :  { %v2440_v49 = vpop.f32.mrf.mxu0  ;;  %6914 = vmatmul.mubr.bf16.gmra.mxu1 %v2587_v44 }
 0x46f   :  { %v2441_v50 = vadd.f32 %v8139_v11, %v2440_v49  ;;  %v2551_v51 = vmax.f32 %v2449_v47, 0.0  ;;  %7016 = vmatpush3.bf16.msra.mxu1 %v7484_v37  ;;  %v7487_v47 = vld [vmem:[#allocation2 + $0x198] sm:$0xff]  }
 0x470   :  { %v6843_v52 = vpop.f32.mrf.mxu0  ;;  %7017 = vmatprep.subr.bf16.mxu1 %v7485_v38 }
 0x471   :  { %v2549_v54 = vmax.f32 %v2441_v50, 0.0  ;;  %v2589_v58 = vpack.c.bf16 %v2551_v51, %v2550_v55  ;;  %v2462_v62 = vadd.f32 %v6843_v52, %v8139_v11  ;;  %v7488_v55 = vld [vmem:[#allocation2 + $0x190] sm:$0xff]  }
 0x472   :  { %v2453_v56 = vpop.f32.mrf.mxu0 }
 0x473   :  { %v2588_v57 = vpack.c.bf16 %v2549_v54, %v2548_v53  ;;  %v2454_v60 = vadd.f32 %v8139_v11, %v2453_v56  ;;  %v2554_v5 = vmax.f32 %v2462_v62, 0.0  ;;  %7018 = vmatpush3.bf16.msra.mxu1 %v7485_v38 }
 0x474   :  { %v6844_v59 = vpop.f32.mrf.mxu0  ;;  %7019 = vmatprep.subr.bf16.mxu1 %v7486_v46 }
 0x475   :  { %v2465_v61 = vadd.f32 %v6844_v59, %v8139_v11  ;;  %6917 = vmatprep.mubr.bf16.mxu1 %v2588_v57  ;;  %v2552_v3 = vmax.f32 %v2454_v60, 0.0 }
 0x476   :  { %v2456_v63 = vpop.f32.mrf.mxu0  ;;  %6918 = vmatmul.mubr.bf16.gmra.mxu1 %v2589_v58 }
 0x477   :  { %v2457_v0 = vadd.f32 %v8139_v11, %v2456_v63  ;;  %v2555_v1 = vmax.f32 %v2465_v61, 0.0  ;;  %7020 = vmatpush3.bf16.msra.mxu1 %v7486_v46  ;;  %v7489_v63 = vld [vmem:[#allocation2 + $0x188] sm:$0xff]  }
 0x478   :  { %v6847_v2 = vpop.f32.mrf.mxu0  ;;  %7021 = vmatprep.subr.bf16.mxu1 %v7487_v47 }
 0x479   :  { %v2553_v4 = vmax.f32 %v2457_v0, 0.0  ;;  %v2591_v8 = vpack.c.bf16 %v2555_v1, %v2554_v5  ;;  %v2478_v13 = vadd.f32 %v6847_v2, %v8139_v11 }
 0x47a   :  { %v2469_v6 = vpop.f32.mrf.mxu0 }
 0x47b   :  { %v2590_v7 = vpack.c.bf16 %v2553_v4, %v2552_v3  ;;  %v2470_v10 = vadd.f32 %v8139_v11, %v2469_v6  ;;  %v2558_v20 = vmax.f32 %v2478_v13, 0.0  ;;  %7022 = vmatpush3.bf16.msra.mxu1 %v7487_v47 }
 0x47c   :  { %v6848_v9 = vpop.f32.mrf.mxu0  ;;  %7023 = vmatprep.subr.bf16.mxu1 %v7488_v55 }
 0x47d   :  { %v2481_v12 = vadd.f32 %v6848_v9, %v8139_v11  ;;  %6921 = vmatprep.mubr.bf16.mxu1 %v2590_v7  ;;  %v2556_v18 = vmax.f32 %v2470_v10, 0.0  ;;  %v7490_v7 = vld [vmem:[#allocation2 + $0x180] sm:$0xff]  }
 0x47e   :  { %v2472_v14 = vpop.f32.mrf.mxu0  ;;  %6922 = vmatmul.mubr.bf16.gmra.mxu1 %v2591_v8 }
 0x47f   :  { %v2473_v15 = vadd.f32 %v8139_v11, %v2472_v14  ;;  %v2559_v16 = vmax.f32 %v2481_v12, 0.0  ;;  %7024 = vmatpush3.bf16.msra.mxu1 %v7488_v55 }
 0x480   :  { %v6851_v17 = vpop.f32.mrf.mxu0  ;;  %7025 = vmatprep.subr.bf16.mxu1 %v7489_v63 }
 0x481   :  { %v2557_v19 = vmax.f32 %v2473_v15, 0.0  ;;  %v2593_v23 = vpack.c.bf16 %v2559_v16, %v2558_v20  ;;  %v2494_v27 = vadd.f32 %v6851_v17, %v8139_v11 }
 0x482   :  { %v2485_v21 = vpop.f32.mrf.mxu0 }
 0x483   :  { %v2592_v22 = vpack.c.bf16 %v2557_v19, %v2556_v18  ;;  %v2486_v25 = vadd.f32 %v8139_v11, %v2485_v21  ;;  %v2562_v33 = vmax.f32 %v2494_v27, 0.0  ;;  %7026 = vmatpush3.bf16.msra.mxu1 %v7489_v63 }
 0x484   :  { %v6852_v24 = vpop.f32.mrf.mxu0  ;;  %7027 = vmatprep.subr.bf16.mxu1 %v7490_v7 }
 0x485   :  { %v2497_v26 = vadd.f32 %v6852_v24, %v8139_v11  ;;  %6925 = vmatprep.mubr.bf16.mxu1 %v2592_v22  ;;  %v2560_v31 = vmax.f32 %v2486_v25, 0.0 }
 0x486   :  { %v2488_v28 = vpop.f32.mrf.mxu0  ;;  %6926 = vmatmul.mubr.bf16.gmra.mxu1 %v2593_v23 }
 0x487   :  { %v2489_v29 = vadd.f32 %v8139_v11, %v2488_v28  ;;  %v2563_v30 = vmax.f32 %v2497_v26, 0.0  ;;  %v8208_v11 = vld [vmem:[%s8694_s3 + $0x5] ss:$0 sm:$0xff]  ;;  %7028 = vmatpush3.bf16.msra.mxu1 %v7490_v7 }
 0x489   :  { %v2561_v32 = vmax.f32 %v2489_v29, 0.0  ;;  %v2595_v35 = vpack.c.bf16 %v2563_v30, %v2562_v33 }
 0x48b   :  { %v2594_v34 = vpack.c.bf16 %v2561_v32, %v2560_v31 }
 0x48d   :  { %6929 = vmatprep.mubr.bf16.mxu1 %v2594_v34 }
 0x48e   :  { %6930 = vmatmul.mubr.bf16.gmra.mxu1 %v2595_v35 }
 0x4d6   :  { %v6871_v39 = vpop.f32.mrf.mxu1 }
 0x4d7   :  { %v2709_v44 = vadd.f32 %v6871_v39, %v8208_v11 }
 0x4d8   :  { %v2700_v40 = vpop.f32.mrf.mxu1 }
 0x4d9   :  { %v2701_v42 = vadd.f32 %v8208_v11, %v2700_v40  ;;  %v2957_v53 = vmax.f32 %v2709_v44, 0.0 }
 0x4da   :  { %v6872_v41 = vpop.f32.mrf.mxu1 }
 0x4db   :  { %v2712_v43 = vadd.f32 %v6872_v41, %v8208_v11  ;;  %v2955_v51 = vmax.f32 %v2701_v42, 0.0 }
 0x4dc   :  { %v2703_v45 = vpop.f32.mrf.mxu1 }
 0x4dd   :  { %v2704_v48 = vadd.f32 %v8208_v11, %v2703_v45  ;;  %v2958_v49 = vmax.f32 %v2712_v43, 0.0 }
 0x4de   :  { %v6875_v50 = vpop.f32.mrf.mxu1 }
 0x4df   :  { %v2956_v52 = vmax.f32 %v2704_v48, 0.0  ;;  %v3020_v57 = vpack.c.bf16 %v2958_v49, %v2957_v53  ;;  %v2725_v61 = vadd.f32 %v6875_v50, %v8208_v11 }
 0x4e0   :  { %v2716_v54 = vpop.f32.mrf.mxu1 }
 0x4e1   :  { %v3019_v56 = vpack.c.bf16 %v2956_v52, %v2955_v51  ;;  %v2717_v59 = vadd.f32 %v8208_v11, %v2716_v54  ;;  %v2961_v5 = vmax.f32 %v2725_v61, 0.0 }
 0x4e2   :  { %v6876_v58 = vpop.f32.mrf.mxu1 }
 0x4e3   :  { %v2728_v60 = vadd.f32 %v6876_v58, %v8208_v11  ;;  %6949 = vmatprep.mubr.bf16.mxu0 %v3019_v56  ;;  %v2959_v3 = vmax.f32 %v2717_v59, 0.0 }
 0x4e4   :  { %v2719_v62 = vpop.f32.mrf.mxu1  ;;  %6950 = vmatmul.mubr.bf16.vlgmr.msra.gmra.mxu0 %v3020_v57 }
 0x4e5   :  { %v2720_v0 = vadd.f32 %v8208_v11, %v2719_v62  ;;  %v2962_v1 = vmax.f32 %v2728_v60, 0.0 }
 0x4e6   :  { %v6879_v2 = vpop.f32.mrf.mxu1 }
 0x4e7   :  { %v2960_v4 = vmax.f32 %v2720_v0, 0.0  ;;  %v3022_v9 = vpack.c.bf16 %v2962_v1, %v2961_v5  ;;  %v2741_v14 = vadd.f32 %v6879_v2, %v8208_v11 }
 0x4e8   :  { %v2732_v6 = vpop.f32.mrf.mxu1 }
 0x4e9   :  { %v3021_v8 = vpack.c.bf16 %v2960_v4, %v2959_v3  ;;  %v2733_v12 = vadd.f32 %v8208_v11, %v2732_v6  ;;  %v2965_v21 = vmax.f32 %v2741_v14, 0.0 }
 0x4ea   :  { %v6880_v10 = vpop.f32.mrf.mxu1 }
 0x4eb   :  { %v2744_v13 = vadd.f32 %v6880_v10, %v8208_v11  ;;  %6953 = vmatprep.mubr.bf16.mxu0 %v3021_v8  ;;  %v2963_v19 = vmax.f32 %v2733_v12, 0.0 }
 0x4ec   :  { %v2735_v15 = vpop.f32.mrf.mxu1  ;;  %6954 = vmatmul.mubr.bf16.gmra.mxu0 %v3022_v9 }
 0x4ed   :  { %v2736_v16 = vadd.f32 %v8208_v11, %v2735_v15  ;;  %v2966_v17 = vmax.f32 %v2744_v13, 0.0 }
 0x4ee   :  { %v6883_v18 = vpop.f32.mrf.mxu1 }
 0x4ef   :  { %v2964_v20 = vmax.f32 %v2736_v16, 0.0  ;;  %v3024_v24 = vpack.c.bf16 %v2966_v17, %v2965_v21  ;;  %v2757_v28 = vadd.f32 %v6883_v18, %v8208_v11 }
 0x4f0   :  { %v2748_v22 = vpop.f32.mrf.mxu1 }
 0x4f1   :  { %v3023_v23 = vpack.c.bf16 %v2964_v20, %v2963_v19  ;;  %v2749_v26 = vadd.f32 %v8208_v11, %v2748_v22  ;;  %v2969_v35 = vmax.f32 %v2757_v28, 0.0 }
 0x4f2   :  { %v6884_v25 = vpop.f32.mrf.mxu1 }
 0x4f3   :  { %v2760_v27 = vadd.f32 %v6884_v25, %v8208_v11  ;;  %6957 = vmatprep.mubr.bf16.mxu0 %v3023_v23  ;;  %v2967_v33 = vmax.f32 %v2749_v26, 0.0 }
 0x4f4   :  { %v2751_v29 = vpop.f32.mrf.mxu1  ;;  %6958 = vmatmul.mubr.bf16.gmra.mxu0 %v3024_v24 }
 0x4f5   :  { %v2752_v30 = vadd.f32 %v8208_v11, %v2751_v29  ;;  %v2970_v31 = vmax.f32 %v2760_v27, 0.0 }
 0x4f6   :  { %v6887_v32 = vpop.f32.mrf.mxu1 }
 0x4f7   :  { %v2968_v34 = vmax.f32 %v2752_v30, 0.0  ;;  %v3026_v38 = vpack.c.bf16 %v2970_v31, %v2969_v35  ;;  %v2773_v42 = vadd.f32 %v6887_v32, %v8208_v11 }
 0x4f8   :  { %v2764_v36 = vpop.f32.mrf.mxu1 }
 0x4f9   :  { %v3025_v37 = vpack.c.bf16 %v2968_v34, %v2967_v33  ;;  %v2765_v40 = vadd.f32 %v8208_v11, %v2764_v36  ;;  %v2973_v49 = vmax.f32 %v2773_v42, 0.0 }
 0x4fa   :  { %v6888_v39 = vpop.f32.mrf.mxu1 }
 0x4fb   :  { %v2776_v41 = vadd.f32 %v6888_v39, %v8208_v11  ;;  %6961 = vmatprep.mubr.bf16.mxu0 %v3025_v37  ;;  %v2971_v47 = vmax.f32 %v2765_v40, 0.0 }
 0x4fc   :  { %v2767_v43 = vpop.f32.mrf.mxu1  ;;  %6962 = vmatmul.mubr.bf16.gmra.mxu0 %v3026_v38 }
 0x4fd   :  { %v2768_v44 = vadd.f32 %v8208_v11, %v2767_v43  ;;  %v2974_v45 = vmax.f32 %v2776_v41, 0.0 }
 0x4fe   :  { %v6891_v46 = vpop.f32.mrf.mxu1 }
 0x4ff   :  { %v2972_v48 = vmax.f32 %v2768_v44, 0.0  ;;  %v3028_v52 = vpack.c.bf16 %v2974_v45, %v2973_v49  ;;  %v2789_v56 = vadd.f32 %v6891_v46, %v8208_v11 }
 0x500   :  { %v2780_v50 = vpop.f32.mrf.mxu1 }
 0x501   :  { %v3027_v51 = vpack.c.bf16 %v2972_v48, %v2971_v47  ;;  %v2781_v54 = vadd.f32 %v8208_v11, %v2780_v50  ;;  %v2977_v63 = vmax.f32 %v2789_v56, 0.0 }
 0x502   :  { %v6892_v53 = vpop.f32.mrf.mxu1 }
 0x503   :  { %v2792_v55 = vadd.f32 %v6892_v53, %v8208_v11  ;;  %6965 = vmatprep.mubr.bf16.mxu0 %v3027_v51  ;;  %v2975_v61 = vmax.f32 %v2781_v54, 0.0 }
 0x504   :  { %v2783_v57 = vpop.f32.mrf.mxu1  ;;  %6966 = vmatmul.mubr.bf16.gmra.mxu0 %v3028_v52 }
 0x505   :  { %v2784_v58 = vadd.f32 %v8208_v11, %v2783_v57  ;;  %v2978_v59 = vmax.f32 %v2792_v55, 0.0 }
 0x506   :  { %v6895_v60 = vpop.f32.mrf.mxu1 }
 0x507   :  { %v2976_v62 = vmax.f32 %v2784_v58, 0.0  ;;  %v3030_v2 = vpack.c.bf16 %v2978_v59, %v2977_v63  ;;  %v2805_v6 = vadd.f32 %v6895_v60, %v8208_v11 }
 0x508   :  { %v2796_v0 = vpop.f32.mrf.mxu1 }
 0x509   :  { %v3029_v1 = vpack.c.bf16 %v2976_v62, %v2975_v61  ;;  %v2797_v4 = vadd.f32 %v8208_v11, %v2796_v0  ;;  %v2981_v14 = vmax.f32 %v2805_v6, 0.0 }
 0x50a   :  { %v6896_v3 = vpop.f32.mrf.mxu1 }
 0x50b   :  { %v2808_v5 = vadd.f32 %v6896_v3, %v8208_v11  ;;  %6969 = vmatprep.mubr.bf16.mxu0 %v3029_v1  ;;  %v2979_v12 = vmax.f32 %v2797_v4, 0.0 }
 0x50c   :  { %v2799_v7 = vpop.f32.mrf.mxu1  ;;  %6970 = vmatmul.mubr.bf16.gmra.mxu0 %v3030_v2 }
 0x50d   :  { %v2800_v8 = vadd.f32 %v8208_v11, %v2799_v7  ;;  %v2982_v9 = vmax.f32 %v2808_v5, 0.0 }
 0x50e   :  { %v6899_v10 = vpop.f32.mrf.mxu1 }
 0x50f   :  { %v2980_v13 = vmax.f32 %v2800_v8, 0.0  ;;  %v3032_v17 = vpack.c.bf16 %v2982_v9, %v2981_v14  ;;  %v2821_v21 = vadd.f32 %v6899_v10, %v8208_v11 }
 0x510   :  { %v2812_v15 = vpop.f32.mrf.mxu1 }
 0x511   :  { %v3031_v16 = vpack.c.bf16 %v2980_v13, %v2979_v12  ;;  %v2813_v19 = vadd.f32 %v8208_v11, %v2812_v15  ;;  %v2985_v28 = vmax.f32 %v2821_v21, 0.0 }
 0x512   :  { %v6900_v18 = vpop.f32.mrf.mxu1 }
 0x513   :  { %v2824_v20 = vadd.f32 %v6900_v18, %v8208_v11  ;;  %6973 = vmatprep.mubr.bf16.mxu0 %v3031_v16  ;;  %v2983_v26 = vmax.f32 %v2813_v19, 0.0 }
 0x514   :  { %v2815_v22 = vpop.f32.mrf.mxu1  ;;  %6974 = vmatmul.mubr.bf16.gmra.mxu0 %v3032_v17 }
 0x515   :  { %v2816_v23 = vadd.f32 %v8208_v11, %v2815_v22  ;;  %v2986_v24 = vmax.f32 %v2824_v20, 0.0 }
 0x516   :  { %v6903_v25 = vpop.f32.mrf.mxu1 }
 0x517   :  { %v2984_v27 = vmax.f32 %v2816_v23, 0.0  ;;  %v3034_v31 = vpack.c.bf16 %v2986_v24, %v2985_v28  ;;  %v2837_v35 = vadd.f32 %v6903_v25, %v8208_v11 }
 0x518   :  { %v2828_v29 = vpop.f32.mrf.mxu1 }
 0x519   :  { %v3033_v30 = vpack.c.bf16 %v2984_v27, %v2983_v26  ;;  %v2829_v33 = vadd.f32 %v8208_v11, %v2828_v29  ;;  %v2989_v42 = vmax.f32 %v2837_v35, 0.0 }
 0x51a   :  { %v6904_v32 = vpop.f32.mrf.mxu1 }
 0x51b   :  { %v2840_v34 = vadd.f32 %v6904_v32, %v8208_v11  ;;  %6977 = vmatprep.mubr.bf16.mxu0 %v3033_v30  ;;  %v2987_v40 = vmax.f32 %v2829_v33, 0.0 }
 0x51c   :  { %v2831_v36 = vpop.f32.mrf.mxu1  ;;  %6978 = vmatmul.mubr.bf16.gmra.mxu0 %v3034_v31 }
 0x51d   :  { %v2832_v37 = vadd.f32 %v8208_v11, %v2831_v36  ;;  %v2990_v38 = vmax.f32 %v2840_v34, 0.0 }
 0x51e   :  { %v6907_v39 = vpop.f32.mrf.mxu1 }
 0x51f   :  { %v2988_v41 = vmax.f32 %v2832_v37, 0.0  ;;  %v3036_v45 = vpack.c.bf16 %v2990_v38, %v2989_v42  ;;  %v2853_v49 = vadd.f32 %v6907_v39, %v8208_v11 }
 0x520   :  { %v2844_v43 = vpop.f32.mrf.mxu1 }
 0x521   :  { %v3035_v44 = vpack.c.bf16 %v2988_v41, %v2987_v40  ;;  %v2845_v47 = vadd.f32 %v8208_v11, %v2844_v43  ;;  %v2993_v56 = vmax.f32 %v2853_v49, 0.0 }
 0x522   :  { %v6908_v46 = vpop.f32.mrf.mxu1 }
 0x523   :  { %v2856_v48 = vadd.f32 %v6908_v46, %v8208_v11  ;;  %6981 = vmatprep.mubr.bf16.mxu0 %v3035_v44  ;;  %v2991_v54 = vmax.f32 %v2845_v47, 0.0 }
 0x524   :  { %v2847_v50 = vpop.f32.mrf.mxu1  ;;  %6982 = vmatmul.mubr.bf16.gmra.mxu0 %v3036_v45 }
 0x525   :  { %v2848_v51 = vadd.f32 %v8208_v11, %v2847_v50  ;;  %v2994_v52 = vmax.f32 %v2856_v48, 0.0 }
 0x526   :  { %v6911_v53 = vpop.f32.mrf.mxu1 }
 0x527   :  { %v2992_v55 = vmax.f32 %v2848_v51, 0.0  ;;  %v3038_v59 = vpack.c.bf16 %v2994_v52, %v2993_v56  ;;  %v2869_v63 = vadd.f32 %v6911_v53, %v8208_v11 }
 0x528   :  { %v2860_v57 = vpop.f32.mrf.mxu1 }
 0x529   :  { %v3037_v58 = vpack.c.bf16 %v2992_v55, %v2991_v54  ;;  %v2861_v61 = vadd.f32 %v8208_v11, %v2860_v57  ;;  %v2997_v6 = vmax.f32 %v2869_v63, 0.0 }
 0x52a   :  { %v6912_v60 = vpop.f32.mrf.mxu1 }
 0x52b   :  { %v2872_v62 = vadd.f32 %v6912_v60, %v8208_v11  ;;  %6985 = vmatprep.mubr.bf16.mxu0 %v3037_v58  ;;  %v2995_v4 = vmax.f32 %v2861_v61, 0.0 }
 0x52c   :  { %v2863_v0 = vpop.f32.mrf.mxu1  ;;  %6986 = vmatmul.mubr.bf16.gmra.mxu0 %v3038_v59 }
 0x52d   :  { %v2864_v1 = vadd.f32 %v8208_v11, %v2863_v0  ;;  %v2998_v2 = vmax.f32 %v2872_v62, 0.0 }
 0x52e   :  { %v6915_v3 = vpop.f32.mrf.mxu1 }
 0x52f   :  { %v2996_v5 = vmax.f32 %v2864_v1, 0.0  ;;  %v3040_v9 = vpack.c.bf16 %v2998_v2, %v2997_v6  ;;  %v2885_v14 = vadd.f32 %v6915_v3, %v8208_v11 }
 0x530   :  { %v2876_v7 = vpop.f32.mrf.mxu1 }
 0x531   :  { %v3039_v8 = vpack.c.bf16 %v2996_v5, %v2995_v4  ;;  %v2877_v12 = vadd.f32 %v8208_v11, %v2876_v7  ;;  %v3001_v21 = vmax.f32 %v2885_v14, 0.0 }
 0x532   :  { %v6916_v10 = vpop.f32.mrf.mxu1 }
 0x533   :  { %v2888_v13 = vadd.f32 %v6916_v10, %v8208_v11  ;;  %6989 = vmatprep.mubr.bf16.mxu0 %v3039_v8  ;;  %v2999_v19 = vmax.f32 %v2877_v12, 0.0 }
 0x534   :  { %v2879_v15 = vpop.f32.mrf.mxu1  ;;  %6990 = vmatmul.mubr.bf16.gmra.mxu0 %v3040_v9 }
 0x535   :  { %v2880_v16 = vadd.f32 %v8208_v11, %v2879_v15  ;;  %v3002_v17 = vmax.f32 %v2888_v13, 0.0 }
 0x536   :  { %v6919_v18 = vpop.f32.mrf.mxu1 }
 0x537   :  { %v3000_v20 = vmax.f32 %v2880_v16, 0.0  ;;  %v3042_v24 = vpack.c.bf16 %v3002_v17, %v3001_v21  ;;  %v2901_v28 = vadd.f32 %v6919_v18, %v8208_v11  ;;  %v7491_v16 = vld [vmem:[#allocation2 + $0x1f8] sm:$0xff]   ;;  %v7492_v17 = vld [vmem:[#allocation2 + $0x1f0] sm:$0xff]   ;;  %v7493_v18 = vld [vmem:[#allocation2 + $0x1e8] sm:$0xff]  }
 0x538   :  { %v2892_v22 = vpop.f32.mrf.mxu1  ;;  %7093 = vmatprep.subr.bf16.mxu0 %v7491_v16 }
 0x539   :  { %v3041_v23 = vpack.c.bf16 %v3000_v20, %v2999_v19  ;;  %v2893_v26 = vadd.f32 %v8208_v11, %v2892_v22  ;;  %v3005_v35 = vmax.f32 %v2901_v28, 0.0  ;;  %7094 = vmatpush3.bf16.msra.mxu0 %v7491_v16 }
 0x53a   :  { %v6920_v25 = vpop.f32.mrf.mxu1  ;;  %7095 = vmatprep.subr.bf16.mxu0 %v7492_v17 }
 0x53b   :  { %v2904_v27 = vadd.f32 %v6920_v25, %v8208_v11  ;;  %6993 = vmatprep.mubr.bf16.mxu0 %v3041_v23  ;;  %v3003_v33 = vmax.f32 %v2893_v26, 0.0  ;;  %v7494_v26 = vld [vmem:[#allocation2 + $0x1e0] sm:$0xff]  }
 0x53c   :  { %v2895_v29 = vpop.f32.mrf.mxu1  ;;  %6994 = vmatmul.mubr.bf16.gmra.mxu0 %v3042_v24 }
 0x53d   :  { %v2896_v30 = vadd.f32 %v8208_v11, %v2895_v29  ;;  %v3006_v31 = vmax.f32 %v2904_v27, 0.0  ;;  %7096 = vmatpush3.bf16.msra.mxu0 %v7492_v17  ;;  %v7495_v27 = vld [vmem:[#allocation2 + $0x1d8] sm:$0xff]  }
 0x53e   :  { %v6923_v32 = vpop.f32.mrf.mxu1  ;;  %7097 = vmatprep.subr.bf16.mxu0 %v7493_v18 }
 0x53f   :  { %v3004_v34 = vmax.f32 %v2896_v30, 0.0  ;;  %v3044_v38 = vpack.c.bf16 %v3006_v31, %v3005_v35  ;;  %v2917_v42 = vadd.f32 %v6923_v32, %v8208_v11  ;;  %v7496_v35 = vld [vmem:[#allocation2 + $0x1d0] sm:$0xff]  }
 0x540   :  { %v2908_v36 = vpop.f32.mrf.mxu1 }
 0x541   :  { %v3043_v37 = vpack.c.bf16 %v3004_v34, %v3003_v33  ;;  %v2909_v40 = vadd.f32 %v8208_v11, %v2908_v36  ;;  %v3009_v49 = vmax.f32 %v2917_v42, 0.0  ;;  %7098 = vmatpush3.bf16.msra.mxu0 %v7493_v18 }
 0x542   :  { %v6924_v39 = vpop.f32.mrf.mxu1  ;;  %7099 = vmatprep.subr.bf16.mxu0 %v7494_v26 }
 0x543   :  { %v2920_v41 = vadd.f32 %v6924_v39, %v8208_v11  ;;  %6997 = vmatprep.mubr.bf16.mxu0 %v3043_v37  ;;  %v3007_v47 = vmax.f32 %v2909_v40, 0.0 }
 0x544   :  { %v2911_v43 = vpop.f32.mrf.mxu1  ;;  %6998 = vmatmul.mubr.bf16.gmra.mxu0 %v3044_v38 }
 0x545   :  { %v2912_v44 = vadd.f32 %v8208_v11, %v2911_v43  ;;  %v3010_v45 = vmax.f32 %v2920_v41, 0.0  ;;  %7100 = vmatpush3.bf16.msra.mxu0 %v7494_v26  ;;  %v7497_v43 = vld [vmem:[#allocation2 + $0x1c8] sm:$0xff]  }
 0x546   :  { %v6927_v46 = vpop.f32.mrf.mxu1  ;;  %7101 = vmatprep.subr.bf16.mxu0 %v7495_v27 }
 0x547   :  { %v3008_v48 = vmax.f32 %v2912_v44, 0.0  ;;  %v3046_v52 = vpack.c.bf16 %v3010_v45, %v3009_v49  ;;  %v2933_v56 = vadd.f32 %v6927_v46, %v8208_v11 }
 0x548   :  { %v2924_v50 = vpop.f32.mrf.mxu1 }
 0x549   :  { %v3045_v51 = vpack.c.bf16 %v3008_v48, %v3007_v47  ;;  %v2925_v54 = vadd.f32 %v8208_v11, %v2924_v50  ;;  %v3013_v63 = vmax.f32 %v2933_v56, 0.0  ;;  %7102 = vmatpush3.bf16.msra.mxu0 %v7495_v27 }
 0x54a   :  { %v6928_v53 = vpop.f32.mrf.mxu1  ;;  %7103 = vmatprep.subr.bf16.mxu0 %v7496_v35 }
 0x54b   :  { %v2936_v55 = vadd.f32 %v6928_v53, %v8208_v11  ;;  %7001 = vmatprep.mubr.bf16.mxu0 %v3045_v51  ;;  %v3011_v61 = vmax.f32 %v2925_v54, 0.0  ;;  %v7498_v51 = vld [vmem:[#allocation2 + $0x1c0] sm:$0xff]  }
 0x54c   :  { %v2927_v57 = vpop.f32.mrf.mxu1  ;;  %7002 = vmatmul.mubr.bf16.gmra.mxu0 %v3046_v52 }
 0x54d   :  { %v2928_v58 = vadd.f32 %v8208_v11, %v2927_v57  ;;  %v3014_v59 = vmax.f32 %v2936_v55, 0.0  ;;  %7104 = vmatpush3.bf16.msra.mxu0 %v7496_v35 }
 0x54e   :  { %v6931_v60 = vpop.f32.mrf.mxu1  ;;  %7105 = vmatprep.subr.bf16.mxu0 %v7497_v43 }
 0x54f   :  { %v3012_v62 = vmax.f32 %v2928_v58, 0.0  ;;  %v3048_v2 = vpack.c.bf16 %v3014_v59, %v3013_v63  ;;  %v2949_v6 = vadd.f32 %v6931_v60, %v8208_v11 }
 0x550   :  { %v2940_v0 = vpop.f32.mrf.mxu1 }
 0x551   :  { %v3047_v1 = vpack.c.bf16 %v3012_v62, %v3011_v61  ;;  %v2941_v4 = vadd.f32 %v8208_v11, %v2940_v0  ;;  %v3017_v13 = vmax.f32 %v2949_v6, 0.0  ;;  %7106 = vmatpush3.bf16.msra.mxu0 %v7497_v43 }
 0x552   :  { %v6932_v3 = vpop.f32.mrf.mxu1  ;;  %7107 = vmatprep.subr.bf16.mxu0 %v7498_v51 }
 0x553   :  { %v2952_v5 = vadd.f32 %v6932_v3, %v8208_v11  ;;  %7005 = vmatprep.mubr.bf16.mxu0 %v3047_v1  ;;  %v3015_v10 = vmax.f32 %v2941_v4, 0.0 }
 0x554   :  { %v2943_v7 = vpop.f32.mrf.mxu1  ;;  %7006 = vmatmul.mubr.bf16.gmra.mxu0 %v3048_v2 }
 0x555   :  { %v2944_v8 = vadd.f32 %v8208_v11, %v2943_v7  ;;  %v3018_v9 = vmax.f32 %v2952_v5, 0.0  ;;  %v8277_v11 = vld [vmem:[%s8694_s3 + $0x6] ss:$0 sm:$0xff]  ;;  %7108 = vmatpush3.bf16.msra.mxu0 %v7498_v51 }
 0x557   :  { %v3016_v12 = vmax.f32 %v2944_v8, 0.0  ;;  %v3050_v15 = vpack.c.bf16 %v3018_v9, %v3017_v13 }
 0x559   :  { %v3049_v14 = vpack.c.bf16 %v3016_v12, %v3015_v10 }
 0x55b   :  { %7009 = vmatprep.mubr.bf16.mxu0 %v3049_v14 }
 0x55c   :  { %7010 = vmatmul.mubr.bf16.gmra.mxu0 %v3050_v15 }
 0x5a4   :  { %v6951_v19 = vpop.f32.mrf.mxu0 }
 0x5a5   :  { %v3164_v24 = vadd.f32 %v6951_v19, %v8277_v11 }
 0x5a6   :  { %v3155_v20 = vpop.f32.mrf.mxu0 }
 0x5a7   :  { %v3156_v22 = vadd.f32 %v8277_v11, %v3155_v20  ;;  %v3412_v33 = vmax.f32 %v3164_v24, 0.0 }
 0x5a8   :  { %v6952_v21 = vpop.f32.mrf.mxu0 }
 0x5a9   :  { %v3167_v23 = vadd.f32 %v6952_v21, %v8277_v11  ;;  %v3410_v31 = vmax.f32 %v3156_v22, 0.0 }
 0x5aa   :  { %v3158_v25 = vpop.f32.mrf.mxu0 }
 0x5ab   :  { %v3159_v28 = vadd.f32 %v8277_v11, %v3158_v25  ;;  %v3413_v29 = vmax.f32 %v3167_v23, 0.0 }
 0x5ac   :  { %v6955_v30 = vpop.f32.mrf.mxu0 }
 0x5ad   :  { %v3411_v32 = vmax.f32 %v3159_v28, 0.0  ;;  %v3475_v37 = vpack.c.bf16 %v3413_v29, %v3412_v33  ;;  %v3180_v41 = vadd.f32 %v6955_v30, %v8277_v11 }
 0x5ae   :  { %v3171_v34 = vpop.f32.mrf.mxu0 }
 0x5af   :  { %v3474_v36 = vpack.c.bf16 %v3411_v32, %v3410_v31  ;;  %v3172_v39 = vadd.f32 %v8277_v11, %v3171_v34  ;;  %v3416_v49 = vmax.f32 %v3180_v41, 0.0 }
 0x5b0   :  { %v6956_v38 = vpop.f32.mrf.mxu0 }
 0x5b1   :  { %v3183_v40 = vadd.f32 %v6956_v38, %v8277_v11  ;;  %7029 = vmatprep.mubr.bf16.mxu1 %v3474_v36  ;;  %v3414_v47 = vmax.f32 %v3172_v39, 0.0 }
 0x5b2   :  { %v3174_v42 = vpop.f32.mrf.mxu0  ;;  %7030 = vmatmul.mubr.bf16.vlgmr.msra.gmra.mxu1 %v3475_v37 }
 0x5b3   :  { %v3175_v44 = vadd.f32 %v8277_v11, %v3174_v42  ;;  %v3417_v45 = vmax.f32 %v3183_v40, 0.0 }
 0x5b4   :  { %v6959_v46 = vpop.f32.mrf.mxu0 }
 0x5b5   :  { %v3415_v48 = vmax.f32 %v3175_v44, 0.0  ;;  %v3477_v53 = vpack.c.bf16 %v3417_v45, %v3416_v49  ;;  %v3196_v57 = vadd.f32 %v6959_v46, %v8277_v11 }
 0x5b6   :  { %v3187_v50 = vpop.f32.mrf.mxu0 }
 0x5b7   :  { %v3476_v52 = vpack.c.bf16 %v3415_v48, %v3414_v47  ;;  %v3188_v55 = vadd.f32 %v8277_v11, %v3187_v50  ;;  %v3420_v0 = vmax.f32 %v3196_v57, 0.0 }
 0x5b8   :  { %v6960_v54 = vpop.f32.mrf.mxu0 }
 0x5b9   :  { %v3199_v56 = vadd.f32 %v6960_v54, %v8277_v11  ;;  %7033 = vmatprep.mubr.bf16.mxu1 %v3476_v52  ;;  %v3418_v62 = vmax.f32 %v3188_v55, 0.0 }
 0x5ba   :  { %v3190_v58 = vpop.f32.mrf.mxu0  ;;  %7034 = vmatmul.mubr.bf16.gmra.mxu1 %v3477_v53 }
 0x5bb   :  { %v3191_v59 = vadd.f32 %v8277_v11, %v3190_v58  ;;  %v3421_v60 = vmax.f32 %v3199_v56, 0.0 }
 0x5bc   :  { %v6963_v61 = vpop.f32.mrf.mxu0 }
 0x5bd   :  { %v3419_v63 = vmax.f32 %v3191_v59, 0.0  ;;  %v3479_v3 = vpack.c.bf16 %v3421_v60, %v3420_v0  ;;  %v3212_v7 = vadd.f32 %v6963_v61, %v8277_v11 }
 0x5be   :  { %v3203_v1 = vpop.f32.mrf.mxu0 }
 0x5bf   :  { %v3478_v2 = vpack.c.bf16 %v3419_v63, %v3418_v62  ;;  %v3204_v5 = vadd.f32 %v8277_v11, %v3203_v1  ;;  %v3424_v15 = vmax.f32 %v3212_v7, 0.0 }
 0x5c0   :  { %v6964_v4 = vpop.f32.mrf.mxu0 }
 0x5c1   :  { %v3215_v6 = vadd.f32 %v6964_v4, %v8277_v11  ;;  %7037 = vmatprep.mubr.bf16.mxu1 %v3478_v2  ;;  %v3422_v13 = vmax.f32 %v3204_v5, 0.0 }
 0x5c2   :  { %v3206_v8 = vpop.f32.mrf.mxu0  ;;  %7038 = vmatmul.mubr.bf16.gmra.mxu1 %v3479_v3 }
 0x5c3   :  { %v3207_v9 = vadd.f32 %v8277_v11, %v3206_v8  ;;  %v3425_v10 = vmax.f32 %v3215_v6, 0.0 }
 0x5c4   :  { %v6967_v12 = vpop.f32.mrf.mxu0 }
 0x5c5   :  { %v3423_v14 = vmax.f32 %v3207_v9, 0.0  ;;  %v3481_v18 = vpack.c.bf16 %v3425_v10, %v3424_v15  ;;  %v3228_v22 = vadd.f32 %v6967_v12, %v8277_v11 }
 0x5c6   :  { %v3219_v16 = vpop.f32.mrf.mxu0 }
 0x5c7   :  { %v3480_v17 = vpack.c.bf16 %v3423_v14, %v3422_v13  ;;  %v3220_v20 = vadd.f32 %v8277_v11, %v3219_v16  ;;  %v3428_v29 = vmax.f32 %v3228_v22, 0.0 }
 0x5c8   :  { %v6968_v19 = vpop.f32.mrf.mxu0 }
 0x5c9   :  { %v3231_v21 = vadd.f32 %v6968_v19, %v8277_v11  ;;  %7041 = vmatprep.mubr.bf16.mxu1 %v3480_v17  ;;  %v3426_v27 = vmax.f32 %v3220_v20, 0.0 }
 0x5ca   :  { %v3222_v23 = vpop.f32.mrf.mxu0  ;;  %7042 = vmatmul.mubr.bf16.gmra.mxu1 %v3481_v18 }
 0x5cb   :  { %v3223_v24 = vadd.f32 %v8277_v11, %v3222_v23  ;;  %v3429_v25 = vmax.f32 %v3231_v21, 0.0 }
 0x5cc   :  { %v6971_v26 = vpop.f32.mrf.mxu0 }
 0x5cd   :  { %v3427_v28 = vmax.f32 %v3223_v24, 0.0  ;;  %v3483_v32 = vpack.c.bf16 %v3429_v25, %v3428_v29  ;;  %v3244_v36 = vadd.f32 %v6971_v26, %v8277_v11 }
 0x5ce   :  { %v3235_v30 = vpop.f32.mrf.mxu0 }
 0x5cf   :  { %v3482_v31 = vpack.c.bf16 %v3427_v28, %v3426_v27  ;;  %v3236_v34 = vadd.f32 %v8277_v11, %v3235_v30  ;;  %v3432_v43 = vmax.f32 %v3244_v36, 0.0 }
 0x5d0   :  { %v6972_v33 = vpop.f32.mrf.mxu0 }
 0x5d1   :  { %v3247_v35 = vadd.f32 %v6972_v33, %v8277_v11  ;;  %7045 = vmatprep.mubr.bf16.mxu1 %v3482_v31  ;;  %v3430_v41 = vmax.f32 %v3236_v34, 0.0 }
 0x5d2   :  { %v3238_v37 = vpop.f32.mrf.mxu0  ;;  %7046 = vmatmul.mubr.bf16.gmra.mxu1 %v3483_v32 }
 0x5d3   :  { %v3239_v38 = vadd.f32 %v8277_v11, %v3238_v37  ;;  %v3433_v39 = vmax.f32 %v3247_v35, 0.0 }
 0x5d4   :  { %v6975_v40 = vpop.f32.mrf.mxu0 }
 0x5d5   :  { %v3431_v42 = vmax.f32 %v3239_v38, 0.0  ;;  %v3485_v46 = vpack.c.bf16 %v3433_v39, %v3432_v43  ;;  %v3260_v50 = vadd.f32 %v6975_v40, %v8277_v11 }
 0x5d6   :  { %v3251_v44 = vpop.f32.mrf.mxu0 }
 0x5d7   :  { %v3484_v45 = vpack.c.bf16 %v3431_v42, %v3430_v41  ;;  %v3252_v48 = vadd.f32 %v8277_v11, %v3251_v44  ;;  %v3436_v57 = vmax.f32 %v3260_v50, 0.0 }
 0x5d8   :  { %v6976_v47 = vpop.f32.mrf.mxu0 }
 0x5d9   :  { %v3263_v49 = vadd.f32 %v6976_v47, %v8277_v11  ;;  %7049 = vmatprep.mubr.bf16.mxu1 %v3484_v45  ;;  %v3434_v55 = vmax.f32 %v3252_v48, 0.0 }
 0x5da   :  { %v3254_v51 = vpop.f32.mrf.mxu0  ;;  %7050 = vmatmul.mubr.bf16.gmra.mxu1 %v3485_v46 }
 0x5db   :  { %v3255_v52 = vadd.f32 %v8277_v11, %v3254_v51  ;;  %v3437_v53 = vmax.f32 %v3263_v49, 0.0 }
 0x5dc   :  { %v6979_v54 = vpop.f32.mrf.mxu0 }
 0x5dd   :  { %v3435_v56 = vmax.f32 %v3255_v52, 0.0  ;;  %v3487_v60 = vpack.c.bf16 %v3437_v53, %v3436_v57  ;;  %v3276_v0 = vadd.f32 %v6979_v54, %v8277_v11 }
 0x5de   :  { %v3267_v58 = vpop.f32.mrf.mxu0 }
 0x5df   :  { %v3486_v59 = vpack.c.bf16 %v3435_v56, %v3434_v55  ;;  %v3268_v62 = vadd.f32 %v8277_v11, %v3267_v58  ;;  %v3440_v7 = vmax.f32 %v3276_v0, 0.0 }
 0x5e0   :  { %v6980_v61 = vpop.f32.mrf.mxu0 }
 0x5e1   :  { %v3279_v63 = vadd.f32 %v6980_v61, %v8277_v11  ;;  %7053 = vmatprep.mubr.bf16.mxu1 %v3486_v59  ;;  %v3438_v5 = vmax.f32 %v3268_v62, 0.0 }
 0x5e2   :  { %v3270_v1 = vpop.f32.mrf.mxu0  ;;  %7054 = vmatmul.mubr.bf16.gmra.mxu1 %v3487_v60 }
 0x5e3   :  { %v3271_v2 = vadd.f32 %v8277_v11, %v3270_v1  ;;  %v3441_v3 = vmax.f32 %v3279_v63, 0.0 }
 0x5e4   :  { %v6983_v4 = vpop.f32.mrf.mxu0 }
 0x5e5   :  { %v3439_v6 = vmax.f32 %v3271_v2, 0.0  ;;  %v3489_v10 = vpack.c.bf16 %v3441_v3, %v3440_v7  ;;  %v3292_v15 = vadd.f32 %v6983_v4, %v8277_v11 }
 0x5e6   :  { %v3283_v8 = vpop.f32.mrf.mxu0 }
 0x5e7   :  { %v3488_v9 = vpack.c.bf16 %v3439_v6, %v3438_v5  ;;  %v3284_v13 = vadd.f32 %v8277_v11, %v3283_v8  ;;  %v3444_v22 = vmax.f32 %v3292_v15, 0.0 }
 0x5e8   :  { %v6984_v12 = vpop.f32.mrf.mxu0 }
 0x5e9   :  { %v3295_v14 = vadd.f32 %v6984_v12, %v8277_v11  ;;  %7057 = vmatprep.mubr.bf16.mxu1 %v3488_v9  ;;  %v3442_v20 = vmax.f32 %v3284_v13, 0.0 }
 0x5ea   :  { %v3286_v16 = vpop.f32.mrf.mxu0  ;;  %7058 = vmatmul.mubr.bf16.gmra.mxu1 %v3489_v10 }
 0x5eb   :  { %v3287_v17 = vadd.f32 %v8277_v11, %v3286_v16  ;;  %v3445_v18 = vmax.f32 %v3295_v14, 0.0 }
 0x5ec   :  { %v6987_v19 = vpop.f32.mrf.mxu0 }
 0x5ed   :  { %v3443_v21 = vmax.f32 %v3287_v17, 0.0  ;;  %v3491_v25 = vpack.c.bf16 %v3445_v18, %v3444_v22  ;;  %v3308_v29 = vadd.f32 %v6987_v19, %v8277_v11 }
 0x5ee   :  { %v3299_v23 = vpop.f32.mrf.mxu0 }
 0x5ef   :  { %v3490_v24 = vpack.c.bf16 %v3443_v21, %v3442_v20  ;;  %v3300_v27 = vadd.f32 %v8277_v11, %v3299_v23  ;;  %v3448_v36 = vmax.f32 %v3308_v29, 0.0 }
 0x5f0   :  { %v6988_v26 = vpop.f32.mrf.mxu0 }
 0x5f1   :  { %v3311_v28 = vadd.f32 %v6988_v26, %v8277_v11  ;;  %7061 = vmatprep.mubr.bf16.mxu1 %v3490_v24  ;;  %v3446_v34 = vmax.f32 %v3300_v27, 0.0 }
 0x5f2   :  { %v3302_v30 = vpop.f32.mrf.mxu0  ;;  %7062 = vmatmul.mubr.bf16.gmra.mxu1 %v3491_v25 }
 0x5f3   :  { %v3303_v31 = vadd.f32 %v8277_v11, %v3302_v30  ;;  %v3449_v32 = vmax.f32 %v3311_v28, 0.0 }
 0x5f4   :  { %v6991_v33 = vpop.f32.mrf.mxu0 }
 0x5f5   :  { %v3447_v35 = vmax.f32 %v3303_v31, 0.0  ;;  %v3493_v39 = vpack.c.bf16 %v3449_v32, %v3448_v36  ;;  %v3324_v43 = vadd.f32 %v6991_v33, %v8277_v11 }
 0x5f6   :  { %v3315_v37 = vpop.f32.mrf.mxu0 }
 0x5f7   :  { %v3492_v38 = vpack.c.bf16 %v3447_v35, %v3446_v34  ;;  %v3316_v41 = vadd.f32 %v8277_v11, %v3315_v37  ;;  %v3452_v50 = vmax.f32 %v3324_v43, 0.0 }
 0x5f8   :  { %v6992_v40 = vpop.f32.mrf.mxu0 }
 0x5f9   :  { %v3327_v42 = vadd.f32 %v6992_v40, %v8277_v11  ;;  %7065 = vmatprep.mubr.bf16.mxu1 %v3492_v38  ;;  %v3450_v48 = vmax.f32 %v3316_v41, 0.0 }
 0x5fa   :  { %v3318_v44 = vpop.f32.mrf.mxu0  ;;  %7066 = vmatmul.mubr.bf16.gmra.mxu1 %v3493_v39 }
 0x5fb   :  { %v3319_v45 = vadd.f32 %v8277_v11, %v3318_v44  ;;  %v3453_v46 = vmax.f32 %v3327_v42, 0.0 }
 0x5fc   :  { %v6995_v47 = vpop.f32.mrf.mxu0 }
 0x5fd   :  { %v3451_v49 = vmax.f32 %v3319_v45, 0.0  ;;  %v3495_v53 = vpack.c.bf16 %v3453_v46, %v3452_v50  ;;  %v3340_v57 = vadd.f32 %v6995_v47, %v8277_v11 }
 0x5fe   :  { %v3331_v51 = vpop.f32.mrf.mxu0 }
 0x5ff   :  { %v3494_v52 = vpack.c.bf16 %v3451_v49, %v3450_v48  ;;  %v3332_v55 = vadd.f32 %v8277_v11, %v3331_v51  ;;  %v3456_v0 = vmax.f32 %v3340_v57, 0.0 }
 0x600   :  { %v6996_v54 = vpop.f32.mrf.mxu0 }
 0x601   :  { %v3343_v56 = vadd.f32 %v6996_v54, %v8277_v11  ;;  %7069 = vmatprep.mubr.bf16.mxu1 %v3494_v52  ;;  %v3454_v62 = vmax.f32 %v3332_v55, 0.0 }
 0x602   :  { %v3334_v58 = vpop.f32.mrf.mxu0  ;;  %7070 = vmatmul.mubr.bf16.gmra.mxu1 %v3495_v53 }
 0x603   :  { %v3335_v59 = vadd.f32 %v8277_v11, %v3334_v58  ;;  %v3457_v60 = vmax.f32 %v3343_v56, 0.0 }
 0x604   :  { %v6999_v61 = vpop.f32.mrf.mxu0 }
 0x605   :  { %v3455_v63 = vmax.f32 %v3335_v59, 0.0  ;;  %v3497_v3 = vpack.c.bf16 %v3457_v60, %v3456_v0  ;;  %v3356_v7 = vadd.f32 %v6999_v61, %v8277_v11  ;;  %v7499_v59 = vld [vmem:[#allocation2 + $0x238] sm:$0xff]   ;;  %v7500_v60 = vld [vmem:[#allocation2 + $0x230] sm:$0xff]   ;;  %v7501_v61 = vld [vmem:[#allocation2 + $0x228] sm:$0xff]  }
 0x606   :  { %v3347_v1 = vpop.f32.mrf.mxu0  ;;  %7173 = vmatprep.subr.bf16.mxu1 %v7499_v59 }
 0x607   :  { %v3496_v2 = vpack.c.bf16 %v3455_v63, %v3454_v62  ;;  %v3348_v5 = vadd.f32 %v8277_v11, %v3347_v1  ;;  %v3460_v15 = vmax.f32 %v3356_v7, 0.0  ;;  %7174 = vmatpush3.bf16.msra.mxu1 %v7499_v59 }
 0x608   :  { %v7000_v4 = vpop.f32.mrf.mxu0  ;;  %7175 = vmatprep.subr.bf16.mxu1 %v7500_v60 }
 0x609   :  { %v3359_v6 = vadd.f32 %v7000_v4, %v8277_v11  ;;  %7073 = vmatprep.mubr.bf16.mxu1 %v3496_v2  ;;  %v3458_v13 = vmax.f32 %v3348_v5, 0.0  ;;  %v7502_v5 = vld [vmem:[#allocation2 + $0x220] sm:$0xff]  }
 0x60a   :  { %v3350_v8 = vpop.f32.mrf.mxu0  ;;  %7074 = vmatmul.mubr.bf16.gmra.mxu1 %v3497_v3 }
 0x60b   :  { %v3351_v9 = vadd.f32 %v8277_v11, %v3350_v8  ;;  %v3461_v10 = vmax.f32 %v3359_v6, 0.0  ;;  %7176 = vmatpush3.bf16.msra.mxu1 %v7500_v60  ;;  %v7503_v6 = vld [vmem:[#allocation2 + $0x218] sm:$0xff]  }
 0x60c   :  { %v7003_v12 = vpop.f32.mrf.mxu0  ;;  %7177 = vmatprep.subr.bf16.mxu1 %v7501_v61 }
 0x60d   :  { %v3459_v14 = vmax.f32 %v3351_v9, 0.0  ;;  %v3499_v18 = vpack.c.bf16 %v3461_v10, %v3460_v15  ;;  %v3372_v22 = vadd.f32 %v7003_v12, %v8277_v11  ;;  %v7504_v15 = vld [vmem:[#allocation2 + $0x210] sm:$0xff]  }
 0x60e   :  { %v3363_v16 = vpop.f32.mrf.mxu0 }
 0x60f   :  { %v3498_v17 = vpack.c.bf16 %v3459_v14, %v3458_v13  ;;  %v3364_v20 = vadd.f32 %v8277_v11, %v3363_v16  ;;  %v3464_v29 = vmax.f32 %v3372_v22, 0.0  ;;  %7178 = vmatpush3.bf16.msra.mxu1 %v7501_v61 }
 0x610   :  { %v7004_v19 = vpop.f32.mrf.mxu0  ;;  %7179 = vmatprep.subr.bf16.mxu1 %v7502_v5 }
 0x611   :  { %v3375_v21 = vadd.f32 %v7004_v19, %v8277_v11  ;;  %7077 = vmatprep.mubr.bf16.mxu1 %v3498_v17  ;;  %v3462_v27 = vmax.f32 %v3364_v20, 0.0 }
 0x612   :  { %v3366_v23 = vpop.f32.mrf.mxu0  ;;  %7078 = vmatmul.mubr.bf16.gmra.mxu1 %v3499_v18 }
 0x613   :  { %v3367_v24 = vadd.f32 %v8277_v11, %v3366_v23  ;;  %v3465_v25 = vmax.f32 %v3375_v21, 0.0  ;;  %7180 = vmatpush3.bf16.msra.mxu1 %v7502_v5  ;;  %v7505_v23 = vld [vmem:[#allocation2 + $0x208] sm:$0xff]  }
 0x614   :  { %v7007_v26 = vpop.f32.mrf.mxu0  ;;  %7181 = vmatprep.subr.bf16.mxu1 %v7503_v6 }
 0x615   :  { %v3463_v28 = vmax.f32 %v3367_v24, 0.0  ;;  %v3501_v32 = vpack.c.bf16 %v3465_v25, %v3464_v29  ;;  %v3388_v36 = vadd.f32 %v7007_v26, %v8277_v11 }
 0x616   :  { %v3379_v30 = vpop.f32.mrf.mxu0 }
 0x617   :  { %v3500_v31 = vpack.c.bf16 %v3463_v28, %v3462_v27  ;;  %v3380_v34 = vadd.f32 %v8277_v11, %v3379_v30  ;;  %v3468_v43 = vmax.f32 %v3388_v36, 0.0  ;;  %7182 = vmatpush3.bf16.msra.mxu1 %v7503_v6 }
 0x618   :  { %v7008_v33 = vpop.f32.mrf.mxu0  ;;  %7183 = vmatprep.subr.bf16.mxu1 %v7504_v15 }
 0x619   :  { %v3391_v35 = vadd.f32 %v7008_v33, %v8277_v11  ;;  %7081 = vmatprep.mubr.bf16.mxu1 %v3500_v31  ;;  %v3466_v41 = vmax.f32 %v3380_v34, 0.0  ;;  %v7506_v31 = vld [vmem:[#allocation2 + $0x200] sm:$0xff]  }
 0x61a   :  { %v3382_v37 = vpop.f32.mrf.mxu0  ;;  %7082 = vmatmul.mubr.bf16.gmra.mxu1 %v3501_v32 }
 0x61b   :  { %v3383_v38 = vadd.f32 %v8277_v11, %v3382_v37  ;;  %v3469_v39 = vmax.f32 %v3391_v35, 0.0  ;;  %7184 = vmatpush3.bf16.msra.mxu1 %v7504_v15 }
 0x61c   :  { %v7011_v40 = vpop.f32.mrf.mxu0  ;;  %7185 = vmatprep.subr.bf16.mxu1 %v7505_v23 }
 0x61d   :  { %v3467_v42 = vmax.f32 %v3383_v38, 0.0  ;;  %v3503_v46 = vpack.c.bf16 %v3469_v39, %v3468_v43  ;;  %v3404_v50 = vadd.f32 %v7011_v40, %v8277_v11 }
 0x61e   :  { %v3395_v44 = vpop.f32.mrf.mxu0 }
 0x61f   :  { %v3502_v45 = vpack.c.bf16 %v3467_v42, %v3466_v41  ;;  %v3396_v48 = vadd.f32 %v8277_v11, %v3395_v44  ;;  %v3472_v56 = vmax.f32 %v3404_v50, 0.0  ;;  %7186 = vmatpush3.bf16.msra.mxu1 %v7505_v23 }
 0x620   :  { %v7012_v47 = vpop.f32.mrf.mxu0  ;;  %7187 = vmatprep.subr.bf16.mxu1 %v7506_v31 }
 0x621   :  { %v3407_v49 = vadd.f32 %v7012_v47, %v8277_v11  ;;  %7085 = vmatprep.mubr.bf16.mxu1 %v3502_v45  ;;  %v3470_v54 = vmax.f32 %v3396_v48, 0.0 }
 0x622   :  { %v3398_v51 = vpop.f32.mrf.mxu0  ;;  %7086 = vmatmul.mubr.bf16.gmra.mxu1 %v3503_v46 }
 0x623   :  { %v3399_v52 = vadd.f32 %v8277_v11, %v3398_v51  ;;  %v3473_v53 = vmax.f32 %v3407_v49, 0.0  ;;  %v8346_v11 = vld [vmem:[%s8694_s3 + $0x7] ss:$0 sm:$0xff]  ;;  %7188 = vmatpush3.bf16.msra.mxu1 %v7506_v31 }
 0x625   :  { %v3471_v55 = vmax.f32 %v3399_v52, 0.0  ;;  %v3505_v58 = vpack.c.bf16 %v3473_v53, %v3472_v56 }
 0x627   :  { %v3504_v57 = vpack.c.bf16 %v3471_v55, %v3470_v54 }
 0x629   :  { %7089 = vmatprep.mubr.bf16.mxu1 %v3504_v57 }
 0x62a   :  { %7090 = vmatmul.mubr.bf16.gmra.mxu1 %v3505_v58 }
 0x672   :  { %v7031_v62 = vpop.f32.mrf.mxu1 }
 0x673   :  { %v3619_v3 = vadd.f32 %v7031_v62, %v8346_v11 }
 0x674   :  { %v3610_v63 = vpop.f32.mrf.mxu1 }
 0x675   :  { %v3611_v1 = vadd.f32 %v8346_v11, %v3610_v63  ;;  %v3867_v13 = vmax.f32 %v3619_v3, 0.0 }
 0x676   :  { %v7032_v0 = vpop.f32.mrf.mxu1 }
 0x677   :  { %v3622_v2 = vadd.f32 %v7032_v0, %v8346_v11  ;;  %v3865_v10 = vmax.f32 %v3611_v1, 0.0 }
 0x678   :  { %v3613_v4 = vpop.f32.mrf.mxu1 }
 0x679   :  { %v3614_v7 = vadd.f32 %v8346_v11, %v3613_v4  ;;  %v3868_v8 = vmax.f32 %v3622_v2, 0.0 }
 0x67a   :  { %v7035_v9 = vpop.f32.mrf.mxu1 }
 0x67b   :  { %v3866_v12 = vmax.f32 %v3614_v7, 0.0  ;;  %v3930_v17 = vpack.c.bf16 %v3868_v8, %v3867_v13  ;;  %v3635_v21 = vadd.f32 %v7035_v9, %v8346_v11 }
 0x67c   :  { %v3626_v14 = vpop.f32.mrf.mxu1 }
 0x67d   :  { %v3929_v16 = vpack.c.bf16 %v3866_v12, %v3865_v10  ;;  %v3627_v19 = vadd.f32 %v8346_v11, %v3626_v14  ;;  %v3871_v29 = vmax.f32 %v3635_v21, 0.0 }
 0x67e   :  { %v7036_v18 = vpop.f32.mrf.mxu1 }
 0x67f   :  { %v3638_v20 = vadd.f32 %v7036_v18, %v8346_v11  ;;  %7109 = vmatprep.mubr.bf16.mxu0 %v3929_v16  ;;  %v3869_v27 = vmax.f32 %v3627_v19, 0.0 }
 0x680   :  { %v3629_v22 = vpop.f32.mrf.mxu1  ;;  %7110 = vmatmul.mubr.bf16.vlgmr.msra.gmra.mxu0 %v3930_v17 }
 0x681   :  { %v3630_v24 = vadd.f32 %v8346_v11, %v3629_v22  ;;  %v3872_v25 = vmax.f32 %v3638_v20, 0.0 }
 0x682   :  { %v7039_v26 = vpop.f32.mrf.mxu1 }
 0x683   :  { %v3870_v28 = vmax.f32 %v3630_v24, 0.0  ;;  %v3932_v33 = vpack.c.bf16 %v3872_v25, %v3871_v29  ;;  %v3651_v37 = vadd.f32 %v7039_v26, %v8346_v11 }
 0x684   :  { %v3642_v30 = vpop.f32.mrf.mxu1 }
 0x685   :  { %v3931_v32 = vpack.c.bf16 %v3870_v28, %v3869_v27  ;;  %v3643_v35 = vadd.f32 %v8346_v11, %v3642_v30  ;;  %v3875_v44 = vmax.f32 %v3651_v37, 0.0 }
 0x686   :  { %v7040_v34 = vpop.f32.mrf.mxu1 }
 0x687   :  { %v3654_v36 = vadd.f32 %v7040_v34, %v8346_v11  ;;  %7113 = vmatprep.mubr.bf16.mxu0 %v3931_v32  ;;  %v3873_v42 = vmax.f32 %v3643_v35, 0.0 }
 0x688   :  { %v3645_v38 = vpop.f32.mrf.mxu1  ;;  %7114 = vmatmul.mubr.bf16.gmra.mxu0 %v3932_v33 }
 0x689   :  { %v3646_v39 = vadd.f32 %v8346_v11, %v3645_v38  ;;  %v3876_v40 = vmax.f32 %v3654_v36, 0.0 }
 0x68a   :  { %v7043_v41 = vpop.f32.mrf.mxu1 }
 0x68b   :  { %v3874_v43 = vmax.f32 %v3646_v39, 0.0  ;;  %v3934_v47 = vpack.c.bf16 %v3876_v40, %v3875_v44  ;;  %v3667_v51 = vadd.f32 %v7043_v41, %v8346_v11 }
 0x68c   :  { %v3658_v45 = vpop.f32.mrf.mxu1 }
 0x68d   :  { %v3933_v46 = vpack.c.bf16 %v3874_v43, %v3873_v42  ;;  %v3659_v49 = vadd.f32 %v8346_v11, %v3658_v45  ;;  %v3879_v58 = vmax.f32 %v3667_v51, 0.0 }
 0x68e   :  { %v7044_v48 = vpop.f32.mrf.mxu1 }
 0x68f   :  { %v3670_v50 = vadd.f32 %v7044_v48, %v8346_v11  ;;  %7117 = vmatprep.mubr.bf16.mxu0 %v3933_v46  ;;  %v3877_v56 = vmax.f32 %v3659_v49, 0.0 }
 0x690   :  { %v3661_v52 = vpop.f32.mrf.mxu1  ;;  %7118 = vmatmul.mubr.bf16.gmra.mxu0 %v3934_v47 }
 0x691   :  { %v3662_v53 = vadd.f32 %v8346_v11, %v3661_v52  ;;  %v3880_v54 = vmax.f32 %v3670_v50, 0.0 }
 0x692   :  { %v7047_v55 = vpop.f32.mrf.mxu1 }
 0x693   :  { %v3878_v57 = vmax.f32 %v3662_v53, 0.0  ;;  %v3936_v61 = vpack.c.bf16 %v3880_v54, %v3879_v58  ;;  %v3683_v1 = vadd.f32 %v7047_v55, %v8346_v11 }
 0x694   :  { %v3674_v59 = vpop.f32.mrf.mxu1 }
 0x695   :  { %v3935_v60 = vpack.c.bf16 %v3878_v57, %v3877_v56  ;;  %v3675_v63 = vadd.f32 %v8346_v11, %v3674_v59  ;;  %v3883_v8 = vmax.f32 %v3683_v1, 0.0 }
 0x696   :  { %v7048_v62 = vpop.f32.mrf.mxu1 }
 0x697   :  { %v3686_v0 = vadd.f32 %v7048_v62, %v8346_v11  ;;  %7121 = vmatprep.mubr.bf16.mxu0 %v3935_v60  ;;  %v3881_v6 = vmax.f32 %v3675_v63, 0.0 }
 0x698   :  { %v3677_v2 = vpop.f32.mrf.mxu1  ;;  %7122 = vmatmul.mubr.bf16.gmra.mxu0 %v3936_v61 }
 0x699   :  { %v3678_v3 = vadd.f32 %v8346_v11, %v3677_v2  ;;  %v3884_v4 = vmax.f32 %v3686_v0, 0.0 }
 0x69a   :  { %v7051_v5 = vpop.f32.mrf.mxu1 }
 0x69b   :  { %v3882_v7 = vmax.f32 %v3678_v3, 0.0  ;;  %v3938_v12 = vpack.c.bf16 %v3884_v4, %v3883_v8  ;;  %v3699_v16 = vadd.f32 %v7051_v5, %v8346_v11 }
 0x69c   :  { %v3690_v9 = vpop.f32.mrf.mxu1 }
 0x69d   :  { %v3937_v10 = vpack.c.bf16 %v3882_v7, %v3881_v6  ;;  %v3691_v14 = vadd.f32 %v8346_v11, %v3690_v9  ;;  %v3887_v23 = vmax.f32 %v3699_v16, 0.0 }
 0x69e   :  { %v7052_v13 = vpop.f32.mrf.mxu1 }
 0x69f   :  { %v3702_v15 = vadd.f32 %v7052_v13, %v8346_v11  ;;  %7125 = vmatprep.mubr.bf16.mxu0 %v3937_v10  ;;  %v3885_v21 = vmax.f32 %v3691_v14, 0.0 }
 0x6a0   :  { %v3693_v17 = vpop.f32.mrf.mxu1  ;;  %7126 = vmatmul.mubr.bf16.gmra.mxu0 %v3938_v12 }
 0x6a1   :  { %v3694_v18 = vadd.f32 %v8346_v11, %v3693_v17  ;;  %v3888_v19 = vmax.f32 %v3702_v15, 0.0 }
 0x6a2   :  { %v7055_v20 = vpop.f32.mrf.mxu1 }
 0x6a3   :  { %v3886_v22 = vmax.f32 %v3694_v18, 0.0  ;;  %v3940_v26 = vpack.c.bf16 %v3888_v19, %v3887_v23  ;;  %v3715_v30 = vadd.f32 %v7055_v20, %v8346_v11 }
 0x6a4   :  { %v3706_v24 = vpop.f32.mrf.mxu1 }
 0x6a5   :  { %v3939_v25 = vpack.c.bf16 %v3886_v22, %v3885_v21  ;;  %v3707_v28 = vadd.f32 %v8346_v11, %v3706_v24  ;;  %v3891_v37 = vmax.f32 %v3715_v30, 0.0 }
 0x6a6   :  { %v7056_v27 = vpop.f32.mrf.mxu1 }
 0x6a7   :  { %v3718_v29 = vadd.f32 %v7056_v27, %v8346_v11  ;;  %7129 = vmatprep.mubr.bf16.mxu0 %v3939_v25  ;;  %v3889_v35 = vmax.f32 %v3707_v28, 0.0 }
 0x6a8   :  { %v3709_v31 = vpop.f32.mrf.mxu1  ;;  %7130 = vmatmul.mubr.bf16.gmra.mxu0 %v3940_v26 }
 0x6a9   :  { %v3710_v32 = vadd.f32 %v8346_v11, %v3709_v31  ;;  %v3892_v33 = vmax.f32 %v3718_v29, 0.0 }
 0x6aa   :  { %v7059_v34 = vpop.f32.mrf.mxu1 }
 0x6ab   :  { %v3890_v36 = vmax.f32 %v3710_v32, 0.0  ;;  %v3942_v40 = vpack.c.bf16 %v3892_v33, %v3891_v37  ;;  %v3731_v44 = vadd.f32 %v7059_v34, %v8346_v11 }
 0x6ac   :  { %v3722_v38 = vpop.f32.mrf.mxu1 }
 0x6ad   :  { %v3941_v39 = vpack.c.bf16 %v3890_v36, %v3889_v35  ;;  %v3723_v42 = vadd.f32 %v8346_v11, %v3722_v38  ;;  %v3895_v51 = vmax.f32 %v3731_v44, 0.0 }
 0x6ae   :  { %v7060_v41 = vpop.f32.mrf.mxu1 }
 0x6af   :  { %v3734_v43 = vadd.f32 %v7060_v41, %v8346_v11  ;;  %7133 = vmatprep.mubr.bf16.mxu0 %v3941_v39  ;;  %v3893_v49 = vmax.f32 %v3723_v42, 0.0 }
 0x6b0   :  { %v3725_v45 = vpop.f32.mrf.mxu1  ;;  %7134 = vmatmul.mubr.bf16.gmra.mxu0 %v3942_v40 }
 0x6b1   :  { %v3726_v46 = vadd.f32 %v8346_v11, %v3725_v45  ;;  %v3896_v47 = vmax.f32 %v3734_v43, 0.0 }
 0x6b2   :  { %v7063_v48 = vpop.f32.mrf.mxu1 }
 0x6b3   :  { %v3894_v50 = vmax.f32 %v3726_v46, 0.0  ;;  %v3944_v54 = vpack.c.bf16 %v3896_v47, %v3895_v51  ;;  %v3747_v58 = vadd.f32 %v7063_v48, %v8346_v11 }
 0x6b4   :  { %v3738_v52 = vpop.f32.mrf.mxu1 }
 0x6b5   :  { %v3943_v53 = vpack.c.bf16 %v3894_v50, %v3893_v49  ;;  %v3739_v56 = vadd.f32 %v8346_v11, %v3738_v52  ;;  %v3899_v1 = vmax.f32 %v3747_v58, 0.0 }
 0x6b6   :  { %v7064_v55 = vpop.f32.mrf.mxu1 }
 0x6b7   :  { %v3750_v57 = vadd.f32 %v7064_v55, %v8346_v11  ;;  %7137 = vmatprep.mubr.bf16.mxu0 %v3943_v53  ;;  %v3897_v63 = vmax.f32 %v3739_v56, 0.0 }
 0x6b8   :  { %v3741_v59 = vpop.f32.mrf.mxu1  ;;  %7138 = vmatmul.mubr.bf16.gmra.mxu0 %v3944_v54 }
 0x6b9   :  { %v3742_v60 = vadd.f32 %v8346_v11, %v3741_v59  ;;  %v3900_v61 = vmax.f32 %v3750_v57, 0.0 }
 0x6ba   :  { %v7067_v62 = vpop.f32.mrf.mxu1 }
 0x6bb   :  { %v3898_v0 = vmax.f32 %v3742_v60, 0.0  ;;  %v3946_v4 = vpack.c.bf16 %v3900_v61, %v3899_v1  ;;  %v3763_v8 = vadd.f32 %v7067_v62, %v8346_v11 }
 0x6bc   :  { %v3754_v2 = vpop.f32.mrf.mxu1 }
 0x6bd   :  { %v3945_v3 = vpack.c.bf16 %v3898_v0, %v3897_v63  ;;  %v3755_v6 = vadd.f32 %v8346_v11, %v3754_v2  ;;  %v3903_v16 = vmax.f32 %v3763_v8, 0.0 }
 0x6be   :  { %v7068_v5 = vpop.f32.mrf.mxu1 }
 0x6bf   :  { %v3766_v7 = vadd.f32 %v7068_v5, %v8346_v11  ;;  %7141 = vmatprep.mubr.bf16.mxu0 %v3945_v3  ;;  %v3901_v14 = vmax.f32 %v3755_v6, 0.0 }
 0x6c0   :  { %v3757_v9 = vpop.f32.mrf.mxu1  ;;  %7142 = vmatmul.mubr.bf16.gmra.mxu0 %v3946_v4 }
 0x6c1   :  { %v3758_v10 = vadd.f32 %v8346_v11, %v3757_v9  ;;  %v3904_v12 = vmax.f32 %v3766_v7, 0.0 }
 0x6c2   :  { %v7071_v13 = vpop.f32.mrf.mxu1 }
 0x6c3   :  { %v3902_v15 = vmax.f32 %v3758_v10, 0.0  ;;  %v3948_v19 = vpack.c.bf16 %v3904_v12, %v3903_v16  ;;  %v3779_v23 = vadd.f32 %v7071_v13, %v8346_v11 }
 0x6c4   :  { %v3770_v17 = vpop.f32.mrf.mxu1 }
 0x6c5   :  { %v3947_v18 = vpack.c.bf16 %v3902_v15, %v3901_v14  ;;  %v3771_v21 = vadd.f32 %v8346_v11, %v3770_v17  ;;  %v3907_v30 = vmax.f32 %v3779_v23, 0.0 }
 0x6c6   :  { %v7072_v20 = vpop.f32.mrf.mxu1 }
 0x6c7   :  { %v3782_v22 = vadd.f32 %v7072_v20, %v8346_v11  ;;  %7145 = vmatprep.mubr.bf16.mxu0 %v3947_v18  ;;  %v3905_v28 = vmax.f32 %v3771_v21, 0.0 }
 0x6c8   :  { %v3773_v24 = vpop.f32.mrf.mxu1  ;;  %7146 = vmatmul.mubr.bf16.gmra.mxu0 %v3948_v19 }
 0x6c9   :  { %v3774_v25 = vadd.f32 %v8346_v11, %v3773_v24  ;;  %v3908_v26 = vmax.f32 %v3782_v22, 0.0 }
 0x6ca   :  { %v7075_v27 = vpop.f32.mrf.mxu1 }
 0x6cb   :  { %v3906_v29 = vmax.f32 %v3774_v25, 0.0  ;;  %v3950_v33 = vpack.c.bf16 %v3908_v26, %v3907_v30  ;;  %v3795_v37 = vadd.f32 %v7075_v27, %v8346_v11 }
 0x6cc   :  { %v3786_v31 = vpop.f32.mrf.mxu1 }
 0x6cd   :  { %v3949_v32 = vpack.c.bf16 %v3906_v29, %v3905_v28  ;;  %v3787_v35 = vadd.f32 %v8346_v11, %v3786_v31  ;;  %v3911_v44 = vmax.f32 %v3795_v37, 0.0 }
 0x6ce   :  { %v7076_v34 = vpop.f32.mrf.mxu1 }
 0x6cf   :  { %v3798_v36 = vadd.f32 %v7076_v34, %v8346_v11  ;;  %7149 = vmatprep.mubr.bf16.mxu0 %v3949_v32  ;;  %v3909_v42 = vmax.f32 %v3787_v35, 0.0 }
 0x6d0   :  { %v3789_v38 = vpop.f32.mrf.mxu1  ;;  %7150 = vmatmul.mubr.bf16.gmra.mxu0 %v3950_v33 }
 0x6d1   :  { %v3790_v39 = vadd.f32 %v8346_v11, %v3789_v38  ;;  %v3912_v40 = vmax.f32 %v3798_v36, 0.0 }
 0x6d2   :  { %v7079_v41 = vpop.f32.mrf.mxu1 }
 0x6d3   :  { %v3910_v43 = vmax.f32 %v3790_v39, 0.0  ;;  %v3952_v47 = vpack.c.bf16 %v3912_v40, %v3911_v44  ;;  %v3811_v51 = vadd.f32 %v7079_v41, %v8346_v11  ;;  %v7507_v39 = vld [vmem:[#allocation2 + $0x278] sm:$0xff]   ;;  %v7508_v40 = vld [vmem:[#allocation2 + $0x270] sm:$0xff]   ;;  %v7509_v41 = vld [vmem:[#allocation2 + $0x268] sm:$0xff]  }
 0x6d4   :  { %v3802_v45 = vpop.f32.mrf.mxu1  ;;  %7253 = vmatprep.subr.bf16.mxu0 %v7507_v39 }
 0x6d5   :  { %v3951_v46 = vpack.c.bf16 %v3910_v43, %v3909_v42  ;;  %v3803_v49 = vadd.f32 %v8346_v11, %v3802_v45  ;;  %v3915_v58 = vmax.f32 %v3811_v51, 0.0  ;;  %7254 = vmatpush3.bf16.msra.mxu0 %v7507_v39 }
 0x6d6   :  { %v7080_v48 = vpop.f32.mrf.mxu1  ;;  %7255 = vmatprep.subr.bf16.mxu0 %v7508_v40 }
 0x6d7   :  { %v3814_v50 = vadd.f32 %v7080_v48, %v8346_v11  ;;  %7153 = vmatprep.mubr.bf16.mxu0 %v3951_v46  ;;  %v3913_v56 = vmax.f32 %v3803_v49, 0.0  ;;  %v7510_v49 = vld [vmem:[#allocation2 + $0x260] sm:$0xff]  }
 0x6d8   :  { %v3805_v52 = vpop.f32.mrf.mxu1  ;;  %7154 = vmatmul.mubr.bf16.gmra.mxu0 %v3952_v47 }
 0x6d9   :  { %v3806_v53 = vadd.f32 %v8346_v11, %v3805_v52  ;;  %v3916_v54 = vmax.f32 %v3814_v50, 0.0  ;;  %7256 = vmatpush3.bf16.msra.mxu0 %v7508_v40  ;;  %v7511_v50 = vld [vmem:[#allocation2 + $0x258] sm:$0xff]  }
 0x6da   :  { %v7083_v55 = vpop.f32.mrf.mxu1  ;;  %7257 = vmatprep.subr.bf16.mxu0 %v7509_v41 }
 0x6db   :  { %v3914_v57 = vmax.f32 %v3806_v53, 0.0  ;;  %v3954_v61 = vpack.c.bf16 %v3916_v54, %v3915_v58  ;;  %v3827_v1 = vadd.f32 %v7083_v55, %v8346_v11  ;;  %v7512_v58 = vld [vmem:[#allocation2 + $0x250] sm:$0xff]  }
 0x6dc   :  { %v3818_v59 = vpop.f32.mrf.mxu1 }
 0x6dd   :  { %v3953_v60 = vpack.c.bf16 %v3914_v57, %v3913_v56  ;;  %v3819_v63 = vadd.f32 %v8346_v11, %v3818_v59  ;;  %v3919_v8 = vmax.f32 %v3827_v1, 0.0  ;;  %7258 = vmatpush3.bf16.msra.mxu0 %v7509_v41 }
 0x6de   :  { %v7084_v62 = vpop.f32.mrf.mxu1  ;;  %7259 = vmatprep.subr.bf16.mxu0 %v7510_v49 }
 0x6df   :  { %v3830_v0 = vadd.f32 %v7084_v62, %v8346_v11  ;;  %7157 = vmatprep.mubr.bf16.mxu0 %v3953_v60  ;;  %v3917_v6 = vmax.f32 %v3819_v63, 0.0 }
 0x6e0   :  { %v3821_v2 = vpop.f32.mrf.mxu1  ;;  %7158 = vmatmul.mubr.bf16.gmra.mxu0 %v3954_v61 }
 0x6e1   :  { %v3822_v3 = vadd.f32 %v8346_v11, %v3821_v2  ;;  %v3920_v4 = vmax.f32 %v3830_v0, 0.0  ;;  %7260 = vmatpush3.bf16.msra.mxu0 %v7510_v49  ;;  %v7513_v2 = vld [vmem:[#allocation2 + $0x248] sm:$0xff]  }
 0x6e2   :  { %v7087_v5 = vpop.f32.mrf.mxu1  ;;  %7261 = vmatprep.subr.bf16.mxu0 %v7511_v50 }
 0x6e3   :  { %v3918_v7 = vmax.f32 %v3822_v3, 0.0  ;;  %v3956_v12 = vpack.c.bf16 %v3920_v4, %v3919_v8  ;;  %v3843_v16 = vadd.f32 %v7087_v5, %v8346_v11 }
 0x6e4   :  { %v3834_v9 = vpop.f32.mrf.mxu1 }
 0x6e5   :  { %v3955_v10 = vpack.c.bf16 %v3918_v7, %v3917_v6  ;;  %v3835_v14 = vadd.f32 %v8346_v11, %v3834_v9  ;;  %v3923_v23 = vmax.f32 %v3843_v16, 0.0  ;;  %7262 = vmatpush3.bf16.msra.mxu0 %v7511_v50 }
 0x6e6   :  { %v7088_v13 = vpop.f32.mrf.mxu1  ;;  %7263 = vmatprep.subr.bf16.mxu0 %v7512_v58 }
 0x6e7   :  { %v3846_v15 = vadd.f32 %v7088_v13, %v8346_v11  ;;  %7161 = vmatprep.mubr.bf16.mxu0 %v3955_v10  ;;  %v3921_v21 = vmax.f32 %v3835_v14, 0.0  ;;  %v7514_v10 = vld [vmem:[#allocation2 + $0x240] sm:$0xff]  }
 0x6e8   :  { %v3837_v17 = vpop.f32.mrf.mxu1  ;;  %7162 = vmatmul.mubr.bf16.gmra.mxu0 %v3956_v12 }
 0x6e9   :  { %v3838_v18 = vadd.f32 %v8346_v11, %v3837_v17  ;;  %v3924_v19 = vmax.f32 %v3846_v15, 0.0  ;;  %7264 = vmatpush3.bf16.msra.mxu0 %v7512_v58 }
 0x6ea   :  { %v7091_v20 = vpop.f32.mrf.mxu1  ;;  %7265 = vmatprep.subr.bf16.mxu0 %v7513_v2 }
 0x6eb   :  { %v3922_v22 = vmax.f32 %v3838_v18, 0.0  ;;  %v3958_v26 = vpack.c.bf16 %v3924_v19, %v3923_v23  ;;  %v3859_v30 = vadd.f32 %v7091_v20, %v8346_v11 }
 0x6ec   :  { %v3850_v24 = vpop.f32.mrf.mxu1 }
 0x6ed   :  { %v3957_v25 = vpack.c.bf16 %v3922_v22, %v3921_v21  ;;  %v3851_v28 = vadd.f32 %v8346_v11, %v3850_v24  ;;  %v3927_v36 = vmax.f32 %v3859_v30, 0.0  ;;  %7266 = vmatpush3.bf16.msra.mxu0 %v7513_v2 }
 0x6ee   :  { %v7092_v27 = vpop.f32.mrf.mxu1  ;;  %7267 = vmatprep.subr.bf16.mxu0 %v7514_v10 }
 0x6ef   :  { %v3862_v29 = vadd.f32 %v7092_v27, %v8346_v11  ;;  %7165 = vmatprep.mubr.bf16.mxu0 %v3957_v25  ;;  %v3925_v34 = vmax.f32 %v3851_v28, 0.0 }
 0x6f0   :  { %v3853_v31 = vpop.f32.mrf.mxu1  ;;  %7166 = vmatmul.mubr.bf16.gmra.mxu0 %v3958_v26 }
 0x6f1   :  { %v3854_v32 = vadd.f32 %v8346_v11, %v3853_v31  ;;  %v3928_v33 = vmax.f32 %v3862_v29, 0.0  ;;  %v8415_v11 = vld [vmem:[%s8694_s3 + $0x8] ss:$0 sm:$0xff]  ;;  %7268 = vmatpush3.bf16.msra.mxu0 %v7514_v10 }
 0x6f3   :  { %v3926_v35 = vmax.f32 %v3854_v32, 0.0  ;;  %v3960_v38 = vpack.c.bf16 %v3928_v33, %v3927_v36 }
 0x6f5   :  { %v3959_v37 = vpack.c.bf16 %v3926_v35, %v3925_v34 }
 0x6f7   :  { %7169 = vmatprep.mubr.bf16.mxu0 %v3959_v37 }
 0x6f8   :  { %7170 = vmatmul.mubr.bf16.gmra.mxu0 %v3960_v38 }
 0x740   :  { %v7111_v42 = vpop.f32.mrf.mxu0 }
 0x741   :  { %v4074_v47 = vadd.f32 %v7111_v42, %v8415_v11 }
 0x742   :  { %v4065_v43 = vpop.f32.mrf.mxu0 }
 0x743   :  { %v4066_v45 = vadd.f32 %v8415_v11, %v4065_v43  ;;  %v4322_v56 = vmax.f32 %v4074_v47, 0.0 }
 0x744   :  { %v7112_v44 = vpop.f32.mrf.mxu0 }
 0x745   :  { %v4077_v46 = vadd.f32 %v7112_v44, %v8415_v11  ;;  %v4320_v54 = vmax.f32 %v4066_v45, 0.0 }
 0x746   :  { %v4068_v48 = vpop.f32.mrf.mxu0 }
 0x747   :  { %v4069_v51 = vadd.f32 %v8415_v11, %v4068_v48  ;;  %v4323_v52 = vmax.f32 %v4077_v46, 0.0 }
 0x748   :  { %v7115_v53 = vpop.f32.mrf.mxu0 }
 0x749   :  { %v4321_v55 = vmax.f32 %v4069_v51, 0.0  ;;  %v4385_v60 = vpack.c.bf16 %v4323_v52, %v4322_v56  ;;  %v4090_v0 = vadd.f32 %v7115_v53, %v8415_v11 }
 0x74a   :  { %v4081_v57 = vpop.f32.mrf.mxu0 }
 0x74b   :  { %v4384_v59 = vpack.c.bf16 %v4321_v55, %v4320_v54  ;;  %v4082_v62 = vadd.f32 %v8415_v11, %v4081_v57  ;;  %v4326_v8 = vmax.f32 %v4090_v0, 0.0 }
 0x74c   :  { %v7116_v61 = vpop.f32.mrf.mxu0 }
 0x74d   :  { %v4093_v63 = vadd.f32 %v7116_v61, %v8415_v11  ;;  %7189 = vmatprep.mubr.bf16.mxu1 %v4384_v59  ;;  %v4324_v6 = vmax.f32 %v4082_v62, 0.0 }
 0x74e   :  { %v4084_v1 = vpop.f32.mrf.mxu0  ;;  %7190 = vmatmul.mubr.bf16.vlgmr.msra.gmra.mxu1 %v4385_v60 }
 0x74f   :  { %v4085_v3 = vadd.f32 %v8415_v11, %v4084_v1  ;;  %v4327_v4 = vmax.f32 %v4093_v63, 0.0 }
 0x750   :  { %v7119_v5 = vpop.f32.mrf.mxu0 }
 0x751   :  { %v4325_v7 = vmax.f32 %v4085_v3, 0.0  ;;  %v4387_v13 = vpack.c.bf16 %v4327_v4, %v4326_v8  ;;  %v4106_v17 = vadd.f32 %v7119_v5, %v8415_v11 }
 0x752   :  { %v4097_v9 = vpop.f32.mrf.mxu0 }
 0x753   :  { %v4386_v12 = vpack.c.bf16 %v4325_v7, %v4324_v6  ;;  %v4098_v15 = vadd.f32 %v8415_v11, %v4097_v9  ;;  %v4330_v24 = vmax.f32 %v4106_v17, 0.0 }
 0x754   :  { %v7120_v14 = vpop.f32.mrf.mxu0 }
 0x755   :  { %v4109_v16 = vadd.f32 %v7120_v14, %v8415_v11  ;;  %7193 = vmatprep.mubr.bf16.mxu1 %v4386_v12  ;;  %v4328_v22 = vmax.f32 %v4098_v15, 0.0 }
 0x756   :  { %v4100_v18 = vpop.f32.mrf.mxu0  ;;  %7194 = vmatmul.mubr.bf16.gmra.mxu1 %v4387_v13 }
 0x757   :  { %v4101_v19 = vadd.f32 %v8415_v11, %v4100_v18  ;;  %v4331_v20 = vmax.f32 %v4109_v16, 0.0 }
 0x758   :  { %v7123_v21 = vpop.f32.mrf.mxu0 }
 0x759   :  { %v4329_v23 = vmax.f32 %v4101_v19, 0.0  ;;  %v4389_v27 = vpack.c.bf16 %v4331_v20, %v4330_v24  ;;  %v4122_v31 = vadd.f32 %v7123_v21, %v8415_v11 }
 0x75a   :  { %v4113_v25 = vpop.f32.mrf.mxu0 }
 0x75b   :  { %v4388_v26 = vpack.c.bf16 %v4329_v23, %v4328_v22  ;;  %v4114_v29 = vadd.f32 %v8415_v11, %v4113_v25  ;;  %v4334_v38 = vmax.f32 %v4122_v31, 0.0 }
 0x75c   :  { %v7124_v28 = vpop.f32.mrf.mxu0 }
 0x75d   :  { %v4125_v30 = vadd.f32 %v7124_v28, %v8415_v11  ;;  %7197 = vmatprep.mubr.bf16.mxu1 %v4388_v26  ;;  %v4332_v36 = vmax.f32 %v4114_v29, 0.0 }
 0x75e   :  { %v4116_v32 = vpop.f32.mrf.mxu0  ;;  %7198 = vmatmul.mubr.bf16.gmra.mxu1 %v4389_v27 }
 0x75f   :  { %v4117_v33 = vadd.f32 %v8415_v11, %v4116_v32  ;;  %v4335_v34 = vmax.f32 %v4125_v30, 0.0 }
 0x760   :  { %v7127_v35 = vpop.f32.mrf.mxu0 }
 0x761   :  { %v4333_v37 = vmax.f32 %v4117_v33, 0.0  ;;  %v4391_v41 = vpack.c.bf16 %v4335_v34, %v4334_v38  ;;  %v4138_v45 = vadd.f32 %v7127_v35, %v8415_v11 }
 0x762   :  { %v4129_v39 = vpop.f32.mrf.mxu0 }
 0x763   :  { %v4390_v40 = vpack.c.bf16 %v4333_v37, %v4332_v36  ;;  %v4130_v43 = vadd.f32 %v8415_v11, %v4129_v39  ;;  %v4338_v52 = vmax.f32 %v4138_v45, 0.0 }
 0x764   :  { %v7128_v42 = vpop.f32.mrf.mxu0 }
 0x765   :  { %v4141_v44 = vadd.f32 %v7128_v42, %v8415_v11  ;;  %7201 = vmatprep.mubr.bf16.mxu1 %v4390_v40  ;;  %v4336_v50 = vmax.f32 %v4130_v43, 0.0 }
 0x766   :  { %v4132_v46 = vpop.f32.mrf.mxu0  ;;  %7202 = vmatmul.mubr.bf16.gmra.mxu1 %v4391_v41 }
 0x767   :  { %v4133_v47 = vadd.f32 %v8415_v11, %v4132_v46  ;;  %v4339_v48 = vmax.f32 %v4141_v44, 0.0 }
 0x768   :  { %v7131_v49 = vpop.f32.mrf.mxu0 }
 0x769   :  { %v4337_v51 = vmax.f32 %v4133_v47, 0.0  ;;  %v4393_v55 = vpack.c.bf16 %v4339_v48, %v4338_v52  ;;  %v4154_v59 = vadd.f32 %v7131_v49, %v8415_v11 }
 0x76a   :  { %v4145_v53 = vpop.f32.mrf.mxu0 }
 0x76b   :  { %v4392_v54 = vpack.c.bf16 %v4337_v51, %v4336_v50  ;;  %v4146_v57 = vadd.f32 %v8415_v11, %v4145_v53  ;;  %v4342_v2 = vmax.f32 %v4154_v59, 0.0 }
 0x76c   :  { %v7132_v56 = vpop.f32.mrf.mxu0 }
 0x76d   :  { %v4157_v58 = vadd.f32 %v7132_v56, %v8415_v11  ;;  %7205 = vmatprep.mubr.bf16.mxu1 %v4392_v54  ;;  %v4340_v0 = vmax.f32 %v4146_v57, 0.0 }
 0x76e   :  { %v4148_v60 = vpop.f32.mrf.mxu0  ;;  %7206 = vmatmul.mubr.bf16.gmra.mxu1 %v4393_v55 }
 0x76f   :  { %v4149_v61 = vadd.f32 %v8415_v11, %v4148_v60  ;;  %v4343_v62 = vmax.f32 %v4157_v58, 0.0 }
 0x770   :  { %v7135_v63 = vpop.f32.mrf.mxu0 }
 0x771   :  { %v4341_v1 = vmax.f32 %v4149_v61, 0.0  ;;  %v4395_v5 = vpack.c.bf16 %v4343_v62, %v4342_v2  ;;  %v4170_v9 = vadd.f32 %v7135_v63, %v8415_v11 }
 0x772   :  { %v4161_v3 = vpop.f32.mrf.mxu0 }
 0x773   :  { %v4394_v4 = vpack.c.bf16 %v4341_v1, %v4340_v0  ;;  %v4162_v7 = vadd.f32 %v8415_v11, %v4161_v3  ;;  %v4346_v17 = vmax.f32 %v4170_v9, 0.0 }
 0x774   :  { %v7136_v6 = vpop.f32.mrf.mxu0 }
 0x775   :  { %v4173_v8 = vadd.f32 %v7136_v6, %v8415_v11  ;;  %7209 = vmatprep.mubr.bf16.mxu1 %v4394_v4  ;;  %v4344_v15 = vmax.f32 %v4162_v7, 0.0 }
 0x776   :  { %v4164_v10 = vpop.f32.mrf.mxu0  ;;  %7210 = vmatmul.mubr.bf16.gmra.mxu1 %v4395_v5 }
 0x777   :  { %v4165_v12 = vadd.f32 %v8415_v11, %v4164_v10  ;;  %v4347_v13 = vmax.f32 %v4173_v8, 0.0 }
 0x778   :  { %v7139_v14 = vpop.f32.mrf.mxu0 }
 0x779   :  { %v4345_v16 = vmax.f32 %v4165_v12, 0.0  ;;  %v4397_v20 = vpack.c.bf16 %v4347_v13, %v4346_v17  ;;  %v4186_v24 = vadd.f32 %v7139_v14, %v8415_v11 }
 0x77a   :  { %v4177_v18 = vpop.f32.mrf.mxu0 }
 0x77b   :  { %v4396_v19 = vpack.c.bf16 %v4345_v16, %v4344_v15  ;;  %v4178_v22 = vadd.f32 %v8415_v11, %v4177_v18  ;;  %v4350_v31 = vmax.f32 %v4186_v24, 0.0 }
 0x77c   :  { %v7140_v21 = vpop.f32.mrf.mxu0 }
 0x77d   :  { %v4189_v23 = vadd.f32 %v7140_v21, %v8415_v11  ;;  %7213 = vmatprep.mubr.bf16.mxu1 %v4396_v19  ;;  %v4348_v29 = vmax.f32 %v4178_v22, 0.0 }
 0x77e   :  { %v4180_v25 = vpop.f32.mrf.mxu0  ;;  %7214 = vmatmul.mubr.bf16.gmra.mxu1 %v4397_v20 }
 0x77f   :  { %v4181_v26 = vadd.f32 %v8415_v11, %v4180_v25  ;;  %v4351_v27 = vmax.f32 %v4189_v23, 0.0 }
 0x780   :  { %v7143_v28 = vpop.f32.mrf.mxu0 }
 0x781   :  { %v4349_v30 = vmax.f32 %v4181_v26, 0.0  ;;  %v4399_v34 = vpack.c.bf16 %v4351_v27, %v4350_v31  ;;  %v4202_v38 = vadd.f32 %v7143_v28, %v8415_v11 }
 0x782   :  { %v4193_v32 = vpop.f32.mrf.mxu0 }
 0x783   :  { %v4398_v33 = vpack.c.bf16 %v4349_v30, %v4348_v29  ;;  %v4194_v36 = vadd.f32 %v8415_v11, %v4193_v32  ;;  %v4354_v45 = vmax.f32 %v4202_v38, 0.0 }
 0x784   :  { %v7144_v35 = vpop.f32.mrf.mxu0 }
 0x785   :  { %v4205_v37 = vadd.f32 %v7144_v35, %v8415_v11  ;;  %7217 = vmatprep.mubr.bf16.mxu1 %v4398_v33  ;;  %v4352_v43 = vmax.f32 %v4194_v36, 0.0 }
 0x786   :  { %v4196_v39 = vpop.f32.mrf.mxu0  ;;  %7218 = vmatmul.mubr.bf16.gmra.mxu1 %v4399_v34 }
 0x787   :  { %v4197_v40 = vadd.f32 %v8415_v11, %v4196_v39  ;;  %v4355_v41 = vmax.f32 %v4205_v37, 0.0 }
 0x788   :  { %v7147_v42 = vpop.f32.mrf.mxu0 }
 0x789   :  { %v4353_v44 = vmax.f32 %v4197_v40, 0.0  ;;  %v4401_v48 = vpack.c.bf16 %v4355_v41, %v4354_v45  ;;  %v4218_v52 = vadd.f32 %v7147_v42, %v8415_v11 }
 0x78a   :  { %v4209_v46 = vpop.f32.mrf.mxu0 }
 0x78b   :  { %v4400_v47 = vpack.c.bf16 %v4353_v44, %v4352_v43  ;;  %v4210_v50 = vadd.f32 %v8415_v11, %v4209_v46  ;;  %v4358_v59 = vmax.f32 %v4218_v52, 0.0 }
 0x78c   :  { %v7148_v49 = vpop.f32.mrf.mxu0 }
 0x78d   :  { %v4221_v51 = vadd.f32 %v7148_v49, %v8415_v11  ;;  %7221 = vmatprep.mubr.bf16.mxu1 %v4400_v47  ;;  %v4356_v57 = vmax.f32 %v4210_v50, 0.0 }
 0x78e   :  { %v4212_v53 = vpop.f32.mrf.mxu0  ;;  %7222 = vmatmul.mubr.bf16.gmra.mxu1 %v4401_v48 }
 0x78f   :  { %v4213_v54 = vadd.f32 %v8415_v11, %v4212_v53  ;;  %v4359_v55 = vmax.f32 %v4221_v51, 0.0 }
 0x790   :  { %v7151_v56 = vpop.f32.mrf.mxu0 }
 0x791   :  { %v4357_v58 = vmax.f32 %v4213_v54, 0.0  ;;  %v4403_v62 = vpack.c.bf16 %v4359_v55, %v4358_v59  ;;  %v4234_v2 = vadd.f32 %v7151_v56, %v8415_v11 }
 0x792   :  { %v4225_v60 = vpop.f32.mrf.mxu0 }
 0x793   :  { %v4402_v61 = vpack.c.bf16 %v4357_v58, %v4356_v57  ;;  %v4226_v0 = vadd.f32 %v8415_v11, %v4225_v60  ;;  %v4362_v9 = vmax.f32 %v4234_v2, 0.0 }
 0x794   :  { %v7152_v63 = vpop.f32.mrf.mxu0 }
 0x795   :  { %v4237_v1 = vadd.f32 %v7152_v63, %v8415_v11  ;;  %7225 = vmatprep.mubr.bf16.mxu1 %v4402_v61  ;;  %v4360_v7 = vmax.f32 %v4226_v0, 0.0 }
 0x796   :  { %v4228_v3 = vpop.f32.mrf.mxu0  ;;  %7226 = vmatmul.mubr.bf16.gmra.mxu1 %v4403_v62 }
 0x797   :  { %v4229_v4 = vadd.f32 %v8415_v11, %v4228_v3  ;;  %v4363_v5 = vmax.f32 %v4237_v1, 0.0 }
 0x798   :  { %v7155_v6 = vpop.f32.mrf.mxu0 }
 0x799   :  { %v4361_v8 = vmax.f32 %v4229_v4, 0.0  ;;  %v4405_v13 = vpack.c.bf16 %v4363_v5, %v4362_v9  ;;  %v4250_v17 = vadd.f32 %v7155_v6, %v8415_v11 }
 0x79a   :  { %v4241_v10 = vpop.f32.mrf.mxu0 }
 0x79b   :  { %v4404_v12 = vpack.c.bf16 %v4361_v8, %v4360_v7  ;;  %v4242_v15 = vadd.f32 %v8415_v11, %v4241_v10  ;;  %v4366_v24 = vmax.f32 %v4250_v17, 0.0 }
 0x79c   :  { %v7156_v14 = vpop.f32.mrf.mxu0 }
 0x79d   :  { %v4253_v16 = vadd.f32 %v7156_v14, %v8415_v11  ;;  %7229 = vmatprep.mubr.bf16.mxu1 %v4404_v12  ;;  %v4364_v22 = vmax.f32 %v4242_v15, 0.0 }
 0x79e   :  { %v4244_v18 = vpop.f32.mrf.mxu0  ;;  %7230 = vmatmul.mubr.bf16.gmra.mxu1 %v4405_v13 }
 0x79f   :  { %v4245_v19 = vadd.f32 %v8415_v11, %v4244_v18  ;;  %v4367_v20 = vmax.f32 %v4253_v16, 0.0 }
 0x7a0   :  { %v7159_v21 = vpop.f32.mrf.mxu0 }
 0x7a1   :  { %v4365_v23 = vmax.f32 %v4245_v19, 0.0  ;;  %v4407_v27 = vpack.c.bf16 %v4367_v20, %v4366_v24  ;;  %v4266_v31 = vadd.f32 %v7159_v21, %v8415_v11  ;;  %v7515_v19 = vld [vmem:[#allocation2 + $0x2b8] sm:$0xff]   ;;  %v7516_v20 = vld [vmem:[#allocation2 + $0x2b0] sm:$0xff]  }
 0x7a2   :  { %v4257_v25 = vpop.f32.mrf.mxu0  ;;  %7413 = vmatprep.subr.bf16.mxu1 %v7515_v19  ;;  %7333 = vmatprep.subr.bf16.mxu0 %v7515_v19 }
 0x7a3   :  { %v4406_v26 = vpack.c.bf16 %v4365_v23, %v4364_v22  ;;  %v4258_v29 = vadd.f32 %v8415_v11, %v4257_v25  ;;  %v4370_v38 = vmax.f32 %v4266_v31, 0.0  ;;  %7421 = vmatpush3.bf16.msra.mxu1 %v7515_v19  ;;  %v7517_v23 = vld [vmem:[#allocation2 + $0x2a8] sm:$0xff]  }
 0x7a4   :  { %v7160_v28 = vpop.f32.mrf.mxu0  ;;  %7414 = vmatprep.subr.bf16.mxu1 %v7516_v20 }
 0x7a5   :  { %v4269_v30 = vadd.f32 %v7160_v28, %v8415_v11  ;;  %7233 = vmatprep.mubr.bf16.mxu1 %v4406_v26  ;;  %v4368_v36 = vmax.f32 %v4258_v29, 0.0  ;;  %v7518_v29 = vld [vmem:[#allocation2 + $0x2a0] sm:$0xff]  }
 0x7a6   :  { %v4260_v32 = vpop.f32.mrf.mxu0  ;;  %7234 = vmatmul.mubr.bf16.gmra.mxu1 %v4407_v27 }
 0x7a7   :  { %v4261_v33 = vadd.f32 %v8415_v11, %v4260_v32  ;;  %v4371_v34 = vmax.f32 %v4269_v30, 0.0  ;;  %7422 = vmatpush3.bf16.msra.mxu1 %v7516_v20 }
 0x7a8   :  { %v7163_v35 = vpop.f32.mrf.mxu0  ;;  %7415 = vmatprep.subr.bf16.mxu1 %v7517_v23 }
 0x7a9   :  { %v4369_v37 = vmax.f32 %v4261_v33, 0.0  ;;  %v4409_v41 = vpack.c.bf16 %v4371_v34, %v4370_v38  ;;  %v4282_v45 = vadd.f32 %v7163_v35, %v8415_v11  ;;  %v7519_v35 = vld [vmem:[#allocation2 + $0x298] sm:$0xff]  }
 0x7aa   :  { %v4273_v39 = vpop.f32.mrf.mxu0 }
 0x7ab   :  { %v4408_v40 = vpack.c.bf16 %v4369_v37, %v4368_v36  ;;  %v4274_v43 = vadd.f32 %v8415_v11, %v4273_v39  ;;  %v4374_v52 = vmax.f32 %v4282_v45, 0.0  ;;  %7423 = vmatpush3.bf16.msra.mxu1 %v7517_v23 }
 0x7ac   :  { %v7164_v42 = vpop.f32.mrf.mxu0  ;;  %7416 = vmatprep.subr.bf16.mxu1 %v7518_v29 }
 0x7ad   :  { %v4285_v44 = vadd.f32 %v7164_v42, %v8415_v11  ;;  %7237 = vmatprep.mubr.bf16.mxu1 %v4408_v40  ;;  %v4372_v50 = vmax.f32 %v4274_v43, 0.0  ;;  %v7520_v43 = vld [vmem:[#allocation2 + $0x290] sm:$0xff]  }
 0x7ae   :  { %v4276_v46 = vpop.f32.mrf.mxu0  ;;  %7238 = vmatmul.mubr.bf16.gmra.mxu1 %v4409_v41 }
 0x7af   :  { %v4277_v47 = vadd.f32 %v8415_v11, %v4276_v46  ;;  %v4375_v48 = vmax.f32 %v4285_v44, 0.0  ;;  %7424 = vmatpush3.bf16.msra.mxu1 %v7518_v29 }
 0x7b0   :  { %v7167_v49 = vpop.f32.mrf.mxu0  ;;  %7417 = vmatprep.subr.bf16.mxu1 %v7519_v35 }
 0x7b1   :  { %v4373_v51 = vmax.f32 %v4277_v47, 0.0  ;;  %v4411_v55 = vpack.c.bf16 %v4375_v48, %v4374_v52  ;;  %v4298_v59 = vadd.f32 %v7167_v49, %v8415_v11 }
 0x7b2   :  { %v4289_v53 = vpop.f32.mrf.mxu0 }
 0x7b3   :  { %v4410_v54 = vpack.c.bf16 %v4373_v51, %v4372_v50  ;;  %v4290_v57 = vadd.f32 %v8415_v11, %v4289_v53  ;;  %v4378_v2 = vmax.f32 %v4298_v59, 0.0  ;;  %7425 = vmatpush3.bf16.msra.mxu1 %v7519_v35  ;;  %v7521_v51 = vld [vmem:[#allocation2 + $0x288] sm:$0xff]  }
 0x7b4   :  { %v7168_v56 = vpop.f32.mrf.mxu0  ;;  %7418 = vmatprep.subr.bf16.mxu1 %v7520_v43 }
 0x7b5   :  { %v4301_v58 = vadd.f32 %v7168_v56, %v8415_v11  ;;  %7241 = vmatprep.mubr.bf16.mxu1 %v4410_v54  ;;  %v4376_v0 = vmax.f32 %v4290_v57, 0.0 }
 0x7b6   :  { %v4292_v60 = vpop.f32.mrf.mxu0  ;;  %7242 = vmatmul.mubr.bf16.gmra.mxu1 %v4411_v55 }
 0x7b7   :  { %v4293_v61 = vadd.f32 %v8415_v11, %v4292_v60  ;;  %v4379_v62 = vmax.f32 %v4301_v58, 0.0  ;;  %7426 = vmatpush3.bf16.msra.mxu1 %v7520_v43 }
 0x7b8   :  { %v7171_v63 = vpop.f32.mrf.mxu0  ;;  %7419 = vmatprep.subr.bf16.mxu1 %v7521_v51 }
 0x7b9   :  { %v4377_v1 = vmax.f32 %v4293_v61, 0.0  ;;  %v4413_v5 = vpack.c.bf16 %v4379_v62, %v4378_v2  ;;  %v4314_v9 = vadd.f32 %v7171_v63, %v8415_v11 }
 0x7ba   :  { %v4305_v3 = vpop.f32.mrf.mxu0 }
 0x7bb   :  { %v4412_v4 = vpack.c.bf16 %v4377_v1, %v4376_v0  ;;  %v4306_v7 = vadd.f32 %v8415_v11, %v4305_v3  ;;  %v4382_v16 = vmax.f32 %v4314_v9, 0.0  ;;  %7427 = vmatpush3.bf16.msra.mxu1 %v7521_v51 }
 0x7bc   :  { %v7172_v6 = vpop.f32.mrf.mxu0 }
 0x7bd   :  { %v4317_v8 = vadd.f32 %v7172_v6, %v8415_v11  ;;  %7245 = vmatprep.mubr.bf16.mxu1 %v4412_v4  ;;  %v4380_v14 = vmax.f32 %v4306_v7, 0.0 }
 0x7be   :  { %v4308_v10 = vpop.f32.mrf.mxu0  ;;  %7246 = vmatmul.mubr.bf16.gmra.mxu1 %v4413_v5 }
 0x7bf   :  { %v4309_v12 = vadd.f32 %v8415_v11, %v4308_v10  ;;  %v4383_v13 = vmax.f32 %v4317_v8, 0.0  ;;  %v8484_v11 = vld [vmem:[%s8694_s3 + $0x9] ss:$0 sm:$0xff] }
 0x7c1   :  { %v4381_v15 = vmax.f32 %v4309_v12, 0.0  ;;  %v4415_v18 = vpack.c.bf16 %v4383_v13, %v4382_v16 }
 0x7c3   :  { %v4414_v17 = vpack.c.bf16 %v4381_v15, %v4380_v14 }
 0x7c5   :  { %7249 = vmatprep.mubr.bf16.mxu1 %v4414_v17 }
 0x7c6   :  { %7250 = vmatmul.mubr.bf16.gmra.mxu1 %v4415_v18 }
 0x80e   :  { %v7191_v21 = vpop.f32.mrf.mxu1 }
 0x80f   :  { %v4529_v27 = vadd.f32 %v7191_v21, %v8484_v11 }
 0x810   :  { %v4520_v22 = vpop.f32.mrf.mxu1 }
 0x811   :  { %v4521_v25 = vadd.f32 %v8484_v11, %v4520_v22  ;;  %v4777_v36 = vmax.f32 %v4529_v27, 0.0 }
 0x812   :  { %v7192_v24 = vpop.f32.mrf.mxu1 }
 0x813   :  { %v4532_v26 = vadd.f32 %v7192_v24, %v8484_v11  ;;  %v4775_v33 = vmax.f32 %v4521_v25, 0.0 }
 0x814   :  { %v4523_v28 = vpop.f32.mrf.mxu1 }
 0x815   :  { %v4524_v30 = vadd.f32 %v8484_v11, %v4523_v28  ;;  %v4778_v31 = vmax.f32 %v4532_v26, 0.0 }
 0x816   :  { %v7195_v32 = vpop.f32.mrf.mxu1 }
 0x817   :  { %v4776_v34 = vmax.f32 %v4524_v30, 0.0  ;;  %v4840_v39 = vpack.c.bf16 %v4778_v31, %v4777_v36  ;;  %v4545_v44 = vadd.f32 %v7195_v32, %v8484_v11 }
 0x818   :  { %v4536_v37 = vpop.f32.mrf.mxu1 }
 0x819   :  { %v4839_v38 = vpack.c.bf16 %v4776_v34, %v4775_v33  ;;  %v4537_v41 = vadd.f32 %v8484_v11, %v4536_v37  ;;  %v4781_v52 = vmax.f32 %v4545_v44, 0.0 }
 0x81a   :  { %v7196_v40 = vpop.f32.mrf.mxu1 }
 0x81b   :  { %v4548_v42 = vadd.f32 %v7196_v40, %v8484_v11  ;;  %7269 = vmatprep.mubr.bf16.mxu0 %v4839_v38  ;;  %v4779_v49 = vmax.f32 %v4537_v41, 0.0 }
 0x81c   :  { %v4539_v45 = vpop.f32.mrf.mxu1  ;;  %7270 = vmatmul.mubr.bf16.vlgmr.msra.gmra.mxu0 %v4840_v39 }
 0x81d   :  { %v4540_v46 = vadd.f32 %v8484_v11, %v4539_v45  ;;  %7334 = vmatpush3.bf16.msra.mxu0 %v7515_v19  ;;  %v4782_v47 = vmax.f32 %v4548_v42, 0.0 }
 0x81e   :  { %v7199_v48 = vpop.f32.mrf.mxu1  ;;  %7335 = vmatprep.subr.bf16.mxu0 %v7516_v20 }
 0x81f   :  { %v4780_v50 = vmax.f32 %v4540_v46, 0.0  ;;  %v4842_v55 = vpack.c.bf16 %v4782_v47, %v4781_v52  ;;  %v4561_v59 = vadd.f32 %v7199_v48, %v8484_v11 }
 0x820   :  { %v4552_v53 = vpop.f32.mrf.mxu1 }
 0x821   :  { %v4841_v54 = vpack.c.bf16 %v4780_v50, %v4779_v49  ;;  %7336 = vmatpush3.bf16.msra.mxu0 %v7516_v20  ;;  %v4553_v57 = vadd.f32 %v8484_v11, %v4552_v53  ;;  %v4785_v2 = vmax.f32 %v4561_v59, 0.0 }
 0x822   :  { %v7200_v56 = vpop.f32.mrf.mxu1  ;;  %7337 = vmatprep.subr.bf16.mxu0 %v7517_v23 }
 0x823   :  { %v4564_v58 = vadd.f32 %v7200_v56, %v8484_v11  ;;  %7273 = vmatprep.mubr.bf16.mxu0 %v4841_v54  ;;  %v4783_v0 = vmax.f32 %v4553_v57, 0.0 }
 0x824   :  { %v4555_v60 = vpop.f32.mrf.mxu1  ;;  %7274 = vmatmul.mubr.bf16.gmra.mxu0 %v4842_v55 }
 0x825   :  { %v4556_v61 = vadd.f32 %v8484_v11, %v4555_v60  ;;  %7338 = vmatpush3.bf16.msra.mxu0 %v7517_v23  ;;  %v4786_v62 = vmax.f32 %v4564_v58, 0.0 }
 0x826   :  { %v7203_v63 = vpop.f32.mrf.mxu1  ;;  %7339 = vmatprep.subr.bf16.mxu0 %v7518_v29 }
 0x827   :  { %v4784_v1 = vmax.f32 %v4556_v61, 0.0  ;;  %v4844_v5 = vpack.c.bf16 %v4786_v62, %v4785_v2  ;;  %v4577_v9 = vadd.f32 %v7203_v63, %v8484_v11 }
 0x828   :  { %v4568_v3 = vpop.f32.mrf.mxu1 }
 0x829   :  { %v4843_v4 = vpack.c.bf16 %v4784_v1, %v4783_v0  ;;  %7340 = vmatpush3.bf16.msra.mxu0 %v7518_v29  ;;  %v4569_v7 = vadd.f32 %v8484_v11, %v4568_v3  ;;  %v4789_v17 = vmax.f32 %v4577_v9, 0.0 }
 0x82a   :  { %v7204_v6 = vpop.f32.mrf.mxu1  ;;  %7341 = vmatprep.subr.bf16.mxu0 %v7519_v35 }
 0x82b   :  { %v4580_v8 = vadd.f32 %v7204_v6, %v8484_v11  ;;  %7277 = vmatprep.mubr.bf16.mxu0 %v4843_v4  ;;  %v4787_v15 = vmax.f32 %v4569_v7, 0.0 }
 0x82c   :  { %v4571_v10 = vpop.f32.mrf.mxu1  ;;  %7278 = vmatmul.mubr.bf16.gmra.mxu0 %v4844_v5 }
 0x82d   :  { %v4572_v12 = vadd.f32 %v8484_v11, %v4571_v10  ;;  %7342 = vmatpush3.bf16.msra.mxu0 %v7519_v35  ;;  %v4790_v13 = vmax.f32 %v4580_v8, 0.0 }
 0x82e   :  { %v7207_v14 = vpop.f32.mrf.mxu1  ;;  %7343 = vmatprep.subr.bf16.mxu0 %v7520_v43 }
 0x82f   :  { %v4788_v16 = vmax.f32 %v4572_v12, 0.0  ;;  %v4846_v20 = vpack.c.bf16 %v4790_v13, %v4789_v17  ;;  %v4593_v24 = vadd.f32 %v7207_v14, %v8484_v11 }
 0x830   :  { %v4584_v18 = vpop.f32.mrf.mxu1 }
 0x831   :  { %v4845_v19 = vpack.c.bf16 %v4788_v16, %v4787_v15  ;;  %7344 = vmatpush3.bf16.msra.mxu0 %v7520_v43  ;;  %v4585_v22 = vadd.f32 %v8484_v11, %v4584_v18  ;;  %v4793_v31 = vmax.f32 %v4593_v24, 0.0 }
 0x832   :  { %v7208_v21 = vpop.f32.mrf.mxu1  ;;  %7345 = vmatprep.subr.bf16.mxu0 %v7521_v51 }
 0x833   :  { %v4596_v23 = vadd.f32 %v7208_v21, %v8484_v11  ;;  %7281 = vmatprep.mubr.bf16.mxu0 %v4845_v19  ;;  %v4791_v29 = vmax.f32 %v4585_v22, 0.0 }
 0x834   :  { %v4587_v25 = vpop.f32.mrf.mxu1  ;;  %7282 = vmatmul.mubr.bf16.gmra.mxu0 %v4846_v20 }
 0x835   :  { %v4588_v26 = vadd.f32 %v8484_v11, %v4587_v25  ;;  %7346 = vmatpush3.bf16.msra.mxu0 %v7521_v51  ;;  %v4794_v27 = vmax.f32 %v4596_v23, 0.0 }
 0x836   :  { %v7211_v28 = vpop.f32.mrf.mxu1 }
 0x837   :  { %v4792_v30 = vmax.f32 %v4588_v26, 0.0  ;;  %v4848_v34 = vpack.c.bf16 %v4794_v27, %v4793_v31  ;;  %v4609_v38 = vadd.f32 %v7211_v28, %v8484_v11 }
 0x838   :  { %v4600_v32 = vpop.f32.mrf.mxu1 }
 0x839   :  { %v4847_v33 = vpack.c.bf16 %v4792_v30, %v4791_v29  ;;  %v4601_v36 = vadd.f32 %v8484_v11, %v4600_v32  ;;  %v4797_v45 = vmax.f32 %v4609_v38, 0.0 }
 0x83a   :  { %v7212_v35 = vpop.f32.mrf.mxu1 }
 0x83b   :  { %v4612_v37 = vadd.f32 %v7212_v35, %v8484_v11  ;;  %7285 = vmatprep.mubr.bf16.mxu0 %v4847_v33  ;;  %v4795_v43 = vmax.f32 %v4601_v36, 0.0 }
 0x83c   :  { %v4603_v39 = vpop.f32.mrf.mxu1  ;;  %7286 = vmatmul.mubr.bf16.gmra.mxu0 %v4848_v34 }
 0x83d   :  { %v4604_v40 = vadd.f32 %v8484_v11, %v4603_v39  ;;  %v4798_v41 = vmax.f32 %v4612_v37, 0.0 }
 0x83e   :  { %v7215_v42 = vpop.f32.mrf.mxu1 }
 0x83f   :  { %v4796_v44 = vmax.f32 %v4604_v40, 0.0  ;;  %v4850_v48 = vpack.c.bf16 %v4798_v41, %v4797_v45  ;;  %v4625_v52 = vadd.f32 %v7215_v42, %v8484_v11 }
 0x840   :  { %v4616_v46 = vpop.f32.mrf.mxu1 }
 0x841   :  { %v4849_v47 = vpack.c.bf16 %v4796_v44, %v4795_v43  ;;  %v4617_v50 = vadd.f32 %v8484_v11, %v4616_v46  ;;  %v4801_v59 = vmax.f32 %v4625_v52, 0.0 }
 0x842   :  { %v7216_v49 = vpop.f32.mrf.mxu1 }
 0x843   :  { %v4628_v51 = vadd.f32 %v7216_v49, %v8484_v11  ;;  %7289 = vmatprep.mubr.bf16.mxu0 %v4849_v47  ;;  %v4799_v57 = vmax.f32 %v4617_v50, 0.0  ;;  %v7522_v47 = vld [vmem:[#allocation2 + $0x280] sm:$0xff]  }
 0x844   :  { %v4619_v53 = vpop.f32.mrf.mxu1  ;;  %7290 = vmatmul.mubr.bf16.gmra.mxu0 %v4850_v48  ;;  %7420 = vmatprep.subr.bf16.mxu1 %v7522_v47 }
 0x845   :  { %v4620_v54 = vadd.f32 %v8484_v11, %v4619_v53  ;;  %v4802_v55 = vmax.f32 %v4628_v51, 0.0  ;;  %7347 = vmatprep.subr.bf16.mxu0 %v7522_v47  ;;  %7428 = vmatpush3.bf16.msra.mxu1 %v7522_v47 }
 0x846   :  { %v7219_v56 = vpop.f32.mrf.mxu1  ;;  %7348 = vmatpush3.bf16.msra.mxu0 %v7522_v47 }
 0x847   :  { %v4800_v58 = vmax.f32 %v4620_v54, 0.0  ;;  %v4852_v62 = vpack.c.bf16 %v4802_v55, %v4801_v59  ;;  %v4641_v2 = vadd.f32 %v7219_v56, %v8484_v11 }
 0x848   :  { %v4632_v60 = vpop.f32.mrf.mxu1 }
 0x849   :  { %v4851_v61 = vpack.c.bf16 %v4800_v58, %v4799_v57  ;;  %v4633_v0 = vadd.f32 %v8484_v11, %v4632_v60  ;;  %v4805_v9 = vmax.f32 %v4641_v2, 0.0 }
 0x84a   :  { %v7220_v63 = vpop.f32.mrf.mxu1 }
 0x84b   :  { %v4644_v1 = vadd.f32 %v7220_v63, %v8484_v11  ;;  %7293 = vmatprep.mubr.bf16.mxu0 %v4851_v61  ;;  %v4803_v7 = vmax.f32 %v4633_v0, 0.0 }
 0x84c   :  { %v4635_v3 = vpop.f32.mrf.mxu1  ;;  %7294 = vmatmul.mubr.bf16.gmra.mxu0 %v4852_v62 }
 0x84d   :  { %v4636_v4 = vadd.f32 %v8484_v11, %v4635_v3  ;;  %v4806_v5 = vmax.f32 %v4644_v1, 0.0 }
 0x84e   :  { %v7223_v6 = vpop.f32.mrf.mxu1 }
 0x84f   :  { %v4804_v8 = vmax.f32 %v4636_v4, 0.0  ;;  %v4854_v13 = vpack.c.bf16 %v4806_v5, %v4805_v9  ;;  %v4657_v17 = vadd.f32 %v7223_v6, %v8484_v11 }
 0x850   :  { %v4648_v10 = vpop.f32.mrf.mxu1 }
 0x851   :  { %v4853_v12 = vpack.c.bf16 %v4804_v8, %v4803_v7  ;;  %v4649_v15 = vadd.f32 %v8484_v11, %v4648_v10  ;;  %v4809_v24 = vmax.f32 %v4657_v17, 0.0 }
 0x852   :  { %v7224_v14 = vpop.f32.mrf.mxu1 }
 0x853   :  { %v4660_v16 = vadd.f32 %v7224_v14, %v8484_v11  ;;  %7297 = vmatprep.mubr.bf16.mxu0 %v4853_v12  ;;  %v4807_v22 = vmax.f32 %v4649_v15, 0.0 }
 0x854   :  { %v4651_v18 = vpop.f32.mrf.mxu1  ;;  %7298 = vmatmul.mubr.bf16.gmra.mxu0 %v4854_v13 }
 0x855   :  { %v4652_v19 = vadd.f32 %v8484_v11, %v4651_v18  ;;  %v4810_v20 = vmax.f32 %v4660_v16, 0.0 }
 0x856   :  { %v7227_v21 = vpop.f32.mrf.mxu1 }
 0x857   :  { %v4808_v23 = vmax.f32 %v4652_v19, 0.0  ;;  %v4856_v27 = vpack.c.bf16 %v4810_v20, %v4809_v24  ;;  %v4673_v31 = vadd.f32 %v7227_v21, %v8484_v11 }
 0x858   :  { %v4664_v25 = vpop.f32.mrf.mxu1 }
 0x859   :  { %v4855_v26 = vpack.c.bf16 %v4808_v23, %v4807_v22  ;;  %v4665_v29 = vadd.f32 %v8484_v11, %v4664_v25  ;;  %v4813_v38 = vmax.f32 %v4673_v31, 0.0 }
 0x85a   :  { %v7228_v28 = vpop.f32.mrf.mxu1 }
 0x85b   :  { %v4676_v30 = vadd.f32 %v7228_v28, %v8484_v11  ;;  %7301 = vmatprep.mubr.bf16.mxu0 %v4855_v26  ;;  %v4811_v36 = vmax.f32 %v4665_v29, 0.0 }
 0x85c   :  { %v4667_v32 = vpop.f32.mrf.mxu1  ;;  %7302 = vmatmul.mubr.bf16.gmra.mxu0 %v4856_v27 }
 0x85d   :  { %v4668_v33 = vadd.f32 %v8484_v11, %v4667_v32  ;;  %v4814_v34 = vmax.f32 %v4676_v30, 0.0 }
 0x85e   :  { %v7231_v35 = vpop.f32.mrf.mxu1 }
 0x85f   :  { %v4812_v37 = vmax.f32 %v4668_v33, 0.0  ;;  %v4858_v41 = vpack.c.bf16 %v4814_v34, %v4813_v38  ;;  %v4689_v45 = vadd.f32 %v7231_v35, %v8484_v11 }
 0x860   :  { %v4680_v39 = vpop.f32.mrf.mxu1 }
 0x861   :  { %v4857_v40 = vpack.c.bf16 %v4812_v37, %v4811_v36  ;;  %v4681_v43 = vadd.f32 %v8484_v11, %v4680_v39  ;;  %v4817_v53 = vmax.f32 %v4689_v45, 0.0 }
 0x862   :  { %v7232_v42 = vpop.f32.mrf.mxu1 }
 0x863   :  { %v4692_v44 = vadd.f32 %v7232_v42, %v8484_v11  ;;  %7305 = vmatprep.mubr.bf16.mxu0 %v4857_v40  ;;  %v4815_v51 = vmax.f32 %v4681_v43, 0.0 }
 0x864   :  { %v4683_v46 = vpop.f32.mrf.mxu1  ;;  %7306 = vmatmul.mubr.bf16.gmra.mxu0 %v4858_v41 }
 0x865   :  { %v4684_v48 = vadd.f32 %v8484_v11, %v4683_v46  ;;  %v4818_v49 = vmax.f32 %v4692_v44, 0.0 }
 0x866   :  { %v7235_v50 = vpop.f32.mrf.mxu1 }
 0x867   :  { %v4816_v52 = vmax.f32 %v4684_v48, 0.0  ;;  %v4860_v56 = vpack.c.bf16 %v4818_v49, %v4817_v53  ;;  %v4705_v60 = vadd.f32 %v7235_v50, %v8484_v11 }
 0x868   :  { %v4696_v54 = vpop.f32.mrf.mxu1 }
 0x869   :  { %v4859_v55 = vpack.c.bf16 %v4816_v52, %v4815_v51  ;;  %v4697_v58 = vadd.f32 %v8484_v11, %v4696_v54  ;;  %v4821_v3 = vmax.f32 %v4705_v60, 0.0 }
 0x86a   :  { %v7236_v57 = vpop.f32.mrf.mxu1 }
 0x86b   :  { %v4708_v59 = vadd.f32 %v7236_v57, %v8484_v11  ;;  %7309 = vmatprep.mubr.bf16.mxu0 %v4859_v55  ;;  %v4819_v1 = vmax.f32 %v4697_v58, 0.0 }
 0x86c   :  { %v4699_v61 = vpop.f32.mrf.mxu1  ;;  %7310 = vmatmul.mubr.bf16.gmra.mxu0 %v4860_v56 }
 0x86d   :  { %v4700_v62 = vadd.f32 %v8484_v11, %v4699_v61  ;;  %v4822_v63 = vmax.f32 %v4708_v59, 0.0 }
 0x86e   :  { %v7239_v0 = vpop.f32.mrf.mxu1 }
 0x86f   :  { %v4820_v2 = vmax.f32 %v4700_v62, 0.0  ;;  %v4862_v6 = vpack.c.bf16 %v4822_v63, %v4821_v3  ;;  %v4721_v10 = vadd.f32 %v7239_v0, %v8484_v11  ;;  %v8553_v0 = vld [vmem:[%s8694_s3 + $0xa] ss:$0 sm:$0xff] }
 0x870   :  { %v4712_v4 = vpop.f32.mrf.mxu1 }
 0x871   :  { %v4861_v5 = vpack.c.bf16 %v4820_v2, %v4819_v1  ;;  %v4713_v8 = vadd.f32 %v8484_v11, %v4712_v4  ;;  %v4825_v18 = vmax.f32 %v4721_v10, 0.0 }
 0x872   :  { %v7240_v7 = vpop.f32.mrf.mxu1 }
 0x873   :  { %v4724_v9 = vadd.f32 %v7240_v7, %v8484_v11  ;;  %7313 = vmatprep.mubr.bf16.mxu0 %v4861_v5  ;;  %v4823_v16 = vmax.f32 %v4713_v8, 0.0 }
 0x874   :  { %v4715_v12 = vpop.f32.mrf.mxu1  ;;  %7314 = vmatmul.mubr.bf16.gmra.mxu0 %v4862_v6 }
 0x875   :  { %v4716_v13 = vadd.f32 %v8484_v11, %v4715_v12  ;;  %v4826_v14 = vmax.f32 %v4724_v9, 0.0 }
 0x876   :  { %v7243_v15 = vpop.f32.mrf.mxu1 }
 0x877   :  { %v4824_v17 = vmax.f32 %v4716_v13, 0.0  ;;  %v4864_v21 = vpack.c.bf16 %v4826_v14, %v4825_v18  ;;  %v4737_v25 = vadd.f32 %v7243_v15, %v8484_v11 }
 0x878   :  { %v4728_v19 = vpop.f32.mrf.mxu1 }
 0x879   :  { %v4863_v20 = vpack.c.bf16 %v4824_v17, %v4823_v16  ;;  %v4729_v23 = vadd.f32 %v8484_v11, %v4728_v19  ;;  %v4829_v32 = vmax.f32 %v4737_v25, 0.0 }
 0x87a   :  { %v7244_v22 = vpop.f32.mrf.mxu1 }
 0x87b   :  { %v4740_v24 = vadd.f32 %v7244_v22, %v8484_v11  ;;  %7317 = vmatprep.mubr.bf16.mxu0 %v4863_v20  ;;  %v4827_v30 = vmax.f32 %v4729_v23, 0.0 }
 0x87c   :  { %v4731_v26 = vpop.f32.mrf.mxu1  ;;  %7318 = vmatmul.mubr.bf16.gmra.mxu0 %v4864_v21 }
 0x87d   :  { %v4732_v27 = vadd.f32 %v8484_v11, %v4731_v26  ;;  %v4830_v28 = vmax.f32 %v4740_v24, 0.0 }
 0x87e   :  { %v7247_v29 = vpop.f32.mrf.mxu1 }
 0x87f   :  { %v4828_v31 = vmax.f32 %v4732_v27, 0.0  ;;  %v4866_v35 = vpack.c.bf16 %v4830_v28, %v4829_v32  ;;  %v4753_v39 = vadd.f32 %v7247_v29, %v8484_v11 }
 0x880   :  { %v4744_v33 = vpop.f32.mrf.mxu1 }
 0x881   :  { %v4865_v34 = vpack.c.bf16 %v4828_v31, %v4827_v30  ;;  %v4745_v37 = vadd.f32 %v8484_v11, %v4744_v33  ;;  %v4833_v46 = vmax.f32 %v4753_v39, 0.0 }
 0x882   :  { %v7248_v36 = vpop.f32.mrf.mxu1 }
 0x883   :  { %v4756_v38 = vadd.f32 %v7248_v36, %v8484_v11  ;;  %7321 = vmatprep.mubr.bf16.mxu0 %v4865_v34  ;;  %v4831_v44 = vmax.f32 %v4745_v37, 0.0 }
 0x884   :  { %v4747_v40 = vpop.f32.mrf.mxu1  ;;  %7322 = vmatmul.mubr.bf16.gmra.mxu0 %v4866_v35 }
 0x885   :  { %v4748_v41 = vadd.f32 %v8484_v11, %v4747_v40  ;;  %v4834_v42 = vmax.f32 %v4756_v38, 0.0 }
 0x886   :  { %v7251_v43 = vpop.f32.mrf.mxu1 }
 0x887   :  { %v4832_v45 = vmax.f32 %v4748_v41, 0.0  ;;  %v4868_v49 = vpack.c.bf16 %v4834_v42, %v4833_v46  ;;  %v4769_v53 = vadd.f32 %v7251_v43, %v8484_v11 }
 0x888   :  { %v4760_v47 = vpop.f32.mrf.mxu1 }
 0x889   :  { %v4867_v48 = vpack.c.bf16 %v4832_v45, %v4831_v44  ;;  %v4761_v51 = vadd.f32 %v8484_v11, %v4760_v47  ;;  %v4837_v59 = vmax.f32 %v4769_v53, 0.0 }
 0x88a   :  { %v7252_v50 = vpop.f32.mrf.mxu1 }
 0x88b   :  { %v4772_v52 = vadd.f32 %v7252_v50, %v8484_v11  ;;  %7325 = vmatprep.mubr.bf16.mxu0 %v4867_v48  ;;  %v4835_v57 = vmax.f32 %v4761_v51, 0.0 }
 0x88c   :  { %v4763_v54 = vpop.f32.mrf.mxu1  ;;  %7326 = vmatmul.mubr.bf16.gmra.mxu0 %v4868_v49 }
 0x88d   :  { %v4764_v55 = vadd.f32 %v8484_v11, %v4763_v54  ;;  %v4838_v56 = vmax.f32 %v4772_v52, 0.0 }
 0x88f   :  { %v4836_v58 = vmax.f32 %v4764_v55, 0.0  ;;  %v4870_v61 = vpack.c.bf16 %v4838_v56, %v4837_v59 }
 0x891   :  { %v4869_v60 = vpack.c.bf16 %v4836_v58, %v4835_v57 }
 0x893   :  { %7329 = vmatprep.mubr.bf16.mxu0 %v4869_v60 }
 0x894   :  { %7330 = vmatmul.mubr.bf16.gmra.mxu0 %v4870_v61 }
 0x8dc   :  { %v7271_v62 = vpop.f32.mrf.mxu0 }
 0x8dd   :  { %v4984_v3 = vadd.f32 %v7271_v62, %v8553_v0 }
 0x8de   :  { %v4975_v63 = vpop.f32.mrf.mxu0 }
 0x8df   :  { %v4976_v2 = vadd.f32 %v8553_v0, %v4975_v63  ;;  %v5232_v10 = vmax.f32 %v4984_v3, 0.0 }
 0x8e0   :  { %v7272_v1 = vpop.f32.mrf.mxu0 }
 0x8e1   :  { %v4987_v11 = vadd.f32 %v7272_v1, %v8553_v0  ;;  %v5230_v8 = vmax.f32 %v4976_v2, 0.0 }
 0x8e2   :  { %v4978_v4 = vpop.f32.mrf.mxu0 }
 0x8e3   :  { %v4979_v5 = vadd.f32 %v8553_v0, %v4978_v4  ;;  %v5233_v6 = vmax.f32 %v4987_v11, 0.0 }
 0x8e4   :  { %v7275_v7 = vpop.f32.mrf.mxu0 }
 0x8e5   :  { %v5231_v9 = vmax.f32 %v4979_v5, 0.0  ;;  %v5295_v14 = vpack.c.bf16 %v5233_v6, %v5232_v10  ;;  %v5000_v18 = vadd.f32 %v7275_v7, %v8553_v0 }
 0x8e6   :  { %v4991_v12 = vpop.f32.mrf.mxu0 }
 0x8e7   :  { %v5294_v13 = vpack.c.bf16 %v5231_v9, %v5230_v8  ;;  %v4992_v16 = vadd.f32 %v8553_v0, %v4991_v12  ;;  %v5236_v25 = vmax.f32 %v5000_v18, 0.0 }
 0x8e8   :  { %v7276_v15 = vpop.f32.mrf.mxu0 }
 0x8e9   :  { %v5003_v17 = vadd.f32 %v7276_v15, %v8553_v0  ;;  %7349 = vmatprep.mubr.bf16.mxu0 %v5294_v13  ;;  %v5234_v23 = vmax.f32 %v4992_v16, 0.0 }
 0x8ea   :  { %v4994_v19 = vpop.f32.mrf.mxu0  ;;  %7350 = vmatmul.mubr.bf16.vlgmr.msra.gmra.mxu0 %v5295_v14 }
 0x8eb   :  { %v4995_v20 = vadd.f32 %v8553_v0, %v4994_v19  ;;  %v5237_v21 = vmax.f32 %v5003_v17, 0.0 }
 0x8ec   :  { %v7279_v22 = vpop.f32.mrf.mxu0 }
 0x8ed   :  { %v5235_v24 = vmax.f32 %v4995_v20, 0.0  ;;  %v5297_v28 = vpack.c.bf16 %v5237_v21, %v5236_v25  ;;  %v5016_v32 = vadd.f32 %v7279_v22, %v8553_v0 }
 0x8ee   :  { %v5007_v26 = vpop.f32.mrf.mxu0 }
 0x8ef   :  { %v5296_v27 = vpack.c.bf16 %v5235_v24, %v5234_v23  ;;  %v5008_v30 = vadd.f32 %v8553_v0, %v5007_v26  ;;  %v5240_v39 = vmax.f32 %v5016_v32, 0.0 }
 0x8f0   :  { %v7280_v29 = vpop.f32.mrf.mxu0 }
 0x8f1   :  { %v5019_v31 = vadd.f32 %v7280_v29, %v8553_v0  ;;  %7353 = vmatprep.mubr.bf16.mxu1 %v5296_v27  ;;  %v5238_v37 = vmax.f32 %v5008_v30, 0.0 }
 0x8f2   :  { %v5010_v33 = vpop.f32.mrf.mxu0  ;;  %7354 = vmatmul.mubr.bf16.vlgmr.msra.gmra.mxu1 %v5297_v28 }
 0x8f3   :  { %v5011_v34 = vadd.f32 %v8553_v0, %v5010_v33  ;;  %v5241_v35 = vmax.f32 %v5019_v31, 0.0 }
 0x8f4   :  { %v7283_v36 = vpop.f32.mrf.mxu0 }
 0x8f5   :  { %v5239_v38 = vmax.f32 %v5011_v34, 0.0  ;;  %v5299_v42 = vpack.c.bf16 %v5241_v35, %v5240_v39  ;;  %v5032_v46 = vadd.f32 %v7283_v36, %v8553_v0 }
 0x8f6   :  { %v5023_v40 = vpop.f32.mrf.mxu0 }
 0x8f7   :  { %v5298_v41 = vpack.c.bf16 %v5239_v38, %v5238_v37  ;;  %v5024_v44 = vadd.f32 %v8553_v0, %v5023_v40  ;;  %v5244_v53 = vmax.f32 %v5032_v46, 0.0 }
 0x8f8   :  { %v7284_v43 = vpop.f32.mrf.mxu0 }
 0x8f9   :  { %v5035_v45 = vadd.f32 %v7284_v43, %v8553_v0  ;;  %7357 = vmatprep.mubr.bf16.mxu1 %v5298_v41  ;;  %v5242_v51 = vmax.f32 %v5024_v44, 0.0 }
 0x8fa   :  { %v5026_v47 = vpop.f32.mrf.mxu0  ;;  %7358 = vmatmul.mubr.bf16.gmra.mxu1 %v5299_v42 }
 0x8fb   :  { %v5027_v48 = vadd.f32 %v8553_v0, %v5026_v47  ;;  %v5245_v49 = vmax.f32 %v5035_v45, 0.0 }
 0x8fc   :  { %v7287_v50 = vpop.f32.mrf.mxu0 }
 0x8fd   :  { %v5243_v52 = vmax.f32 %v5027_v48, 0.0  ;;  %v5301_v56 = vpack.c.bf16 %v5245_v49, %v5244_v53  ;;  %v5048_v60 = vadd.f32 %v7287_v50, %v8553_v0 }
 0x8fe   :  { %v5039_v54 = vpop.f32.mrf.mxu0 }
 0x8ff   :  { %v5300_v55 = vpack.c.bf16 %v5243_v52, %v5242_v51  ;;  %v5040_v58 = vadd.f32 %v8553_v0, %v5039_v54  ;;  %v5248_v3 = vmax.f32 %v5048_v60, 0.0 }
 0x900   :  { %v7288_v57 = vpop.f32.mrf.mxu0 }
 0x901   :  { %v5051_v59 = vadd.f32 %v7288_v57, %v8553_v0  ;;  %7361 = vmatprep.mubr.bf16.mxu1 %v5300_v55  ;;  %v5246_v2 = vmax.f32 %v5040_v58, 0.0 }
 0x902   :  { %v5042_v61 = vpop.f32.mrf.mxu0  ;;  %7362 = vmatmul.mubr.bf16.gmra.mxu1 %v5301_v56 }
 0x903   :  { %v5043_v62 = vadd.f32 %v8553_v0, %v5042_v61  ;;  %v5249_v63 = vmax.f32 %v5051_v59, 0.0 }
 0x904   :  { %v7291_v1 = vpop.f32.mrf.mxu0 }
 0x905   :  { %v5247_v11 = vmax.f32 %v5043_v62, 0.0  ;;  %v5303_v6 = vpack.c.bf16 %v5249_v63, %v5248_v3  ;;  %v5064_v10 = vadd.f32 %v7291_v1, %v8553_v0 }
 0x906   :  { %v5055_v4 = vpop.f32.mrf.mxu0 }
 0x907   :  { %v5302_v5 = vpack.c.bf16 %v5247_v11, %v5246_v2  ;;  %v5056_v8 = vadd.f32 %v8553_v0, %v5055_v4  ;;  %v5252_v18 = vmax.f32 %v5064_v10, 0.0 }
 0x908   :  { %v7292_v7 = vpop.f32.mrf.mxu0 }
 0x909   :  { %v5067_v9 = vadd.f32 %v7292_v7, %v8553_v0  ;;  %7365 = vmatprep.mubr.bf16.mxu1 %v5302_v5  ;;  %v5250_v16 = vmax.f32 %v5056_v8, 0.0 }
 0x90a   :  { %v5058_v12 = vpop.f32.mrf.mxu0  ;;  %7366 = vmatmul.mubr.bf16.gmra.mxu1 %v5303_v6 }
 0x90b   :  { %v5059_v13 = vadd.f32 %v8553_v0, %v5058_v12  ;;  %v5253_v14 = vmax.f32 %v5067_v9, 0.0 }
 0x90c   :  { %v7295_v15 = vpop.f32.mrf.mxu0 }
 0x90d   :  { %v5251_v17 = vmax.f32 %v5059_v13, 0.0  ;;  %v5305_v21 = vpack.c.bf16 %v5253_v14, %v5252_v18  ;;  %v5080_v25 = vadd.f32 %v7295_v15, %v8553_v0 }
 0x90e   :  { %v5071_v19 = vpop.f32.mrf.mxu0 }
 0x90f   :  { %v5304_v20 = vpack.c.bf16 %v5251_v17, %v5250_v16  ;;  %v5072_v23 = vadd.f32 %v8553_v0, %v5071_v19  ;;  %v5256_v32 = vmax.f32 %v5080_v25, 0.0 }
 0x910   :  { %v7296_v22 = vpop.f32.mrf.mxu0 }
 0x911   :  { %v5083_v24 = vadd.f32 %v7296_v22, %v8553_v0  ;;  %7369 = vmatprep.mubr.bf16.mxu1 %v5304_v20  ;;  %v5254_v30 = vmax.f32 %v5072_v23, 0.0 }
 0x912   :  { %v5074_v26 = vpop.f32.mrf.mxu0  ;;  %7370 = vmatmul.mubr.bf16.gmra.mxu1 %v5305_v21 }
 0x913   :  { %v5075_v27 = vadd.f32 %v8553_v0, %v5074_v26  ;;  %v5257_v28 = vmax.f32 %v5083_v24, 0.0 }
 0x914   :  { %v7299_v29 = vpop.f32.mrf.mxu0 }
 0x915   :  { %v5255_v31 = vmax.f32 %v5075_v27, 0.0  ;;  %v5307_v35 = vpack.c.bf16 %v5257_v28, %v5256_v32  ;;  %v5096_v39 = vadd.f32 %v7299_v29, %v8553_v0 }
 0x916   :  { %v5087_v33 = vpop.f32.mrf.mxu0 }
 0x917   :  { %v5306_v34 = vpack.c.bf16 %v5255_v31, %v5254_v30  ;;  %v5088_v37 = vadd.f32 %v8553_v0, %v5087_v33  ;;  %v5260_v46 = vmax.f32 %v5096_v39, 0.0 }
 0x918   :  { %v7300_v36 = vpop.f32.mrf.mxu0 }
 0x919   :  { %v5099_v38 = vadd.f32 %v7300_v36, %v8553_v0  ;;  %7373 = vmatprep.mubr.bf16.mxu1 %v5306_v34  ;;  %v5258_v44 = vmax.f32 %v5088_v37, 0.0 }
 0x91a   :  { %v5090_v40 = vpop.f32.mrf.mxu0  ;;  %7374 = vmatmul.mubr.bf16.gmra.mxu1 %v5307_v35 }
 0x91b   :  { %v5091_v41 = vadd.f32 %v8553_v0, %v5090_v40  ;;  %v5261_v42 = vmax.f32 %v5099_v38, 0.0 }
 0x91c   :  { %v7303_v43 = vpop.f32.mrf.mxu0 }
 0x91d   :  { %v5259_v45 = vmax.f32 %v5091_v41, 0.0  ;;  %v5309_v49 = vpack.c.bf16 %v5261_v42, %v5260_v46  ;;  %v5112_v53 = vadd.f32 %v7303_v43, %v8553_v0 }
 0x91e   :  { %v5103_v47 = vpop.f32.mrf.mxu0 }
 0x91f   :  { %v5308_v48 = vpack.c.bf16 %v5259_v45, %v5258_v44  ;;  %v5104_v51 = vadd.f32 %v8553_v0, %v5103_v47  ;;  %v5264_v60 = vmax.f32 %v5112_v53, 0.0 }
 0x920   :  { %v7304_v50 = vpop.f32.mrf.mxu0 }
 0x921   :  { %v5115_v52 = vadd.f32 %v7304_v50, %v8553_v0  ;;  %7377 = vmatprep.mubr.bf16.mxu1 %v5308_v48  ;;  %v5262_v58 = vmax.f32 %v5104_v51, 0.0 }
 0x922   :  { %v5106_v54 = vpop.f32.mrf.mxu0  ;;  %7378 = vmatmul.mubr.bf16.gmra.mxu1 %v5309_v49 }
 0x923   :  { %v5107_v55 = vadd.f32 %v8553_v0, %v5106_v54  ;;  %v5265_v56 = vmax.f32 %v5115_v52, 0.0 }
 0x924   :  { %v7307_v57 = vpop.f32.mrf.mxu0 }
 0x925   :  { %v5263_v59 = vmax.f32 %v5107_v55, 0.0  ;;  %v5311_v63 = vpack.c.bf16 %v5265_v56, %v5264_v60  ;;  %v5128_v3 = vadd.f32 %v7307_v57, %v8553_v0 }
 0x926   :  { %v5119_v61 = vpop.f32.mrf.mxu0 }
 0x927   :  { %v5310_v62 = vpack.c.bf16 %v5263_v59, %v5262_v58  ;;  %v5120_v2 = vadd.f32 %v8553_v0, %v5119_v61  ;;  %v5268_v10 = vmax.f32 %v5128_v3, 0.0 }
 0x928   :  { %v7308_v1 = vpop.f32.mrf.mxu0 }
 0x929   :  { %v5131_v11 = vadd.f32 %v7308_v1, %v8553_v0  ;;  %7381 = vmatprep.mubr.bf16.mxu1 %v5310_v62  ;;  %v5266_v8 = vmax.f32 %v5120_v2, 0.0 }
 0x92a   :  { %v5122_v4 = vpop.f32.mrf.mxu0  ;;  %7382 = vmatmul.mubr.bf16.gmra.mxu1 %v5311_v63 }
 0x92b   :  { %v5123_v5 = vadd.f32 %v8553_v0, %v5122_v4  ;;  %v5269_v6 = vmax.f32 %v5131_v11, 0.0 }
 0x92c   :  { %v7311_v7 = vpop.f32.mrf.mxu0 }
 0x92d   :  { %v5267_v9 = vmax.f32 %v5123_v5, 0.0  ;;  %v5313_v14 = vpack.c.bf16 %v5269_v6, %v5268_v10  ;;  %v5144_v18 = vadd.f32 %v7311_v7, %v8553_v0 }
 0x92e   :  { %v5135_v12 = vpop.f32.mrf.mxu0 }
 0x92f   :  { %v5312_v13 = vpack.c.bf16 %v5267_v9, %v5266_v8  ;;  %v5136_v16 = vadd.f32 %v8553_v0, %v5135_v12  ;;  %v5272_v25 = vmax.f32 %v5144_v18, 0.0 }
 0x930   :  { %v7312_v15 = vpop.f32.mrf.mxu0 }
 0x931   :  { %v5147_v17 = vadd.f32 %v7312_v15, %v8553_v0  ;;  %7385 = vmatprep.mubr.bf16.mxu1 %v5312_v13  ;;  %v5270_v23 = vmax.f32 %v5136_v16, 0.0 }
 0x932   :  { %v5138_v19 = vpop.f32.mrf.mxu0  ;;  %7386 = vmatmul.mubr.bf16.gmra.mxu1 %v5313_v14 }
 0x933   :  { %v5139_v20 = vadd.f32 %v8553_v0, %v5138_v19  ;;  %v5273_v21 = vmax.f32 %v5147_v17, 0.0 }
 0x934   :  { %v7315_v22 = vpop.f32.mrf.mxu0 }
 0x935   :  { %v5271_v24 = vmax.f32 %v5139_v20, 0.0  ;;  %v5315_v28 = vpack.c.bf16 %v5273_v21, %v5272_v25  ;;  %v5160_v32 = vadd.f32 %v7315_v22, %v8553_v0 }
 0x936   :  { %v5151_v26 = vpop.f32.mrf.mxu0 }
 0x937   :  { %v5314_v27 = vpack.c.bf16 %v5271_v24, %v5270_v23  ;;  %v5152_v30 = vadd.f32 %v8553_v0, %v5151_v26  ;;  %v5276_v39 = vmax.f32 %v5160_v32, 0.0 }
 0x938   :  { %v7316_v29 = vpop.f32.mrf.mxu0 }
 0x939   :  { %v5163_v31 = vadd.f32 %v7316_v29, %v8553_v0  ;;  %7389 = vmatprep.mubr.bf16.mxu1 %v5314_v27  ;;  %v5274_v37 = vmax.f32 %v5152_v30, 0.0 }
 0x93a   :  { %v5154_v33 = vpop.f32.mrf.mxu0  ;;  %7390 = vmatmul.mubr.bf16.gmra.mxu1 %v5315_v28 }
 0x93b   :  { %v5155_v34 = vadd.f32 %v8553_v0, %v5154_v33  ;;  %v5277_v35 = vmax.f32 %v5163_v31, 0.0 }
 0x93c   :  { %v7319_v36 = vpop.f32.mrf.mxu0 }
 0x93d   :  { %v5275_v38 = vmax.f32 %v5155_v34, 0.0  ;;  %v5317_v42 = vpack.c.bf16 %v5277_v35, %v5276_v39  ;;  %v5176_v46 = vadd.f32 %v7319_v36, %v8553_v0  ;;  %v8622_v34 = vld [vmem:[%s8694_s3 + $0xb] ss:$0 sm:$0xff]  ;;  %s7570_s3 = smov [#allocation5]  }
 0x93e   :  { %v5167_v40 = vpop.f32.mrf.mxu0  ;;  %s5754_s7 = sshll.u32 %s7570_s3, 4  ;;  %s5755_s7 = int_to_ptr.vmem [resolvable:$true] %s5754_s7 }
 0x93f   :  { %v5316_v41 = vpack.c.bf16 %v5275_v38, %v5274_v37  ;;  %v5168_v44 = vadd.f32 %v8553_v0, %v5167_v40  ;;  %v5280_v53 = vmax.f32 %v5176_v46, 0.0  ;;  %s7543_s8 = scalar_lea.vmem %s5755_s7, 8192  ;;  %p7548_p6 = scmp.lt.s32.totalorder %s5755_s7, %s5755_s7 }
 0x940   :  { %v7320_v43 = vpop.f32.mrf.mxu0  ;;  %p7544_p5 = scmp.ne.s32.totalorder %s5755_s7, %s7543_s8  ;;  %p7549_p7 = scmp.lt.s32.totalorder %s7543_s8, %s7543_s8 }
 0x941   :  { %v5179_v45 = vadd.f32 %v7320_v43, %v8553_v0  ;;  %7393 = vmatprep.mubr.bf16.mxu1 %v5316_v41  ;;  %v5278_v51 = vmax.f32 %v5168_v44, 0.0 }
 0x942   :  { %v5170_v47 = vpop.f32.mrf.mxu0  ;;  %7394 = vmatmul.mubr.bf16.gmra.mxu1 %v5317_v42  ;;  %p7550_p8 = por %p7549_p7, %p7548_p6 }
 0x943   :  { %v5171_v48 = vadd.f32 %v8553_v0, %v5170_v47  ;;  %v5281_v49 = vmax.f32 %v5179_v45, 0.0 }
 0x944   :  { %v7323_v50 = vpop.f32.mrf.mxu0  ;;  %p7551_p9 = pnand %p7550_p8, %p7544_p5 }
 0x945   :  { %v5279_v52 = vmax.f32 %v5171_v48, 0.0  ;;  %v5319_v56 = vpack.c.bf16 %v5281_v49, %v5280_v53  ;;  %v5192_v60 = vadd.f32 %v7323_v50, %v8553_v0 }
 0x946   :  { %v5183_v54 = vpop.f32.mrf.mxu0 }
 0x947   :  { %v5318_v55 = vpack.c.bf16 %v5279_v52, %v5278_v51  ;;  %v5184_v58 = vadd.f32 %v8553_v0, %v5183_v54  ;;  %v5284_v3 = vmax.f32 %v5192_v60, 0.0 }
 0x948   :  { %v7324_v57 = vpop.f32.mrf.mxu0 }
 0x949   :  { %v5195_v59 = vadd.f32 %v7324_v57, %v8553_v0  ;;  %7397 = vmatprep.mubr.bf16.mxu1 %v5318_v55  ;;  %v5282_v2 = vmax.f32 %v5184_v58, 0.0 }
 0x94a   :  { %v5186_v61 = vpop.f32.mrf.mxu0  ;;  %7398 = vmatmul.mubr.bf16.gmra.mxu1 %v5319_v56 }
 0x94b   :  { %v5187_v62 = vadd.f32 %v8553_v0, %v5186_v61  ;;  %v5285_v63 = vmax.f32 %v5195_v59, 0.0 }
 0x94c   :  { %v7327_v1 = vpop.f32.mrf.mxu0 }
 0x94d   :  { %v5283_v11 = vmax.f32 %v5187_v62, 0.0  ;;  %v5321_v6 = vpack.c.bf16 %v5285_v63, %v5284_v3  ;;  %v5208_v10 = vadd.f32 %v7327_v1, %v8553_v0 }
 0x94e   :  { %v5199_v4 = vpop.f32.mrf.mxu0 }
 0x94f   :  { %v5320_v5 = vpack.c.bf16 %v5283_v11, %v5282_v2  ;;  %v5200_v8 = vadd.f32 %v8553_v0, %v5199_v4  ;;  %v5288_v18 = vmax.f32 %v5208_v10, 0.0 }
 0x950   :  { %v7328_v7 = vpop.f32.mrf.mxu0 }
 0x951   :  { %v5211_v9 = vadd.f32 %v7328_v7, %v8553_v0  ;;  %7401 = vmatprep.mubr.bf16.mxu1 %v5320_v5  ;;  %v5286_v16 = vmax.f32 %v5200_v8, 0.0 }
 0x952   :  { %v5202_v12 = vpop.f32.mrf.mxu0  ;;  %7402 = vmatmul.mubr.bf16.gmra.mxu1 %v5321_v6 }
 0x953   :  { %v5203_v13 = vadd.f32 %v8553_v0, %v5202_v12  ;;  %v5289_v14 = vmax.f32 %v5211_v9, 0.0 }
 0x954   :  { %v7331_v15 = vpop.f32.mrf.mxu0 }
 0x955   :  { %v5287_v17 = vmax.f32 %v5203_v13, 0.0  ;;  %v5323_v21 = vpack.c.bf16 %v5289_v14, %v5288_v18  ;;  %v5224_v25 = vadd.f32 %v7331_v15, %v8553_v0 }
 0x956   :  { %v5215_v19 = vpop.f32.mrf.mxu0 }
 0x957   :  { %v5322_v20 = vpack.c.bf16 %v5287_v17, %v5286_v16  ;;  %v5216_v23 = vadd.f32 %v8553_v0, %v5215_v19  ;;  %v5292_v31 = vmax.f32 %v5224_v25, 0.0 }
 0x958   :  { %v7332_v22 = vpop.f32.mrf.mxu0 }
 0x959   :  { %v5227_v24 = vadd.f32 %v7332_v22, %v8553_v0  ;;  %7405 = vmatprep.mubr.bf16.mxu1 %v5322_v20  ;;  %v5290_v29 = vmax.f32 %v5216_v23, 0.0 }
 0x95a   :  { %v5218_v26 = vpop.f32.mrf.mxu0  ;;  %7406 = vmatmul.mubr.bf16.gmra.mxu1 %v5323_v21 }
 0x95b   :  { %v5219_v27 = vadd.f32 %v8553_v0, %v5218_v26  ;;  %v5293_v28 = vmax.f32 %v5227_v24, 0.0 }
 0x95d   :  { %v5291_v30 = vmax.f32 %v5219_v27, 0.0  ;;  %v5325_v33 = vpack.c.bf16 %v5293_v28, %v5292_v31 }
 0x95f   :  { %v5324_v32 = vpack.c.bf16 %v5291_v30, %v5290_v29 }
 0x961   :  { %7409 = vmatprep.mubr.bf16.mxu1 %v5324_v32 }
 0x962   :  { %7410 = vmatmul.mubr.bf16.gmra.mxu1 %v5325_v33 }
 0x9aa   :  { %v7351_v35 = vpop.f32.mrf.mxu0 }
 0x9ab   :  { %v5439_v36 = vadd.f32 %v7351_v35, %v8622_v34 }
 0x9ac   :  { %v5430_v37 = vpop.f32.mrf.mxu0 }
 0x9ad   :  { %5687 = vst [vmem:[#allocation5 + $0x10] sm:$0xff] %v5439_v36  ;;  %v5431_v0 = vadd.f32 %v8622_v34, %v5430_v37 }
 0x9ae   :  { %v7352_v38 = vpop.f32.mrf.mxu0 }
 0x9af   :  { %5685 = vst [vmem:[#allocation5] sm:$0xff] %v5431_v0  ;;  %v5442_v39 = vadd.f32 %v7352_v38, %v8622_v34 }
 0x9b0   :  { %v5433_v40 = vpop.f32.mrf.mxu0 }
 0x9b1   :  { %5688 = vst [vmem:[#allocation5 + $0x18] sm:$0xff] %v5442_v39  ;;  %v5434_v41 = vadd.f32 %v8622_v34, %v5433_v40 }
 0x9b2   :  { %v7355_v42 = vpop.f32.mrf.mxu1 }
 0x9b3   :  { %5686 = vst [vmem:[#allocation5 + $0x8] sm:$0xff] %v5434_v41  ;;  %v5455_v43 = vadd.f32 %v7355_v42, %v8622_v34 }
 0x9b4   :  { %v5446_v44 = vpop.f32.mrf.mxu1 }
 0x9b5   :  { %5691 = vst [vmem:[#allocation5 + $0x30] sm:$0xff] %v5455_v43  ;;  %v5447_v45 = vadd.f32 %v8622_v34, %v5446_v44 }
 0x9b6   :  { %v7356_v46 = vpop.f32.mrf.mxu1 }
 0x9b7   :  { %5689 = vst [vmem:[#allocation5 + $0x20] sm:$0xff] %v5447_v45  ;;  %v5458_v47 = vadd.f32 %v7356_v46, %v8622_v34 }
 0x9b8   :  { %v5449_v48 = vpop.f32.mrf.mxu1 }
 0x9b9   :  { %5692 = vst [vmem:[#allocation5 + $0x38] sm:$0xff] %v5458_v47  ;;  %v5450_v49 = vadd.f32 %v8622_v34, %v5449_v48 }
 0x9ba   :  { %v7359_v50 = vpop.f32.mrf.mxu1 }
 0x9bb   :  { %5690 = vst [vmem:[#allocation5 + $0x28] sm:$0xff] %v5450_v49  ;;  %v5471_v51 = vadd.f32 %v7359_v50, %v8622_v34 }
 0x9bc   :  { %v5462_v52 = vpop.f32.mrf.mxu1 }
 0x9bd   :  { %5695 = vst [vmem:[#allocation5 + $0x50] sm:$0xff] %v5471_v51  ;;  %v5463_v53 = vadd.f32 %v8622_v34, %v5462_v52 }
 0x9be   :  { %v7360_v54 = vpop.f32.mrf.mxu1 }
 0x9bf   :  { %5693 = vst [vmem:[#allocation5 + $0x40] sm:$0xff] %v5463_v53  ;;  %v5474_v55 = vadd.f32 %v7360_v54, %v8622_v34 }
 0x9c0   :  { %v5465_v56 = vpop.f32.mrf.mxu1 }
 0x9c1   :  { %5696 = vst [vmem:[#allocation5 + $0x58] sm:$0xff] %v5474_v55  ;;  %v5466_v57 = vadd.f32 %v8622_v34, %v5465_v56 }
 0x9c2   :  { %v7363_v58 = vpop.f32.mrf.mxu1 }
 0x9c3   :  { %5694 = vst [vmem:[#allocation5 + $0x48] sm:$0xff] %v5466_v57  ;;  %v5487_v59 = vadd.f32 %v7363_v58, %v8622_v34 }
 0x9c4   :  { %v5478_v60 = vpop.f32.mrf.mxu1 }
 0x9c5   :  { %5699 = vst [vmem:[#allocation5 + $0x70] sm:$0xff] %v5487_v59  ;;  %v5479_v61 = vadd.f32 %v8622_v34, %v5478_v60 }
 0x9c6   :  { %v7364_v62 = vpop.f32.mrf.mxu1 }
 0x9c7   :  { %5697 = vst [vmem:[#allocation5 + $0x60] sm:$0xff] %v5479_v61  ;;  %v5490_v63 = vadd.f32 %v7364_v62, %v8622_v34 }
 0x9c8   :  { %v5481_v1 = vpop.f32.mrf.mxu1 }
 0x9c9   :  { %5700 = vst [vmem:[#allocation5 + $0x78] sm:$0xff] %v5490_v63  ;;  %v5482_v2 = vadd.f32 %v8622_v34, %v5481_v1 }
 0x9ca   :  { %v7367_v11 = vpop.f32.mrf.mxu1 }
 0x9cb   :  { %5698 = vst [vmem:[#allocation5 + $0x68] sm:$0xff] %v5482_v2  ;;  %v5503_v3 = vadd.f32 %v7367_v11, %v8622_v34 }
 0x9cc   :  { %v5494_v4 = vpop.f32.mrf.mxu1 }
 0x9cd   :  { %5703 = vst [vmem:[#allocation5 + $0x90] sm:$0xff] %v5503_v3  ;;  %v5495_v5 = vadd.f32 %v8622_v34, %v5494_v4 }
 0x9ce   :  { %v7368_v6 = vpop.f32.mrf.mxu1 }
 0x9cf   :  { %5701 = vst [vmem:[#allocation5 + $0x80] sm:$0xff] %v5495_v5  ;;  %v5506_v7 = vadd.f32 %v7368_v6, %v8622_v34 }
 0x9d0   :  { %v5497_v8 = vpop.f32.mrf.mxu1 }
 0x9d1   :  { %5704 = vst [vmem:[#allocation5 + $0x98] sm:$0xff] %v5506_v7  ;;  %v5498_v9 = vadd.f32 %v8622_v34, %v5497_v8 }
 0x9d2   :  { %v7371_v10 = vpop.f32.mrf.mxu1 }
 0x9d3   :  { %5702 = vst [vmem:[#allocation5 + $0x88] sm:$0xff] %v5498_v9  ;;  %v5519_v12 = vadd.f32 %v7371_v10, %v8622_v34 }
 0x9d4   :  { %v5510_v13 = vpop.f32.mrf.mxu1 }
 0x9d5   :  { %5707 = vst [vmem:[#allocation5 + $0xb0] sm:$0xff] %v5519_v12  ;;  %v5511_v14 = vadd.f32 %v8622_v34, %v5510_v13 }
 0x9d6   :  { %v7372_v15 = vpop.f32.mrf.mxu1 }
 0x9d7   :  { %5705 = vst [vmem:[#allocation5 + $0xa0] sm:$0xff] %v5511_v14  ;;  %v5522_v16 = vadd.f32 %v7372_v15, %v8622_v34 }
 0x9d8   :  { %v5513_v17 = vpop.f32.mrf.mxu1 }
 0x9d9   :  { %5708 = vst [vmem:[#allocation5 + $0xb8] sm:$0xff] %v5522_v16  ;;  %v5514_v18 = vadd.f32 %v8622_v34, %v5513_v17 }
 0x9da   :  { %v7375_v19 = vpop.f32.mrf.mxu1 }
 0x9db   :  { %5706 = vst [vmem:[#allocation5 + $0xa8] sm:$0xff] %v5514_v18  ;;  %v5535_v20 = vadd.f32 %v7375_v19, %v8622_v34 }
 0x9dc   :  { %v5526_v21 = vpop.f32.mrf.mxu1 }
 0x9dd   :  { %5711 = vst [vmem:[#allocation5 + $0xd0] sm:$0xff] %v5535_v20  ;;  %v5527_v22 = vadd.f32 %v8622_v34, %v5526_v21 }
 0x9de   :  { %v7376_v23 = vpop.f32.mrf.mxu1 }
 0x9df   :  { %5709 = vst [vmem:[#allocation5 + $0xc0] sm:$0xff] %v5527_v22  ;;  %v5538_v24 = vadd.f32 %v7376_v23, %v8622_v34 }
 0x9e0   :  { %v5529_v25 = vpop.f32.mrf.mxu1 }
 0x9e1   :  { %5712 = vst [vmem:[#allocation5 + $0xd8] sm:$0xff] %v5538_v24  ;;  %v5530_v26 = vadd.f32 %v8622_v34, %v5529_v25 }
 0x9e2   :  { %v7379_v27 = vpop.f32.mrf.mxu1 }
 0x9e3   :  { %5710 = vst [vmem:[#allocation5 + $0xc8] sm:$0xff] %v5530_v26  ;;  %v5551_v28 = vadd.f32 %v7379_v27, %v8622_v34 }
 0x9e4   :  { %v5542_v29 = vpop.f32.mrf.mxu1 }
 0x9e5   :  { %5715 = vst [vmem:[#allocation5 + $0xf0] sm:$0xff] %v5551_v28  ;;  %v5543_v30 = vadd.f32 %v8622_v34, %v5542_v29 }
 0x9e6   :  { %v7380_v31 = vpop.f32.mrf.mxu1 }
 0x9e7   :  { %5713 = vst [vmem:[#allocation5 + $0xe0] sm:$0xff] %v5543_v30  ;;  %v5554_v32 = vadd.f32 %v7380_v31, %v8622_v34 }
 0x9e8   :  { %v5545_v33 = vpop.f32.mrf.mxu1 }
 0x9e9   :  { %5716 = vst [vmem:[#allocation5 + $0xf8] sm:$0xff] %v5554_v32  ;;  %v5546_v35 = vadd.f32 %v8622_v34, %v5545_v33 }
 0x9ea   :  { %v7383_v36 = vpop.f32.mrf.mxu1 }
 0x9eb   :  { %5714 = vst [vmem:[#allocation5 + $0xe8] sm:$0xff] %v5546_v35  ;;  %v5567_v37 = vadd.f32 %v7383_v36, %v8622_v34 }
 0x9ec   :  { %v5558_v0 = vpop.f32.mrf.mxu1 }
 0x9ed   :  { %5719 = vst [vmem:[#allocation5 + $0x110] sm:$0xff] %v5567_v37  ;;  %v5559_v38 = vadd.f32 %v8622_v34, %v5558_v0 }
 0x9ee   :  { %v7384_v39 = vpop.f32.mrf.mxu1 }
 0x9ef   :  { %5717 = vst [vmem:[#allocation5 + $0x100] sm:$0xff] %v5559_v38  ;;  %v5570_v40 = vadd.f32 %v7384_v39, %v8622_v34 }
 0x9f0   :  { %v5561_v41 = vpop.f32.mrf.mxu1 }
 0x9f1   :  { %5720 = vst [vmem:[#allocation5 + $0x118] sm:$0xff] %v5570_v40  ;;  %v5562_v42 = vadd.f32 %v8622_v34, %v5561_v41 }
 0x9f2   :  { %v7387_v43 = vpop.f32.mrf.mxu1 }
 0x9f3   :  { %5718 = vst [vmem:[#allocation5 + $0x108] sm:$0xff] %v5562_v42  ;;  %v5583_v44 = vadd.f32 %v7387_v43, %v8622_v34 }
 0x9f4   :  { %v5574_v45 = vpop.f32.mrf.mxu1 }
 0x9f5   :  { %5723 = vst [vmem:[#allocation5 + $0x130] sm:$0xff] %v5583_v44  ;;  %v5575_v46 = vadd.f32 %v8622_v34, %v5574_v45 }
 0x9f6   :  { %v7388_v47 = vpop.f32.mrf.mxu1 }
 0x9f7   :  { %5721 = vst [vmem:[#allocation5 + $0x120] sm:$0xff] %v5575_v46  ;;  %v5586_v48 = vadd.f32 %v7388_v47, %v8622_v34 }
 0x9f8   :  { %v5577_v49 = vpop.f32.mrf.mxu1 }
 0x9f9   :  { %5724 = vst [vmem:[#allocation5 + $0x138] sm:$0xff] %v5586_v48  ;;  %v5578_v50 = vadd.f32 %v8622_v34, %v5577_v49 }
 0x9fa   :  { %v7391_v51 = vpop.f32.mrf.mxu1 }
 0x9fb   :  { %5722 = vst [vmem:[#allocation5 + $0x128] sm:$0xff] %v5578_v50  ;;  %v5599_v52 = vadd.f32 %v7391_v51, %v8622_v34 }
 0x9fc   :  { %v5590_v53 = vpop.f32.mrf.mxu1 }
 0x9fd   :  { %5727 = vst [vmem:[#allocation5 + $0x150] sm:$0xff] %v5599_v52  ;;  %v5591_v54 = vadd.f32 %v8622_v34, %v5590_v53 }
 0x9fe   :  { %v7392_v55 = vpop.f32.mrf.mxu1 }
 0x9ff   :  { %5725 = vst [vmem:[#allocation5 + $0x140] sm:$0xff] %v5591_v54  ;;  %v5602_v56 = vadd.f32 %v7392_v55, %v8622_v34 }
 0xa00   :  { %v5593_v57 = vpop.f32.mrf.mxu1 }
 0xa01   :  { %5728 = vst [vmem:[#allocation5 + $0x158] sm:$0xff] %v5602_v56  ;;  %v5594_v58 = vadd.f32 %v8622_v34, %v5593_v57 }
 0xa02   :  { %v7395_v59 = vpop.f32.mrf.mxu1 }
 0xa03   :  { %5726 = vst [vmem:[#allocation5 + $0x148] sm:$0xff] %v5594_v58  ;;  %v5615_v60 = vadd.f32 %v7395_v59, %v8622_v34 }
 0xa04   :  { %v5606_v61 = vpop.f32.mrf.mxu1 }
 0xa05   :  { %5731 = vst [vmem:[#allocation5 + $0x170] sm:$0xff] %v5615_v60  ;;  %v5607_v62 = vadd.f32 %v8622_v34, %v5606_v61 }
 0xa06   :  { %v7396_v63 = vpop.f32.mrf.mxu1 }
 0xa07   :  { %5729 = vst [vmem:[#allocation5 + $0x160] sm:$0xff] %v5607_v62  ;;  %v5618_v1 = vadd.f32 %v7396_v63, %v8622_v34 }
 0xa08   :  { %v5609_v2 = vpop.f32.mrf.mxu1 }
 0xa09   :  { %5732 = vst [vmem:[#allocation5 + $0x178] sm:$0xff] %v5618_v1  ;;  %v5610_v11 = vadd.f32 %v8622_v34, %v5609_v2 }
 0xa0a   :  { %v7399_v3 = vpop.f32.mrf.mxu1 }
 0xa0b   :  { %5730 = vst [vmem:[#allocation5 + $0x168] sm:$0xff] %v5610_v11  ;;  %v5631_v4 = vadd.f32 %v7399_v3, %v8622_v34 }
 0xa0c   :  { %v5622_v5 = vpop.f32.mrf.mxu1 }
 0xa0d   :  { %5735 = vst [vmem:[#allocation5 + $0x190] sm:$0xff] %v5631_v4  ;;  %v5623_v6 = vadd.f32 %v8622_v34, %v5622_v5 }
 0xa0e   :  { %v7400_v7 = vpop.f32.mrf.mxu1 }
 0xa0f   :  { %5733 = vst [vmem:[#allocation5 + $0x180] sm:$0xff] %v5623_v6  ;;  %v5634_v8 = vadd.f32 %v7400_v7, %v8622_v34 }
 0xa10   :  { %v5625_v9 = vpop.f32.mrf.mxu1 }
 0xa11   :  { %5736 = vst [vmem:[#allocation5 + $0x198] sm:$0xff] %v5634_v8  ;;  %v5626_v10 = vadd.f32 %v8622_v34, %v5625_v9 }
 0xa12   :  { %v7403_v12 = vpop.f32.mrf.mxu1 }
 0xa13   :  { %5734 = vst [vmem:[#allocation5 + $0x188] sm:$0xff] %v5626_v10  ;;  %v5647_v13 = vadd.f32 %v7403_v12, %v8622_v34 }
 0xa14   :  { %v5638_v14 = vpop.f32.mrf.mxu1 }
 0xa15   :  { %5739 = vst [vmem:[#allocation5 + $0x1b0] sm:$0xff] %v5647_v13  ;;  %v5639_v15 = vadd.f32 %v8622_v34, %v5638_v14 }
 0xa16   :  { %v7404_v16 = vpop.f32.mrf.mxu1 }
 0xa17   :  { %5737 = vst [vmem:[#allocation5 + $0x1a0] sm:$0xff] %v5639_v15  ;;  %v5650_v17 = vadd.f32 %v7404_v16, %v8622_v34 }
 0xa18   :  { %v5641_v18 = vpop.f32.mrf.mxu1 }
 0xa19   :  { %5740 = vst [vmem:[#allocation5 + $0x1b8] sm:$0xff] %v5650_v17  ;;  %v5642_v19 = vadd.f32 %v8622_v34, %v5641_v18 }
 0xa1a   :  { %v7407_v20 = vpop.f32.mrf.mxu1 }
 0xa1b   :  { %5738 = vst [vmem:[#allocation5 + $0x1a8] sm:$0xff] %v5642_v19  ;;  %v5663_v21 = vadd.f32 %v7407_v20, %v8622_v34 }
 0xa1c   :  { %v5654_v22 = vpop.f32.mrf.mxu1 }
 0xa1d   :  { %5743 = vst [vmem:[#allocation5 + $0x1d0] sm:$0xff] %v5663_v21  ;;  %v5655_v23 = vadd.f32 %v8622_v34, %v5654_v22 }
 0xa1e   :  { %v7408_v24 = vpop.f32.mrf.mxu1 }
 0xa1f   :  { %5741 = vst [vmem:[#allocation5 + $0x1c0] sm:$0xff] %v5655_v23  ;;  %v5666_v25 = vadd.f32 %v7408_v24, %v8622_v34 }
 0xa20   :  { %v5657_v26 = vpop.f32.mrf.mxu1 }
 0xa21   :  { %5744 = vst [vmem:[#allocation5 + $0x1d8] sm:$0xff] %v5666_v25  ;;  %v5658_v27 = vadd.f32 %v8622_v34, %v5657_v26 }
 0xa22   :  { %v7411_v28 = vpop.f32.mrf.mxu1 }
 0xa23   :  { %5742 = vst [vmem:[#allocation5 + $0x1c8] sm:$0xff] %v5658_v27  ;;  %v5679_v29 = vadd.f32 %v7411_v28, %v8622_v34 }
 0xa24   :  { %v5670_v30 = vpop.f32.mrf.mxu1 }
 0xa25   :  { %5747 = vst [vmem:[#allocation5 + $0x1f0] sm:$0xff] %v5679_v29  ;;  %v5671_v31 = vadd.f32 %v8622_v34, %v5670_v30 }
 0xa26   :  { %v7412_v32 = vpop.f32.mrf.mxu1 }
 0xa27   :  { %5745 = vst [vmem:[#allocation5 + $0x1e0] sm:$0xff] %v5671_v31  ;;  %v5682_v33 = vadd.f32 %v7412_v32, %v8622_v34 }
 0xa28   :  { %v5673_v35 = vpop.f32.mrf.mxu1 }
 0xa29   :  { %5748 = vst [vmem:[#allocation5 + $0x1f8] sm:$0xff] %v5682_v33  ;;  %v5674_v36 = vadd.f32 %v8622_v34, %v5673_v35 }
 0xa2b   :  { %5746 = vst [vmem:[#allocation5 + $0x1e8] sm:$0xff] %v5674_v36 }
 0xa2c   :  { %7554 = shalt.err (!%p7551_p9)
}
 0xa2d   :  { %s7571_s9 = smov 128   ;;  %s7572_s10 = smov 8  }
 0xa2e   :  { %5760 = dma.vmem_to_hbm [thread:$0]  %s5755_s7, 8192, %s8695_s4, [#allocation4], %s7571_s9, %s7571_s9, %s7572_s10  }
 0xa2f   :  { %7565 = dma.done.wait [#allocation4], 8192  }
 0xa30   :  { %7566 = vsyncadd [#allocation4], 4294959104 }
 0xa31   :  { %5764 = vsyncpa [#allocation3], 1 }
 0xa32   :  { %5765 = vsyncpa [#allocation4], 1 }

</bundles_post_ra>
